<compile_context>
chip_gen: v5e
topology: v5e:2x2
jax: 0.10.0
libtpu: 0.0.40
codegen_flags: <defaults>
</compile_context>

<pallas_src>
import functools

import jax
import jax.numpy as jnp
import numpy as np
from jax.experimental import pallas as pl
from jax.experimental.pallas import tpu as pltpu  # noqa: F401  (TPU backend)

EPS = 1e-5  # PyTorch BatchNorm2d default eps


# ----------------------------- in-kernel helpers ----------------------------

def _dot(a, b):
    # default precision per perf review (no f32 multi-pass emulation)
    return jnp.dot(a, b, preferred_element_type=jnp.float32)


def _bn_relu(y):
    """Train-mode BatchNorm (gamma=1, beta=0, biased var) + ReLU.

    y is (channels, pixels); stats are taken over the pixel (lane) axis.
    """
    m = y.shape[-1]
    mean = jnp.sum(y, axis=1, keepdims=True) * (1.0 / m)
    d = y - mean
    var = jnp.sum(d * d, axis=1, keepdims=True) * (1.0 / m)
    return jnp.maximum(d * jax.lax.rsqrt(var + EPS), 0.0)


# ------------------------------- Pallas kernels -----------------------------

def _fused_autoencoder_kernel(
        x9_ref, w1_ref, b1_ref, s1_ref,
        w2_ref, b2_ref, t2_ref, s2_ref,
        w3_ref, b3_ref, t3_ref, s3_ref,
        wt1_ref, bt1_ref, e1_ref,
        wt2_ref, bt2_ref, e2_ref,
        wt3_ref, bt3_ref, e3_ref,
        out_ref):
    """conv1..conv3 (+BN+ReLU+pool) and convt1..convt3 (+BN+ReLU), fully fused.

    Activations are (C, M) with M = N*H*W pixels in (n, y, x) order.
    s*: (4, M, M/4)  0/1 pool-tap gather matrices
    t*: (9, M, M)    0/1 3x3-tap shift (with zero padding) matrices
    e*: (4, M, 4M)   0/1 conv-transpose sub-pixel scatter matrices
    """

    def pool(y, s_ref):
        # 2x2/stride-2 max pool: gather the 4 window taps, take the max.
        p0 = _dot(y, s_ref[0])
        p1 = _dot(y, s_ref[1])
        p2 = _dot(y, s_ref[2])
        p3 = _dot(y, s_ref[3])
        return jnp.maximum(jnp.maximum(p0, p1), jnp.maximum(p2, p3))

    def conv3x3(x, w_ref, b_ref, t_ref):
        # padding=1 3x3 conv: 9 shifted-and-zero-masked copies of x via the
        # tap matrices, each hit with its (Cout, Cin) weight slice.
        acc = b_ref[...]                       # (Cout, 1), broadcasts below
        for t in range(9):
            acc = acc + _dot(w_ref[t], _dot(x, t_ref[t]))
        return acc                             # (Cout, M)

    def convt_bn_relu(x, w_ref, b_ref, e_ref):
        # ConvTranspose2d(k=2, s=2): 4 independent sub-pixel planes,
        # train-mode BN + ReLU over all 4*M upsampled pixels, then scatter
        # into the fine-grid (n, y, x) pixel order.
        ys = [_dot(w_ref[b], x) + b_ref[...] for b in range(4)]   # 4 x (Cout, M)
        inv_cnt = 1.0 / (4.0 * x.shape[-1])
        mean = (jnp.sum(ys[0], axis=1, keepdims=True) +
                jnp.sum(ys[1], axis=1, keepdims=True) +
                jnp.sum(ys[2], axis=1, keepdims=True) +
                jnp.sum(ys[3], axis=1, keepdims=True)) * inv_cnt
        ds = [y - mean for y in ys]
        var = (jnp.sum(ds[0] * ds[0], axis=1, keepdims=True) +
               jnp.sum(ds[1] * ds[1], axis=1, keepdims=True) +
               jnp.sum(ds[2] * ds[2], axis=1, keepdims=True) +
               jnp.sum(ds[3] * ds[3], axis=1, keepdims=True)) * inv_cnt
        inv = jax.lax.rsqrt(var + EPS)
        out = _dot(jnp.maximum(ds[0] * inv, 0.0), e_ref[0])
        for b in range(1, 4):
            out = out + _dot(jnp.maximum(ds[b] * inv, 0.0), e_ref[b])
        return out                              # (Cout, 4*M)

    # ------------------------------ encoder ------------------------------
    a = _bn_relu(_dot(w1_ref[...], x9_ref[...]) + b1_ref[...])     # (16, M)
    a = pool(a, s1_ref)                                            # (16, M/4)
    a = pool(_bn_relu(conv3x3(a, w2_ref, b2_ref, t2_ref)), s2_ref)  # (8, M/16)
    a = pool(_bn_relu(conv3x3(a, w3_ref, b3_ref, t3_ref)), s3_ref)  # (8, M/64)
    # ------------------------------ decoder ------------------------------
    a = convt_bn_relu(a, wt1_ref, bt1_ref, e1_ref)                 # (8, M/16)
    a = convt_bn_relu(a, wt2_ref, bt2_ref, e2_ref)                 # (16, M/4)
    a = convt_bn_relu(a, wt3_ref, bt3_ref, e3_ref)                 # (8, M)
    out_ref[...] = a


def _conv3x3_bn_relu_kernel(x9_ref, w_ref, b_ref, out_ref):
    """Final conv4 + BN + ReLU on a wrapper-provided im2col (lane-dense (1, M) out)."""
    y = _dot(w_ref[...], x9_ref[...]) + b_ref[...]
    out_ref[...] = _bn_relu(y)


# ----------------------- static 0/1 routing matrices ------------------------

@functools.lru_cache(maxsize=None)
def _pool_select(n, h, w):
    """(4, M, M/4): S[b, p, q] = 1 iff fine pixel p is tap b of coarse window q."""
    m, mo = n * h * w, n * (h // 2) * (w // 2)
    s = np.zeros((4, m, mo), np.float32)
    for bi in range(n):
        for yo in range(h // 2):
            for xo in range(w // 2):
                q = (bi * (h // 2) + yo) * (w // 2) + xo
                for oy in range(2):
                    for ox in range(2):
                        p = (bi * h + 2 * yo + oy) * w + 2 * xo + ox
                        s[oy * 2 + ox, p, q] = 1.0
    return s


@functools.lru_cache(maxsize=None)
def _tap_select(n, h, w):
    """(9, M, M): T[t, ps, pd] = 1 iff ps is the (ky-1, kx-1) neighbour of pd (zero pad)."""
    m = n * h * w
    t = np.zeros((9, m, m), np.float32)
    for ti, (ky, kx) in enumerate([(a, b) for a in range(3) for b in range(3)]):
        dy, dx = ky - 1, kx - 1
        for bi in range(n):
            for y in range(h):
                for x in range(w):
                    ys, xs = y + dy, x + dx
                    if 0 <= ys < h and 0 <= xs < w:
                        t[ti, (bi * h + ys) * w + xs, (bi * h + y) * w + x] = 1.0
    return t


@functools.lru_cache(maxsize=None)
def _up_select(n, h, w):
    """(4, M, 4M): E[b, p, P] = 1 iff fine pixel P = (2y+oy, 2x+ox) of coarse p."""
    m, mf = n * h * w, n * (2 * h) * (2 * w)
    e = np.zeros((4, m, mf), np.float32)
    for bi in range(n):
        for y in range(h):
            for x in range(w):
                p = (bi * h + y) * w + x
                for oy in range(2):
                    for ox in range(2):
                        pf = (bi * 2 * h + 2 * y + oy) * (2 * w) + 2 * x + ox
                        e[oy * 2 + ox, p, pf] = 1.0
    return e


# ----------------------------- wrapper utilities ----------------------------

def _im2col_cm(a):
    """a: (C, N, H, W) channel-major -> (9*C, N*H*W); rows (ky, kx, c); zero pad=1."""
    c, n, h, w = a.shape
    ap = jnp.pad(a, ((0, 0), (0, 0), (1, 1), (1, 1)))
    taps = [ap[:, :, ky:ky + h, kx:kx + w] for ky in range(3) for kx in range(3)]
    return jnp.stack(taps, axis=0).reshape(9 * c, n * h * w)


def _conv_w_flat(w):   # (Cout, Cin, 3, 3) -> (Cout, 9*Cin), cols ordered (ky, kx, ci)
    co, ci = w.shape[0], w.shape[1]
    return jnp.transpose(w, (0, 2, 3, 1)).reshape(co, 9 * ci)


def _conv_w_taps(w):   # (Cout, Cin, 3, 3) -> (9, Cout, Cin)
    co, ci = w.shape[0], w.shape[1]
    return jnp.transpose(w, (2, 3, 0, 1)).reshape(9, co, ci)


def _convt_w_taps(w):  # (Cin, Cout, 2, 2) -> (4, Cout, Cin)
    ci, co = w.shape[0], w.shape[1]
    return jnp.transpose(w, (2, 3, 1, 0)).reshape(4, co, ci)


def forward(x_nchw, p):
    """Pallas implementation of autoencoder.forward (train-mode BN)."""
    x = x_nchw.astype(jnp.float32)
    n, cin, h, w = x.shape
    m = n * h * w

    # ---- parameter repacking (tiny one-shot XLA ops) ----
    w1 = _conv_w_flat(p['conv1_w']);  b1 = p['conv1_b'].reshape(-1, 1)
    w2 = _conv_w_taps(p['conv2_w']);  b2 = p['conv2_b'].reshape(-1, 1)
    w3 = _conv_w_taps(p['conv3_w']);  b3 = p['conv3_b'].reshape(-1, 1)
    w4 = _conv_w_flat(p['conv4_w']);  b4 = p['conv4_b'].reshape(-1, 1)
    wt1 = _convt_w_taps(p['convt1_w']); bt1 = p['convt1_b'].reshape(-1, 1)
    wt2 = _convt_w_taps(p['convt2_w']); bt2 = p['convt2_b'].reshape(-1, 1)
    wt3 = _convt_w_taps(p['convt3_w']); bt3 = p['convt3_b'].reshape(-1, 1)

    # ---- static 0/1 routing matrices (pool / conv taps / convt scatter) ----
    s1 = jnp.asarray(_pool_select(n, h, w))
    s2 = jnp.asarray(_pool_select(n, h // 2, w // 2))
    s3 = jnp.asarray(_pool_select(n, h // 4, w // 4))
    t2 = jnp.asarray(_tap_select(n, h // 2, w // 2))
    t3 = jnp.asarray(_tap_select(n, h // 4, w // 4))
    e1 = jnp.asarray(_up_select(n, h // 8, w // 8))
    e2 = jnp.asarray(_up_select(n, h // 4, w // 4))
    e3 = jnp.asarray(_up_select(n, h // 2, w // 2))

    # conv1's im2col of the (tiny) network input is plain XLA glue.
    x9 = _im2col_cm(jnp.transpose(x, (1, 0, 2, 3)))          # (9*cin, m)

    # Kernel 1: everything except conv4, fully VMEM-resident. No grid.
    dec = pl.pallas_call(
        _fused_autoencoder_kernel,
        out_shape=jax.ShapeDtypeStruct((8, m), jnp.float32),
    )(x9, w1, b1, s1, w2, b2, t2, s2, w3, b3, t3, s3,
      wt1, bt1, e1, wt2, bt2, e2, wt3, bt3, e3)

    # Kernel 2: conv4 + BN + ReLU (im2col of the decoder output is XLA glue).
    x9_4 = _im2col_cm(dec.reshape(8, n, h, w))               # (72, m)
    y4 = pl.pallas_call(
        _conv3x3_bn_relu_kernel,
        out_shape=jax.ShapeDtypeStruct((1, m), jnp.float32),
    )(x9_4, w4, b4)

    return jnp.transpose(y4.reshape(1, n, h, w), (1, 0, 2, 3))   # (N, 1, H, W)


# ---------------------------- pure-JAX reference ----------------------------

def _ref_bn_relu(x):
    mean = x.mean(axis=(0, 1, 2), keepdims=True)
    var = ((x - mean) ** 2).mean(axis=(0, 1, 2), keepdims=True)
    return jnp.maximum((x - mean) * jax.lax.rsqrt(var + EPS), 0.0)


def _ref_conv3x3(x, w, b):
    y = jax.lax.conv_general_dilated(
        x, jnp.transpose(w, (2, 3, 1, 0)), (1, 1), ((1, 1), (1, 1)),
        dimension_numbers=('NHWC', 'HWIO', 'NHWC'),
        precision=jax.lax.Precision.HIGHEST)
    return y + b


def _ref_convt2x2(x, w, b):
    n, h, ww, cin = x.shape
    cout = w.shape[1]
    t = jnp.einsum('nhwi,ioyx->nhywxo', x, w,
                   precision=jax.lax.Precision.HIGHEST)
    return t.reshape(n, 2 * h, 2 * ww, cout) + b


def _ref_pool(x):
    n, h, w, c = x.shape
    return x.reshape(n, h // 2, 2, w // 2, 2, c).max(axis=(2, 4))


def reference_forward(x_nchw, p):
    x = jnp.transpose(x_nchw, (0, 2, 3, 1))
    x = _ref_pool(_ref_bn_relu(_ref_conv3x3(x, p['conv1_w'], p['conv1_b'])))
    x = _ref_pool(_ref_bn_relu(_ref_conv3x3(x, p['conv2_w'], p['conv2_b'])))
    x = _ref_pool(_ref_bn_relu(_ref_conv3x3(x, p['conv3_w'], p['conv3_b'])))
    x = _ref_bn_relu(_ref_convt2x2(x, p['convt1_w'], p['convt1_b']))
    x = _ref_bn_relu(_ref_convt2x2(x, p['convt2_w'], p['convt2_b']))
    x = _ref_bn_relu(_ref_convt2x2(x, p['convt3_w'], p['convt3_b']))
    x = _ref_bn_relu(_ref_conv3x3(x, p['conv4_w'], p['conv4_b']))
    return jnp.transpose(x, (0, 3, 1, 2))


# ------------------------------ parameter init ------------------------------

def init_params(key):
    ks = jax.random.split(key, 14)

    def xavier(k, cout, cin, kh, kw):            # nn.init.xavier_normal
        fan_in, fan_out = cin * kh * kw, cout * kh * kw
        std = (2.0 / (fan_in + fan_out)) ** 0.5
        return std * jax.random.normal(k, (cout, cin, kh, kw), jnp.float32)

    def ct_w(k, cin, cout):                      # ConvTranspose2d default-style init
        bound = 1.0 / (cin * 4) ** 0.5
        return bound * jax.random.normal(k, (cin, cout, 2, 2), jnp.float32)

    p = {
        'conv1_w': xavier(ks[0], 16, 1, 3, 3),
        'conv1_b': jax.random.normal(ks[1], (16,), jnp.float32),
        'conv2_w': xavier(ks[2], 8, 16, 3, 3),
        'conv2_b': jax.random.normal(ks[3], (8,), jnp.float32),
        'conv3_w': xavier(ks[4], 8, 8, 3, 3),
        'conv3_b': jax.random.normal(ks[5], (8,), jnp.float32),
        'conv4_w': xavier(ks[6], 1, 8, 3, 3),
        'conv4_b': jax.random.normal(ks[7], (1,), jnp.float32),
        'convt1_w': ct_w(ks[8], 8, 8),
        'convt1_b': 0.1 * jax.random.normal(ks[9], (8,), jnp.float32),
        'convt2_w': ct_w(ks[10], 8, 16),
        'convt2_b': 0.1 * jax.random.normal(ks[11], (16,), jnp.float32),
        'convt3_w': ct_w(ks[12], 16, 8),
        'convt3_b': 0.1 * jax.random.normal(ks[13], (8,), jnp.float32),
    }
    # BatchNorm weight=1 / bias=0 with train-mode batch stats => pure
    # standardization; no explicit BN params are needed.
    return p


# ----------------------------------- main ------------------------------------

if __name__ == "__main__":
    key = jax.random.PRNGKey(0)
    kx, kp = jax.random.split(key)
    x = jax.random.normal(kx, (2, 1, 16, 16), jnp.float32)    # NCHW, Cin=1
    params = init_params(kp)

    out = jax.block_until_ready(jax.jit(forward)(x, params))
    assert out.shape == (2, 1, 16, 16) and out.dtype == jnp.float32

    ref = jax.block_until_ready(jax.jit(reference_forward)(x, params))
    # Tolerance is set for single-pass (bf16-operand) MXU matmuls at default
    # precision (per perf review); structural/indexing bugs would be O(1) off.
    np.testing.assert_allclose(np.asarray(out), np.asarray(ref),
                               rtol=3e-2, atol=3e-2)
    print("KERNEL_OK")
</pallas_src>

<mosaic_0001>
module attributes {stable_mosaic.version = 11 : i64} {
  func.func @_fused_autoencoder_kernel(%arg0: memref<9x512xf32, #tpu.memory_space<vmem>>, %arg1: memref<16x9xf32, #tpu.memory_space<vmem>>, %arg2: memref<16x1xf32, #tpu.memory_space<vmem>>, %arg3: memref<4x512x128xf32, #tpu.memory_space<vmem>>, %arg4: memref<9x8x16xf32, #tpu.memory_space<vmem>>, %arg5: memref<8x1xf32, #tpu.memory_space<vmem>>, %arg6: memref<9x128x128xf32, #tpu.memory_space<vmem>>, %arg7: memref<4x128x32xf32, #tpu.memory_space<vmem>>, %arg8: memref<9x8x8xf32, #tpu.memory_space<vmem>>, %arg9: memref<8x1xf32, #tpu.memory_space<vmem>>, %arg10: memref<9x32x32xf32, #tpu.memory_space<vmem>>, %arg11: memref<4x32x8xf32, #tpu.memory_space<vmem>>, %arg12: memref<4x8x8xf32, #tpu.memory_space<vmem>>, %arg13: memref<8x1xf32, #tpu.memory_space<vmem>>, %arg14: memref<4x8x32xf32, #tpu.memory_space<vmem>>, %arg15: memref<4x16x8xf32, #tpu.memory_space<vmem>>, %arg16: memref<16x1xf32, #tpu.memory_space<vmem>>, %arg17: memref<4x32x128xf32, #tpu.memory_space<vmem>>, %arg18: memref<4x8x16xf32, #tpu.memory_space<vmem>>, %arg19: memref<8x1xf32, #tpu.memory_space<vmem>>, %arg20: memref<4x128x512xf32, #tpu.memory_space<vmem>>, %arg21: memref<8x512xf32, #tpu.memory_space<vmem>>) attributes {dimension_semantics = [], scalar_prefetch = 0 : i64, scratch_operands = 0 : i64, tpu.core_type = #tpu.core_type<tc>} {
    %c0 = arith.constant 0 : index
    %c0_0 = arith.constant 0 : index
    %0 = vector.load %arg1[%c0, %c0_0] : memref<16x9xf32, #tpu.memory_space<vmem>>, vector<16x9xf32>
    %c0_1 = arith.constant 0 : index
    %c0_2 = arith.constant 0 : index
    %1 = vector.load %arg0[%c0_1, %c0_2] : memref<9x512xf32, #tpu.memory_space<vmem>>, vector<9x512xf32>
    %cst = arith.constant dense<0.000000e+00> : vector<16x512xf32>
    %2 = tpu.matmul %0, %1, %cst {dimension_numbers = #tpu.dot_dimension_numbers<[1], [0], [0], [1], [0, 0, 1, 1], [], []>} : vector<16x9xf32>, vector<9x512xf32>, vector<16x512xf32> -> vector<16x512xf32>
    %c0_3 = arith.constant 0 : index
    %c0_4 = arith.constant 0 : index
    %3 = vector.load %arg2[%c0_3, %c0_4] : memref<16x1xf32, #tpu.memory_space<vmem>>, vector<16x1xf32>
    %4 = vector.broadcast %3 : vector<16x1xf32> to vector<16x512xf32>
    %5 = arith.addf %2, %4 : vector<16x512xf32>
    %cst_5 = arith.constant dense<0.000000e+00> : vector<16xf32>
    %6 = vector.multi_reduction <add>, %5, %cst_5 [1] : vector<16x512xf32> to vector<16xf32>
    %7 = vector.shape_cast %6 : vector<16xf32> to vector<16x1xf32>
    %cst_6 = arith.constant 0.001953125 : f32
    %8 = vector.broadcast %cst_6 : f32 to vector<16x1xf32>
    %9 = arith.mulf %7, %8 : vector<16x1xf32>
    %10 = vector.broadcast %9 : vector<16x1xf32> to vector<16x512xf32>
    %11 = arith.subf %5, %10 : vector<16x512xf32>
    %12 = arith.mulf %11, %11 : vector<16x512xf32>
    %cst_7 = arith.constant dense<0.000000e+00> : vector<16xf32>
    %13 = vector.multi_reduction <add>, %12, %cst_7 [1] : vector<16x512xf32> to vector<16xf32>
    %14 = vector.shape_cast %13 : vector<16xf32> to vector<16x1xf32>
    %cst_8 = arith.constant 0.001953125 : f32
    %15 = vector.broadcast %cst_8 : f32 to vector<16x1xf32>
    %16 = arith.mulf %14, %15 : vector<16x1xf32>
    %cst_9 = arith.constant 9.99999974E-6 : f32
    %17 = vector.broadcast %cst_9 : f32 to vector<16x1xf32>
    %18 = arith.addf %16, %17 : vector<16x1xf32>
    %19 = math.rsqrt %18 : vector<16x1xf32>
    %20 = vector.broadcast %19 : vector<16x1xf32> to vector<16x512xf32>
    %21 = arith.mulf %11, %20 : vector<16x512xf32>
    %cst_10 = arith.constant 0.000000e+00 : f32
    %22 = vector.broadcast %cst_10 : f32 to vector<16x512xf32>
    %23 = arith.maximumf %21, %22 : vector<16x512xf32>
    %c0_11 = arith.constant 0 : index
    %c0_12 = arith.constant 0 : index
    %c0_13 = arith.constant 0 : index
    %24 = vector.load %arg3[%c0_11, %c0_12, %c0_13] : memref<4x512x128xf32, #tpu.memory_space<vmem>>, vector<1x512x128xf32>
    %25 = vector.shape_cast %24 : vector<1x512x128xf32> to vector<512x128xf32>
    %cst_14 = arith.constant dense<0.000000e+00> : vector<16x128xf32>
    %26 = tpu.matmul %23, %25, %cst_14 {dimension_numbers = #tpu.dot_dimension_numbers<[1], [0], [0], [1], [0, 0, 1, 1], [], []>} : vector<16x512xf32>, vector<512x128xf32>, vector<16x128xf32> -> vector<16x128xf32>
    %c1 = arith.constant 1 : index
    %c0_15 = arith.constant 0 : index
    %c0_16 = arith.constant 0 : index
    %27 = vector.load %arg3[%c1, %c0_15, %c0_16] : memref<4x512x128xf32, #tpu.memory_space<vmem>>, vector<1x512x128xf32>
    %28 = vector.shape_cast %27 : vector<1x512x128xf32> to vector<512x128xf32>
    %cst_17 = arith.constant dense<0.000000e+00> : vector<16x128xf32>
    %29 = tpu.matmul %23, %28, %cst_17 {dimension_numbers = #tpu.dot_dimension_numbers<[1], [0], [0], [1], [0, 0, 1, 1], [], []>} : vector<16x512xf32>, vector<512x128xf32>, vector<16x128xf32> -> vector<16x128xf32>
    %c2 = arith.constant 2 : index
    %c0_18 = arith.constant 0 : index
    %c0_19 = arith.constant 0 : index
    %30 = vector.load %arg3[%c2, %c0_18, %c0_19] : memref<4x512x128xf32, #tpu.memory_space<vmem>>, vector<1x512x128xf32>
    %31 = vector.shape_cast %30 : vector<1x512x128xf32> to vector<512x128xf32>
    %cst_20 = arith.constant dense<0.000000e+00> : vector<16x128xf32>
    %32 = tpu.matmul %23, %31, %cst_20 {dimension_numbers = #tpu.dot_dimension_numbers<[1], [0], [0], [1], [0, 0, 1, 1], [], []>} : vector<16x512xf32>, vector<512x128xf32>, vector<16x128xf32> -> vector<16x128xf32>
    %c3 = arith.constant 3 : index
    %c0_21 = arith.constant 0 : index
    %c0_22 = arith.constant 0 : index
    %33 = vector.load %arg3[%c3, %c0_21, %c0_22] : memref<4x512x128xf32, #tpu.memory_space<vmem>>, vector<1x512x128xf32>
    %34 = vector.shape_cast %33 : vector<1x512x128xf32> to vector<512x128xf32>
    %cst_23 = arith.constant dense<0.000000e+00> : vector<16x128xf32>
    %35 = tpu.matmul %23, %34, %cst_23 {dimension_numbers = #tpu.dot_dimension_numbers<[1], [0], [0], [1], [0, 0, 1, 1], [], []>} : vector<16x512xf32>, vector<512x128xf32>, vector<16x128xf32> -> vector<16x128xf32>
    %36 = arith.maximumf %26, %29 : vector<16x128xf32>
    %37 = arith.maximumf %32, %35 : vector<16x128xf32>
    %38 = arith.maximumf %36, %37 : vector<16x128xf32>
    %c0_24 = arith.constant 0 : index
    %c0_25 = arith.constant 0 : index
    %39 = vector.load %arg5[%c0_24, %c0_25] : memref<8x1xf32, #tpu.memory_space<vmem>>, vector<8x1xf32>
    %c0_26 = arith.constant 0 : index
    %c0_27 = arith.constant 0 : index
    %c0_28 = arith.constant 0 : index
    %40 = vector.load %arg4[%c0_26, %c0_27, %c0_28] : memref<9x8x16xf32, #tpu.memory_space<vmem>>, vector<1x8x16xf32>
    %41 = vector.shape_cast %40 : vector<1x8x16xf32> to vector<8x16xf32>
    %c0_29 = arith.constant 0 : index
    %c0_30 = arith.constant 0 : index
    %c0_31 = arith.constant 0 : index
    %42 = vector.load %arg6[%c0_29, %c0_30, %c0_31] : memref<9x128x128xf32, #tpu.memory_space<vmem>>, vector<1x128x128xf32>
    %43 = vector.shape_cast %42 : vector<1x128x128xf32> to vector<128x128xf32>
    %cst_32 = arith.constant dense<0.000000e+00> : vector<16x128xf32>
    %44 = tpu.matmul %38, %43, %cst_32 {dimension_numbers = #tpu.dot_dimension_numbers<[1], [0], [0], [1], [0, 0, 1, 1], [], []>} : vector<16x128xf32>, vector<128x128xf32>, vector<16x128xf32> -> vector<16x128xf32>
    %cst_33 = arith.constant dense<0.000000e+00> : vector<8x128xf32>
    %45 = tpu.matmul %41, %44, %cst_33 {dimension_numbers = #tpu.dot_dimension_numbers<[1], [0], [0], [1], [0, 0, 1, 1], [], []>} : vector<8x16xf32>, vector<16x128xf32>, vector<8x128xf32> -> vector<8x128xf32>
    %46 = vector.broadcast %39 : vector<8x1xf32> to vector<8x128xf32>
    %47 = arith.addf %46, %45 : vector<8x128xf32>
    %c1_34 = arith.constant 1 : index
    %c0_35 = arith.constant 0 : index
    %c0_36 = arith.constant 0 : index
    %48 = vector.load %arg4[%c1_34, %c0_35, %c0_36] : memref<9x8x16xf32, #tpu.memory_space<vmem>>, vector<1x8x16xf32>
    %49 = vector.shape_cast %48 : vector<1x8x16xf32> to vector<8x16xf32>
    %c1_37 = arith.constant 1 : index
    %c0_38 = arith.constant 0 : index
    %c0_39 = arith.constant 0 : index
    %50 = vector.load %arg6[%c1_37, %c0_38, %c0_39] : memref<9x128x128xf32, #tpu.memory_space<vmem>>, vector<1x128x128xf32>
    %51 = vector.shape_cast %50 : vector<1x128x128xf32> to vector<128x128xf32>
    %cst_40 = arith.constant dense<0.000000e+00> : vector<16x128xf32>
    %52 = tpu.matmul %38, %51, %cst_40 {dimension_numbers = #tpu.dot_dimension_numbers<[1], [0], [0], [1], [0, 0, 1, 1], [], []>} : vector<16x128xf32>, vector<128x128xf32>, vector<16x128xf32> -> vector<16x128xf32>
    %cst_41 = arith.constant dense<0.000000e+00> : vector<8x128xf32>
    %53 = tpu.matmul %49, %52, %cst_41 {dimension_numbers = #tpu.dot_dimension_numbers<[1], [0], [0], [1], [0, 0, 1, 1], [], []>} : vector<8x16xf32>, vector<16x128xf32>, vector<8x128xf32> -> vector<8x128xf32>
    %54 = arith.addf %47, %53 : vector<8x128xf32>
    %c2_42 = arith.constant 2 : index
    %c0_43 = arith.constant 0 : index
    %c0_44 = arith.constant 0 : index
    %55 = vector.load %arg4[%c2_42, %c0_43, %c0_44] : memref<9x8x16xf32, #tpu.memory_space<vmem>>, vector<1x8x16xf32>
    %56 = vector.shape_cast %55 : vector<1x8x16xf32> to vector<8x16xf32>
    %c2_45 = arith.constant 2 : index
    %c0_46 = arith.constant 0 : index
    %c0_47 = arith.constant 0 : index
    %57 = vector.load %arg6[%c2_45, %c0_46, %c0_47] : memref<9x128x128xf32, #tpu.memory_space<vmem>>, vector<1x128x128xf32>
    %58 = vector.shape_cast %57 : vector<1x128x128xf32> to vector<128x128xf32>
    %cst_48 = arith.constant dense<0.000000e+00> : vector<16x128xf32>
    %59 = tpu.matmul %38, %58, %cst_48 {dimension_numbers = #tpu.dot_dimension_numbers<[1], [0], [0], [1], [0, 0, 1, 1], [], []>} : vector<16x128xf32>, vector<128x128xf32>, vector<16x128xf32> -> vector<16x128xf32>
    %cst_49 = arith.constant dense<0.000000e+00> : vector<8x128xf32>
    %60 = tpu.matmul %56, %59, %cst_49 {dimension_numbers = #tpu.dot_dimension_numbers<[1], [0], [0], [1], [0, 0, 1, 1], [], []>} : vector<8x16xf32>, vector<16x128xf32>, vector<8x128xf32> -> vector<8x128xf32>
    %61 = arith.addf %54, %60 : vector<8x128xf32>
    %c3_50 = arith.constant 3 : index
    %c0_51 = arith.constant 0 : index
    %c0_52 = arith.constant 0 : index
    %62 = vector.load %arg4[%c3_50, %c0_51, %c0_52] : memref<9x8x16xf32, #tpu.memory_space<vmem>>, vector<1x8x16xf32>
    %63 = vector.shape_cast %62 : vector<1x8x16xf32> to vector<8x16xf32>
    %c3_53 = arith.constant 3 : index
    %c0_54 = arith.constant 0 : index
    %c0_55 = arith.constant 0 : index
    %64 = vector.load %arg6[%c3_53, %c0_54, %c0_55] : memref<9x128x128xf32, #tpu.memory_space<vmem>>, vector<1x128x128xf32>
    %65 = vector.shape_cast %64 : vector<1x128x128xf32> to vector<128x128xf32>
    %cst_56 = arith.constant dense<0.000000e+00> : vector<16x128xf32>
    %66 = tpu.matmul %38, %65, %cst_56 {dimension_numbers = #tpu.dot_dimension_numbers<[1], [0], [0], [1], [0, 0, 1, 1], [], []>} : vector<16x128xf32>, vector<128x128xf32>, vector<16x128xf32> -> vector<16x128xf32>
    %cst_57 = arith.constant dense<0.000000e+00> : vector<8x128xf32>
    %67 = tpu.matmul %63, %66, %cst_57 {dimension_numbers = #tpu.dot_dimension_numbers<[1], [0], [0], [1], [0, 0, 1, 1], [], []>} : vector<8x16xf32>, vector<16x128xf32>, vector<8x128xf32> -> vector<8x128xf32>
    %68 = arith.addf %61, %67 : vector<8x128xf32>
    %c4 = arith.constant 4 : index
    %c0_58 = arith.constant 0 : index
    %c0_59 = arith.constant 0 : index
    %69 = vector.load %arg4[%c4, %c0_58, %c0_59] : memref<9x8x16xf32, #tpu.memory_space<vmem>>, vector<1x8x16xf32>
    %70 = vector.shape_cast %69 : vector<1x8x16xf32> to vector<8x16xf32>
    %c4_60 = arith.constant 4 : index
    %c0_61 = arith.constant 0 : index
    %c0_62 = arith.constant 0 : index
    %71 = vector.load %arg6[%c4_60, %c0_61, %c0_62] : memref<9x128x128xf32, #tpu.memory_space<vmem>>, vector<1x128x128xf32>
    %72 = vector.shape_cast %71 : vector<1x128x128xf32> to vector<128x128xf32>
    %cst_63 = arith.constant dense<0.000000e+00> : vector<16x128xf32>
    %73 = tpu.matmul %38, %72, %cst_63 {dimension_numbers = #tpu.dot_dimension_numbers<[1], [0], [0], [1], [0, 0, 1, 1], [], []>} : vector<16x128xf32>, vector<128x128xf32>, vector<16x128xf32> -> vector<16x128xf32>
    %cst_64 = arith.constant dense<0.000000e+00> : vector<8x128xf32>
    %74 = tpu.matmul %70, %73, %cst_64 {dimension_numbers = #tpu.dot_dimension_numbers<[1], [0], [0], [1], [0, 0, 1, 1], [], []>} : vector<8x16xf32>, vector<16x128xf32>, vector<8x128xf32> -> vector<8x128xf32>
    %75 = arith.addf %68, %74 : vector<8x128xf32>
    %c5 = arith.constant 5 : index
    %c0_65 = arith.constant 0 : index
    %c0_66 = arith.constant 0 : index
    %76 = vector.load %arg4[%c5, %c0_65, %c0_66] : memref<9x8x16xf32, #tpu.memory_space<vmem>>, vector<1x8x16xf32>
    %77 = vector.shape_cast %76 : vector<1x8x16xf32> to vector<8x16xf32>
    %c5_67 = arith.constant 5 : index
    %c0_68 = arith.constant 0 : index
    %c0_69 = arith.constant 0 : index
    %78 = vector.load %arg6[%c5_67, %c0_68, %c0_69] : memref<9x128x128xf32, #tpu.memory_space<vmem>>, vector<1x128x128xf32>
    %79 = vector.shape_cast %78 : vector<1x128x128xf32> to vector<128x128xf32>
    %cst_70 = arith.constant dense<0.000000e+00> : vector<16x128xf32>
    %80 = tpu.matmul %38, %79, %cst_70 {dimension_numbers = #tpu.dot_dimension_numbers<[1], [0], [0], [1], [0, 0, 1, 1], [], []>} : vector<16x128xf32>, vector<128x128xf32>, vector<16x128xf32> -> vector<16x128xf32>
    %cst_71 = arith.constant dense<0.000000e+00> : vector<8x128xf32>
    %81 = tpu.matmul %77, %80, %cst_71 {dimension_numbers = #tpu.dot_dimension_numbers<[1], [0], [0], [1], [0, 0, 1, 1], [], []>} : vector<8x16xf32>, vector<16x128xf32>, vector<8x128xf32> -> vector<8x128xf32>
    %82 = arith.addf %75, %81 : vector<8x128xf32>
    %c6 = arith.constant 6 : index
    %c0_72 = arith.constant 0 : index
    %c0_73 = arith.constant 0 : index
    %83 = vector.load %arg4[%c6, %c0_72, %c0_73] : memref<9x8x16xf32, #tpu.memory_space<vmem>>, vector<1x8x16xf32>
    %84 = vector.shape_cast %83 : vector<1x8x16xf32> to vector<8x16xf32>
    %c6_74 = arith.constant 6 : index
    %c0_75 = arith.constant 0 : index
    %c0_76 = arith.constant 0 : index
    %85 = vector.load %arg6[%c6_74, %c0_75, %c0_76] : memref<9x128x128xf32, #tpu.memory_space<vmem>>, vector<1x128x128xf32>
    %86 = vector.shape_cast %85 : vector<1x128x128xf32> to vector<128x128xf32>
    %cst_77 = arith.constant dense<0.000000e+00> : vector<16x128xf32>
    %87 = tpu.matmul %38, %86, %cst_77 {dimension_numbers = #tpu.dot_dimension_numbers<[1], [0], [0], [1], [0, 0, 1, 1], [], []>} : vector<16x128xf32>, vector<128x128xf32>, vector<16x128xf32> -> vector<16x128xf32>
    %cst_78 = arith.constant dense<0.000000e+00> : vector<8x128xf32>
    %88 = tpu.matmul %84, %87, %cst_78 {dimension_numbers = #tpu.dot_dimension_numbers<[1], [0], [0], [1], [0, 0, 1, 1], [], []>} : vector<8x16xf32>, vector<16x128xf32>, vector<8x128xf32> -> vector<8x128xf32>
    %89 = arith.addf %82, %88 : vector<8x128xf32>
    %c7 = arith.constant 7 : index
    %c0_79 = arith.constant 0 : index
    %c0_80 = arith.constant 0 : index
    %90 = vector.load %arg4[%c7, %c0_79, %c0_80] : memref<9x8x16xf32, #tpu.memory_space<vmem>>, vector<1x8x16xf32>
    %91 = vector.shape_cast %90 : vector<1x8x16xf32> to vector<8x16xf32>
    %c7_81 = arith.constant 7 : index
    %c0_82 = arith.constant 0 : index
    %c0_83 = arith.constant 0 : index
    %92 = vector.load %arg6[%c7_81, %c0_82, %c0_83] : memref<9x128x128xf32, #tpu.memory_space<vmem>>, vector<1x128x128xf32>
    %93 = vector.shape_cast %92 : vector<1x128x128xf32> to vector<128x128xf32>
    %cst_84 = arith.constant dense<0.000000e+00> : vector<16x128xf32>
    %94 = tpu.matmul %38, %93, %cst_84 {dimension_numbers = #tpu.dot_dimension_numbers<[1], [0], [0], [1], [0, 0, 1, 1], [], []>} : vector<16x128xf32>, vector<128x128xf32>, vector<16x128xf32> -> vector<16x128xf32>
    %cst_85 = arith.constant dense<0.000000e+00> : vector<8x128xf32>
    %95 = tpu.matmul %91, %94, %cst_85 {dimension_numbers = #tpu.dot_dimension_numbers<[1], [0], [0], [1], [0, 0, 1, 1], [], []>} : vector<8x16xf32>, vector<16x128xf32>, vector<8x128xf32> -> vector<8x128xf32>
    %96 = arith.addf %89, %95 : vector<8x128xf32>
    %c8 = arith.constant 8 : index
    %c0_86 = arith.constant 0 : index
    %c0_87 = arith.constant 0 : index
    %97 = vector.load %arg4[%c8, %c0_86, %c0_87] : memref<9x8x16xf32, #tpu.memory_space<vmem>>, vector<1x8x16xf32>
    %98 = vector.shape_cast %97 : vector<1x8x16xf32> to vector<8x16xf32>
    %c8_88 = arith.constant 8 : index
    %c0_89 = arith.constant 0 : index
    %c0_90 = arith.constant 0 : index
    %99 = vector.load %arg6[%c8_88, %c0_89, %c0_90] : memref<9x128x128xf32, #tpu.memory_space<vmem>>, vector<1x128x128xf32>
    %100 = vector.shape_cast %99 : vector<1x128x128xf32> to vector<128x128xf32>
    %cst_91 = arith.constant dense<0.000000e+00> : vector<16x128xf32>
    %101 = tpu.matmul %38, %100, %cst_91 {dimension_numbers = #tpu.dot_dimension_numbers<[1], [0], [0], [1], [0, 0, 1, 1], [], []>} : vector<16x128xf32>, vector<128x128xf32>, vector<16x128xf32> -> vector<16x128xf32>
    %cst_92 = arith.constant dense<0.000000e+00> : vector<8x128xf32>
    %102 = tpu.matmul %98, %101, %cst_92 {dimension_numbers = #tpu.dot_dimension_numbers<[1], [0], [0], [1], [0, 0, 1, 1], [], []>} : vector<8x16xf32>, vector<16x128xf32>, vector<8x128xf32> -> vector<8x128xf32>
    %103 = arith.addf %96, %102 : vector<8x128xf32>
    %cst_93 = arith.constant dense<0.000000e+00> : vector<8xf32>
    %104 = vector.multi_reduction <add>, %103, %cst_93 [1] : vector<8x128xf32> to vector<8xf32>
    %105 = vector.shape_cast %104 : vector<8xf32> to vector<8x1xf32>
    %cst_94 = arith.constant 7.812500e-03 : f32
    %106 = vector.broadcast %cst_94 : f32 to vector<8x1xf32>
    %107 = arith.mulf %105, %106 : vector<8x1xf32>
    %108 = vector.broadcast %107 : vector<8x1xf32> to vector<8x128xf32>
    %109 = arith.subf %103, %108 : vector<8x128xf32>
    %110 = arith.mulf %109, %109 : vector<8x128xf32>
    %cst_95 = arith.constant dense<0.000000e+00> : vector<8xf32>
    %111 = vector.multi_reduction <add>, %110, %cst_95 [1] : vector<8x128xf32> to vector<8xf32>
    %112 = vector.shape_cast %111 : vector<8xf32> to vector<8x1xf32>
    %cst_96 = arith.constant 7.812500e-03 : f32
    %113 = vector.broadcast %cst_96 : f32 to vector<8x1xf32>
    %114 = arith.mulf %112, %113 : vector<8x1xf32>
    %cst_97 = arith.constant 9.99999974E-6 : f32
    %115 = vector.broadcast %cst_97 : f32 to vector<8x1xf32>
    %116 = arith.addf %114, %115 : vector<8x1xf32>
    %117 = math.rsqrt %116 : vector<8x1xf32>
    %118 = vector.broadcast %117 : vector<8x1xf32> to vector<8x128xf32>
    %119 = arith.mulf %109, %118 : vector<8x128xf32>
    %cst_98 = arith.constant 0.000000e+00 : f32
    %120 = vector.broadcast %cst_98 : f32 to vector<8x128xf32>
    %121 = arith.maximumf %119, %120 : vector<8x128xf32>
    %c0_99 = arith.constant 0 : index
    %c0_100 = arith.constant 0 : index
    %c0_101 = arith.constant 0 : index
    %122 = vector.load %arg7[%c0_99, %c0_100, %c0_101] : memref<4x128x32xf32, #tpu.memory_space<vmem>>, vector<1x128x32xf32>
    %123 = vector.shape_cast %122 : vector<1x128x32xf32> to vector<128x32xf32>
    %cst_102 = arith.constant dense<0.000000e+00> : vector<8x32xf32>
    %124 = tpu.matmul %121, %123, %cst_102 {dimension_numbers = #tpu.dot_dimension_numbers<[1], [0], [0], [1], [0, 0, 1, 1], [], []>} : vector<8x128xf32>, vector<128x32xf32>, vector<8x32xf32> -> vector<8x32xf32>
    %c1_103 = arith.constant 1 : index
    %c0_104 = arith.constant 0 : index
    %c0_105 = arith.constant 0 : index
    %125 = vector.load %arg7[%c1_103, %c0_104, %c0_105] : memref<4x128x32xf32, #tpu.memory_space<vmem>>, vector<1x128x32xf32>
    %126 = vector.shape_cast %125 : vector<1x128x32xf32> to vector<128x32xf32>
    %cst_106 = arith.constant dense<0.000000e+00> : vector<8x32xf32>
    %127 = tpu.matmul %121, %126, %cst_106 {dimension_numbers = #tpu.dot_dimension_numbers<[1], [0], [0], [1], [0, 0, 1, 1], [], []>} : vector<8x128xf32>, vector<128x32xf32>, vector<8x32xf32> -> vector<8x32xf32>
    %c2_107 = arith.constant 2 : index
    %c0_108 = arith.constant 0 : index
    %c0_109 = arith.constant 0 : index
    %128 = vector.load %arg7[%c2_107, %c0_108, %c0_109] : memref<4x128x32xf32, #tpu.memory_space<vmem>>, vector<1x128x32xf32>
    %129 = vector.shape_cast %128 : vector<1x128x32xf32> to vector<128x32xf32>
    %cst_110 = arith.constant dense<0.000000e+00> : vector<8x32xf32>
    %130 = tpu.matmul %121, %129, %cst_110 {dimension_numbers = #tpu.dot_dimension_numbers<[1], [0], [0], [1], [0, 0, 1, 1], [], []>} : vector<8x128xf32>, vector<128x32xf32>, vector<8x32xf32> -> vector<8x32xf32>
    %c3_111 = arith.constant 3 : index
    %c0_112 = arith.constant 0 : index
    %c0_113 = arith.constant 0 : index
    %131 = vector.load %arg7[%c3_111, %c0_112, %c0_113] : memref<4x128x32xf32, #tpu.memory_space<vmem>>, vector<1x128x32xf32>
    %132 = vector.shape_cast %131 : vector<1x128x32xf32> to vector<128x32xf32>
    %cst_114 = arith.constant dense<0.000000e+00> : vector<8x32xf32>
    %133 = tpu.matmul %121, %132, %cst_114 {dimension_numbers = #tpu.dot_dimension_numbers<[1], [0], [0], [1], [0, 0, 1, 1], [], []>} : vector<8x128xf32>, vector<128x32xf32>, vector<8x32xf32> -> vector<8x32xf32>
    %134 = arith.maximumf %124, %127 : vector<8x32xf32>
    %135 = arith.maximumf %130, %133 : vector<8x32xf32>
    %136 = arith.maximumf %134, %135 : vector<8x32xf32>
    %c0_115 = arith.constant 0 : index
    %c0_116 = arith.constant 0 : index
    %137 = vector.load %arg9[%c0_115, %c0_116] : memref<8x1xf32, #tpu.memory_space<vmem>>, vector<8x1xf32>
    %c0_117 = arith.constant 0 : index
    %c0_118 = arith.constant 0 : index
    %c0_119 = arith.constant 0 : index
    %138 = vector.load %arg8[%c0_117, %c0_118, %c0_119] : memref<9x8x8xf32, #tpu.memory_space<vmem>>, vector<1x8x8xf32>
    %139 = vector.shape_cast %138 : vector<1x8x8xf32> to vector<8x8xf32>
    %c0_120 = arith.constant 0 : index
    %c0_121 = arith.constant 0 : index
    %c0_122 = arith.constant 0 : index
    %140 = vector.load %arg10[%c0_120, %c0_121, %c0_122] : memref<9x32x32xf32, #tpu.memory_space<vmem>>, vector<1x32x32xf32>
    %141 = vector.shape_cast %140 : vector<1x32x32xf32> to vector<32x32xf32>
    %cst_123 = arith.constant dense<0.000000e+00> : vector<8x32xf32>
    %142 = tpu.matmul %136, %141, %cst_123 {dimension_numbers = #tpu.dot_dimension_numbers<[1], [0], [0], [1], [0, 0, 1, 1], [], []>} : vector<8x32xf32>, vector<32x32xf32>, vector<8x32xf32> -> vector<8x32xf32>
    %cst_124 = arith.constant dense<0.000000e+00> : vector<8x32xf32>
    %143 = tpu.matmul %139, %142, %cst_124 {dimension_numbers = #tpu.dot_dimension_numbers<[1], [0], [0], [1], [0, 0, 1, 1], [], []>} : vector<8x8xf32>, vector<8x32xf32>, vector<8x32xf32> -> vector<8x32xf32>
    %144 = vector.broadcast %137 : vector<8x1xf32> to vector<8x32xf32>
    %145 = arith.addf %144, %143 : vector<8x32xf32>
    %c1_125 = arith.constant 1 : index
    %c0_126 = arith.constant 0 : index
    %c0_127 = arith.constant 0 : index
    %146 = vector.load %arg8[%c1_125, %c0_126, %c0_127] : memref<9x8x8xf32, #tpu.memory_space<vmem>>, vector<1x8x8xf32>
    %147 = vector.shape_cast %146 : vector<1x8x8xf32> to vector<8x8xf32>
    %c1_128 = arith.constant 1 : index
    %c0_129 = arith.constant 0 : index
    %c0_130 = arith.constant 0 : index
    %148 = vector.load %arg10[%c1_128, %c0_129, %c0_130] : memref<9x32x32xf32, #tpu.memory_space<vmem>>, vector<1x32x32xf32>
    %149 = vector.shape_cast %148 : vector<1x32x32xf32> to vector<32x32xf32>
    %cst_131 = arith.constant dense<0.000000e+00> : vector<8x32xf32>
    %150 = tpu.matmul %136, %149, %cst_131 {dimension_numbers = #tpu.dot_dimension_numbers<[1], [0], [0], [1], [0, 0, 1, 1], [], []>} : vector<8x32xf32>, vector<32x32xf32>, vector<8x32xf32> -> vector<8x32xf32>
    %cst_132 = arith.constant dense<0.000000e+00> : vector<8x32xf32>
    %151 = tpu.matmul %147, %150, %cst_132 {dimension_numbers = #tpu.dot_dimension_numbers<[1], [0], [0], [1], [0, 0, 1, 1], [], []>} : vector<8x8xf32>, vector<8x32xf32>, vector<8x32xf32> -> vector<8x32xf32>
    %152 = arith.addf %145, %151 : vector<8x32xf32>
    %c2_133 = arith.constant 2 : index
    %c0_134 = arith.constant 0 : index
    %c0_135 = arith.constant 0 : index
    %153 = vector.load %arg8[%c2_133, %c0_134, %c0_135] : memref<9x8x8xf32, #tpu.memory_space<vmem>>, vector<1x8x8xf32>
    %154 = vector.shape_cast %153 : vector<1x8x8xf32> to vector<8x8xf32>
    %c2_136 = arith.constant 2 : index
    %c0_137 = arith.constant 0 : index
    %c0_138 = arith.constant 0 : index
    %155 = vector.load %arg10[%c2_136, %c0_137, %c0_138] : memref<9x32x32xf32, #tpu.memory_space<vmem>>, vector<1x32x32xf32>
    %156 = vector.shape_cast %155 : vector<1x32x32xf32> to vector<32x32xf32>
    %cst_139 = arith.constant dense<0.000000e+00> : vector<8x32xf32>
    %157 = tpu.matmul %136, %156, %cst_139 {dimension_numbers = #tpu.dot_dimension_numbers<[1], [0], [0], [1], [0, 0, 1, 1], [], []>} : vector<8x32xf32>, vector<32x32xf32>, vector<8x32xf32> -> vector<8x32xf32>
    %cst_140 = arith.constant dense<0.000000e+00> : vector<8x32xf32>
    %158 = tpu.matmul %154, %157, %cst_140 {dimension_numbers = #tpu.dot_dimension_numbers<[1], [0], [0], [1], [0, 0, 1, 1], [], []>} : vector<8x8xf32>, vector<8x32xf32>, vector<8x32xf32> -> vector<8x32xf32>
    %159 = arith.addf %152, %158 : vector<8x32xf32>
    %c3_141 = arith.constant 3 : index
    %c0_142 = arith.constant 0 : index
    %c0_143 = arith.constant 0 : index
    %160 = vector.load %arg8[%c3_141, %c0_142, %c0_143] : memref<9x8x8xf32, #tpu.memory_space<vmem>>, vector<1x8x8xf32>
    %161 = vector.shape_cast %160 : vector<1x8x8xf32> to vector<8x8xf32>
    %c3_144 = arith.constant 3 : index
    %c0_145 = arith.constant 0 : index
    %c0_146 = arith.constant 0 : index
    %162 = vector.load %arg10[%c3_144, %c0_145, %c0_146] : memref<9x32x32xf32, #tpu.memory_space<vmem>>, vector<1x32x32xf32>
    %163 = vector.shape_cast %162 : vector<1x32x32xf32> to vector<32x32xf32>
    %cst_147 = arith.constant dense<0.000000e+00> : vector<8x32xf32>
    %164 = tpu.matmul %136, %163, %cst_147 {dimension_numbers = #tpu.dot_dimension_numbers<[1], [0], [0], [1], [0, 0, 1, 1], [], []>} : vector<8x32xf32>, vector<32x32xf32>, vector<8x32xf32> -> vector<8x32xf32>
    %cst_148 = arith.constant dense<0.000000e+00> : vector<8x32xf32>
    %165 = tpu.matmul %161, %164, %cst_148 {dimension_numbers = #tpu.dot_dimension_numbers<[1], [0], [0], [1], [0, 0, 1, 1], [], []>} : vector<8x8xf32>, vector<8x32xf32>, vector<8x32xf32> -> vector<8x32xf32>
    %166 = arith.addf %159, %165 : vector<8x32xf32>
    %c4_149 = arith.constant 4 : index
    %c0_150 = arith.constant 0 : index
    %c0_151 = arith.constant 0 : index
    %167 = vector.load %arg8[%c4_149, %c0_150, %c0_151] : memref<9x8x8xf32, #tpu.memory_space<vmem>>, vector<1x8x8xf32>
    %168 = vector.shape_cast %167 : vector<1x8x8xf32> to vector<8x8xf32>
    %c4_152 = arith.constant 4 : index
    %c0_153 = arith.constant 0 : index
    %c0_154 = arith.constant 0 : index
    %169 = vector.load %arg10[%c4_152, %c0_153, %c0_154] : memref<9x32x32xf32, #tpu.memory_space<vmem>>, vector<1x32x32xf32>
    %170 = vector.shape_cast %169 : vector<1x32x32xf32> to vector<32x32xf32>
    %cst_155 = arith.constant dense<0.000000e+00> : vector<8x32xf32>
    %171 = tpu.matmul %136, %170, %cst_155 {dimension_numbers = #tpu.dot_dimension_numbers<[1], [0], [0], [1], [0, 0, 1, 1], [], []>} : vector<8x32xf32>, vector<32x32xf32>, vector<8x32xf32> -> vector<8x32xf32>
    %cst_156 = arith.constant dense<0.000000e+00> : vector<8x32xf32>
    %172 = tpu.matmul %168, %171, %cst_156 {dimension_numbers = #tpu.dot_dimension_numbers<[1], [0], [0], [1], [0, 0, 1, 1], [], []>} : vector<8x8xf32>, vector<8x32xf32>, vector<8x32xf32> -> vector<8x32xf32>
    %173 = arith.addf %166, %172 : vector<8x32xf32>
    %c5_157 = arith.constant 5 : index
    %c0_158 = arith.constant 0 : index
    %c0_159 = arith.constant 0 : index
    %174 = vector.load %arg8[%c5_157, %c0_158, %c0_159] : memref<9x8x8xf32, #tpu.memory_space<vmem>>, vector<1x8x8xf32>
    %175 = vector.shape_cast %174 : vector<1x8x8xf32> to vector<8x8xf32>
    %c5_160 = arith.constant 5 : index
    %c0_161 = arith.constant 0 : index
    %c0_162 = arith.constant 0 : index
    %176 = vector.load %arg10[%c5_160, %c0_161, %c0_162] : memref<9x32x32xf32, #tpu.memory_space<vmem>>, vector<1x32x32xf32>
    %177 = vector.shape_cast %176 : vector<1x32x32xf32> to vector<32x32xf32>
    %cst_163 = arith.constant dense<0.000000e+00> : vector<8x32xf32>
    %178 = tpu.matmul %136, %177, %cst_163 {dimension_numbers = #tpu.dot_dimension_numbers<[1], [0], [0], [1], [0, 0, 1, 1], [], []>} : vector<8x32xf32>, vector<32x32xf32>, vector<8x32xf32> -> vector<8x32xf32>
    %cst_164 = arith.constant dense<0.000000e+00> : vector<8x32xf32>
    %179 = tpu.matmul %175, %178, %cst_164 {dimension_numbers = #tpu.dot_dimension_numbers<[1], [0], [0], [1], [0, 0, 1, 1], [], []>} : vector<8x8xf32>, vector<8x32xf32>, vector<8x32xf32> -> vector<8x32xf32>
    %180 = arith.addf %173, %179 : vector<8x32xf32>
    %c6_165 = arith.constant 6 : index
    %c0_166 = arith.constant 0 : index
    %c0_167 = arith.constant 0 : index
    %181 = vector.load %arg8[%c6_165, %c0_166, %c0_167] : memref<9x8x8xf32, #tpu.memory_space<vmem>>, vector<1x8x8xf32>
    %182 = vector.shape_cast %181 : vector<1x8x8xf32> to vector<8x8xf32>
    %c6_168 = arith.constant 6 : index
    %c0_169 = arith.constant 0 : index
    %c0_170 = arith.constant 0 : index
    %183 = vector.load %arg10[%c6_168, %c0_169, %c0_170] : memref<9x32x32xf32, #tpu.memory_space<vmem>>, vector<1x32x32xf32>
    %184 = vector.shape_cast %183 : vector<1x32x32xf32> to vector<32x32xf32>
    %cst_171 = arith.constant dense<0.000000e+00> : vector<8x32xf32>
    %185 = tpu.matmul %136, %184, %cst_171 {dimension_numbers = #tpu.dot_dimension_numbers<[1], [0], [0], [1], [0, 0, 1, 1], [], []>} : vector<8x32xf32>, vector<32x32xf32>, vector<8x32xf32> -> vector<8x32xf32>
    %cst_172 = arith.constant dense<0.000000e+00> : vector<8x32xf32>
    %186 = tpu.matmul %182, %185, %cst_172 {dimension_numbers = #tpu.dot_dimension_numbers<[1], [0], [0], [1], [0, 0, 1, 1], [], []>} : vector<8x8xf32>, vector<8x32xf32>, vector<8x32xf32> -> vector<8x32xf32>
    %187 = arith.addf %180, %186 : vector<8x32xf32>
    %c7_173 = arith.constant 7 : index
    %c0_174 = arith.constant 0 : index
    %c0_175 = arith.constant 0 : index
    %188 = vector.load %arg8[%c7_173, %c0_174, %c0_175] : memref<9x8x8xf32, #tpu.memory_space<vmem>>, vector<1x8x8xf32>
    %189 = vector.shape_cast %188 : vector<1x8x8xf32> to vector<8x8xf32>
    %c7_176 = arith.constant 7 : index
    %c0_177 = arith.constant 0 : index
    %c0_178 = arith.constant 0 : index
    %190 = vector.load %arg10[%c7_176, %c0_177, %c0_178] : memref<9x32x32xf32, #tpu.memory_space<vmem>>, vector<1x32x32xf32>
    %191 = vector.shape_cast %190 : vector<1x32x32xf32> to vector<32x32xf32>
    %cst_179 = arith.constant dense<0.000000e+00> : vector<8x32xf32>
    %192 = tpu.matmul %136, %191, %cst_179 {dimension_numbers = #tpu.dot_dimension_numbers<[1], [0], [0], [1], [0, 0, 1, 1], [], []>} : vector<8x32xf32>, vector<32x32xf32>, vector<8x32xf32> -> vector<8x32xf32>
    %cst_180 = arith.constant dense<0.000000e+00> : vector<8x32xf32>
    %193 = tpu.matmul %189, %192, %cst_180 {dimension_numbers = #tpu.dot_dimension_numbers<[1], [0], [0], [1], [0, 0, 1, 1], [], []>} : vector<8x8xf32>, vector<8x32xf32>, vector<8x32xf32> -> vector<8x32xf32>
    %194 = arith.addf %187, %193 : vector<8x32xf32>
    %c8_181 = arith.constant 8 : index
    %c0_182 = arith.constant 0 : index
    %c0_183 = arith.constant 0 : index
    %195 = vector.load %arg8[%c8_181, %c0_182, %c0_183] : memref<9x8x8xf32, #tpu.memory_space<vmem>>, vector<1x8x8xf32>
    %196 = vector.shape_cast %195 : vector<1x8x8xf32> to vector<8x8xf32>
    %c8_184 = arith.constant 8 : index
    %c0_185 = arith.constant 0 : index
    %c0_186 = arith.constant 0 : index
    %197 = vector.load %arg10[%c8_184, %c0_185, %c0_186] : memref<9x32x32xf32, #tpu.memory_space<vmem>>, vector<1x32x32xf32>
    %198 = vector.shape_cast %197 : vector<1x32x32xf32> to vector<32x32xf32>
    %cst_187 = arith.constant dense<0.000000e+00> : vector<8x32xf32>
    %199 = tpu.matmul %136, %198, %cst_187 {dimension_numbers = #tpu.dot_dimension_numbers<[1], [0], [0], [1], [0, 0, 1, 1], [], []>} : vector<8x32xf32>, vector<32x32xf32>, vector<8x32xf32> -> vector<8x32xf32>
    %cst_188 = arith.constant dense<0.000000e+00> : vector<8x32xf32>
    %200 = tpu.matmul %196, %199, %cst_188 {dimension_numbers = #tpu.dot_dimension_numbers<[1], [0], [0], [1], [0, 0, 1, 1], [], []>} : vector<8x8xf32>, vector<8x32xf32>, vector<8x32xf32> -> vector<8x32xf32>
    %201 = arith.addf %194, %200 : vector<8x32xf32>
    %cst_189 = arith.constant dense<0.000000e+00> : vector<8xf32>
    %202 = vector.multi_reduction <add>, %201, %cst_189 [1] : vector<8x32xf32> to vector<8xf32>
    %203 = vector.shape_cast %202 : vector<8xf32> to vector<8x1xf32>
    %cst_190 = arith.constant 3.125000e-02 : f32
    %204 = vector.broadcast %cst_190 : f32 to vector<8x1xf32>
    %205 = arith.mulf %203, %204 : vector<8x1xf32>
    %206 = vector.broadcast %205 : vector<8x1xf32> to vector<8x32xf32>
    %207 = arith.subf %201, %206 : vector<8x32xf32>
    %208 = arith.mulf %207, %207 : vector<8x32xf32>
    %cst_191 = arith.constant dense<0.000000e+00> : vector<8xf32>
    %209 = vector.multi_reduction <add>, %208, %cst_191 [1] : vector<8x32xf32> to vector<8xf32>
    %210 = vector.shape_cast %209 : vector<8xf32> to vector<8x1xf32>
    %cst_192 = arith.constant 3.125000e-02 : f32
    %211 = vector.broadcast %cst_192 : f32 to vector<8x1xf32>
    %212 = arith.mulf %210, %211 : vector<8x1xf32>
    %cst_193 = arith.constant 9.99999974E-6 : f32
    %213 = vector.broadcast %cst_193 : f32 to vector<8x1xf32>
    %214 = arith.addf %212, %213 : vector<8x1xf32>
    %215 = math.rsqrt %214 : vector<8x1xf32>
    %216 = vector.broadcast %215 : vector<8x1xf32> to vector<8x32xf32>
    %217 = arith.mulf %207, %216 : vector<8x32xf32>
    %cst_194 = arith.constant 0.000000e+00 : f32
    %218 = vector.broadcast %cst_194 : f32 to vector<8x32xf32>
    %219 = arith.maximumf %217, %218 : vector<8x32xf32>
    %c0_195 = arith.constant 0 : index
    %c0_196 = arith.constant 0 : index
    %c0_197 = arith.constant 0 : index
    %220 = vector.load %arg11[%c0_195, %c0_196, %c0_197] : memref<4x32x8xf32, #tpu.memory_space<vmem>>, vector<1x32x8xf32>
    %221 = vector.shape_cast %220 : vector<1x32x8xf32> to vector<32x8xf32>
    %cst_198 = arith.constant dense<0.000000e+00> : vector<8x8xf32>
    %222 = tpu.matmul %219, %221, %cst_198 {dimension_numbers = #tpu.dot_dimension_numbers<[1], [0], [0], [1], [0, 0, 1, 1], [], []>} : vector<8x32xf32>, vector<32x8xf32>, vector<8x8xf32> -> vector<8x8xf32>
    %c1_199 = arith.constant 1 : index
    %c0_200 = arith.constant 0 : index
    %c0_201 = arith.constant 0 : index
    %223 = vector.load %arg11[%c1_199, %c0_200, %c0_201] : memref<4x32x8xf32, #tpu.memory_space<vmem>>, vector<1x32x8xf32>
    %224 = vector.shape_cast %223 : vector<1x32x8xf32> to vector<32x8xf32>
    %cst_202 = arith.constant dense<0.000000e+00> : vector<8x8xf32>
    %225 = tpu.matmul %219, %224, %cst_202 {dimension_numbers = #tpu.dot_dimension_numbers<[1], [0], [0], [1], [0, 0, 1, 1], [], []>} : vector<8x32xf32>, vector<32x8xf32>, vector<8x8xf32> -> vector<8x8xf32>
    %c2_203 = arith.constant 2 : index
    %c0_204 = arith.constant 0 : index
    %c0_205 = arith.constant 0 : index
    %226 = vector.load %arg11[%c2_203, %c0_204, %c0_205] : memref<4x32x8xf32, #tpu.memory_space<vmem>>, vector<1x32x8xf32>
    %227 = vector.shape_cast %226 : vector<1x32x8xf32> to vector<32x8xf32>
    %cst_206 = arith.constant dense<0.000000e+00> : vector<8x8xf32>
    %228 = tpu.matmul %219, %227, %cst_206 {dimension_numbers = #tpu.dot_dimension_numbers<[1], [0], [0], [1], [0, 0, 1, 1], [], []>} : vector<8x32xf32>, vector<32x8xf32>, vector<8x8xf32> -> vector<8x8xf32>
    %c3_207 = arith.constant 3 : index
    %c0_208 = arith.constant 0 : index
    %c0_209 = arith.constant 0 : index
    %229 = vector.load %arg11[%c3_207, %c0_208, %c0_209] : memref<4x32x8xf32, #tpu.memory_space<vmem>>, vector<1x32x8xf32>
    %230 = vector.shape_cast %229 : vector<1x32x8xf32> to vector<32x8xf32>
    %cst_210 = arith.constant dense<0.000000e+00> : vector<8x8xf32>
    %231 = tpu.matmul %219, %230, %cst_210 {dimension_numbers = #tpu.dot_dimension_numbers<[1], [0], [0], [1], [0, 0, 1, 1], [], []>} : vector<8x32xf32>, vector<32x8xf32>, vector<8x8xf32> -> vector<8x8xf32>
    %232 = arith.maximumf %222, %225 : vector<8x8xf32>
    %233 = arith.maximumf %228, %231 : vector<8x8xf32>
    %234 = arith.maximumf %232, %233 : vector<8x8xf32>
    %c0_211 = arith.constant 0 : index
    %c0_212 = arith.constant 0 : index
    %c0_213 = arith.constant 0 : index
    %235 = vector.load %arg12[%c0_211, %c0_212, %c0_213] : memref<4x8x8xf32, #tpu.memory_space<vmem>>, vector<1x8x8xf32>
    %236 = vector.shape_cast %235 : vector<1x8x8xf32> to vector<8x8xf32>
    %cst_214 = arith.constant dense<0.000000e+00> : vector<8x8xf32>
    %237 = tpu.matmul %236, %234, %cst_214 {dimension_numbers = #tpu.dot_dimension_numbers<[1], [0], [0], [1], [0, 0, 1, 1], [], []>} : vector<8x8xf32>, vector<8x8xf32>, vector<8x8xf32> -> vector<8x8xf32>
    %c0_215 = arith.constant 0 : index
    %c0_216 = arith.constant 0 : index
    %238 = vector.load %arg13[%c0_215, %c0_216] : memref<8x1xf32, #tpu.memory_space<vmem>>, vector<8x1xf32>
    %239 = vector.broadcast %238 : vector<8x1xf32> to vector<8x8xf32>
    %240 = arith.addf %237, %239 : vector<8x8xf32>
    %c1_217 = arith.constant 1 : index
    %c0_218 = arith.constant 0 : index
    %c0_219 = arith.constant 0 : index
    %241 = vector.load %arg12[%c1_217, %c0_218, %c0_219] : memref<4x8x8xf32, #tpu.memory_space<vmem>>, vector<1x8x8xf32>
    %242 = vector.shape_cast %241 : vector<1x8x8xf32> to vector<8x8xf32>
    %cst_220 = arith.constant dense<0.000000e+00> : vector<8x8xf32>
    %243 = tpu.matmul %242, %234, %cst_220 {dimension_numbers = #tpu.dot_dimension_numbers<[1], [0], [0], [1], [0, 0, 1, 1], [], []>} : vector<8x8xf32>, vector<8x8xf32>, vector<8x8xf32> -> vector<8x8xf32>
    %c0_221 = arith.constant 0 : index
    %c0_222 = arith.constant 0 : index
    %244 = vector.load %arg13[%c0_221, %c0_222] : memref<8x1xf32, #tpu.memory_space<vmem>>, vector<8x1xf32>
    %245 = vector.broadcast %244 : vector<8x1xf32> to vector<8x8xf32>
    %246 = arith.addf %243, %245 : vector<8x8xf32>
    %c2_223 = arith.constant 2 : index
    %c0_224 = arith.constant 0 : index
    %c0_225 = arith.constant 0 : index
    %247 = vector.load %arg12[%c2_223, %c0_224, %c0_225] : memref<4x8x8xf32, #tpu.memory_space<vmem>>, vector<1x8x8xf32>
    %248 = vector.shape_cast %247 : vector<1x8x8xf32> to vector<8x8xf32>
    %cst_226 = arith.constant dense<0.000000e+00> : vector<8x8xf32>
    %249 = tpu.matmul %248, %234, %cst_226 {dimension_numbers = #tpu.dot_dimension_numbers<[1], [0], [0], [1], [0, 0, 1, 1], [], []>} : vector<8x8xf32>, vector<8x8xf32>, vector<8x8xf32> -> vector<8x8xf32>
    %c0_227 = arith.constant 0 : index
    %c0_228 = arith.constant 0 : index
    %250 = vector.load %arg13[%c0_227, %c0_228] : memref<8x1xf32, #tpu.memory_space<vmem>>, vector<8x1xf32>
    %251 = vector.broadcast %250 : vector<8x1xf32> to vector<8x8xf32>
    %252 = arith.addf %249, %251 : vector<8x8xf32>
    %c3_229 = arith.constant 3 : index
    %c0_230 = arith.constant 0 : index
    %c0_231 = arith.constant 0 : index
    %253 = vector.load %arg12[%c3_229, %c0_230, %c0_231] : memref<4x8x8xf32, #tpu.memory_space<vmem>>, vector<1x8x8xf32>
    %254 = vector.shape_cast %253 : vector<1x8x8xf32> to vector<8x8xf32>
    %cst_232 = arith.constant dense<0.000000e+00> : vector<8x8xf32>
    %255 = tpu.matmul %254, %234, %cst_232 {dimension_numbers = #tpu.dot_dimension_numbers<[1], [0], [0], [1], [0, 0, 1, 1], [], []>} : vector<8x8xf32>, vector<8x8xf32>, vector<8x8xf32> -> vector<8x8xf32>
    %c0_233 = arith.constant 0 : index
    %c0_234 = arith.constant 0 : index
    %256 = vector.load %arg13[%c0_233, %c0_234] : memref<8x1xf32, #tpu.memory_space<vmem>>, vector<8x1xf32>
    %257 = vector.broadcast %256 : vector<8x1xf32> to vector<8x8xf32>
    %258 = arith.addf %255, %257 : vector<8x8xf32>
    %cst_235 = arith.constant dense<0.000000e+00> : vector<8xf32>
    %259 = vector.multi_reduction <add>, %240, %cst_235 [1] : vector<8x8xf32> to vector<8xf32>
    %260 = vector.shape_cast %259 : vector<8xf32> to vector<8x1xf32>
    %cst_236 = arith.constant dense<0.000000e+00> : vector<8xf32>
    %261 = vector.multi_reduction <add>, %246, %cst_236 [1] : vector<8x8xf32> to vector<8xf32>
    %262 = vector.shape_cast %261 : vector<8xf32> to vector<8x1xf32>
    %263 = arith.addf %260, %262 : vector<8x1xf32>
    %cst_237 = arith.constant dense<0.000000e+00> : vector<8xf32>
    %264 = vector.multi_reduction <add>, %252, %cst_237 [1] : vector<8x8xf32> to vector<8xf32>
    %265 = vector.shape_cast %264 : vector<8xf32> to vector<8x1xf32>
    %266 = arith.addf %263, %265 : vector<8x1xf32>
    %cst_238 = arith.constant dense<0.000000e+00> : vector<8xf32>
    %267 = vector.multi_reduction <add>, %258, %cst_238 [1] : vector<8x8xf32> to vector<8xf32>
    %268 = vector.shape_cast %267 : vector<8xf32> to vector<8x1xf32>
    %269 = arith.addf %266, %268 : vector<8x1xf32>
    %cst_239 = arith.constant 3.125000e-02 : f32
    %270 = vector.broadcast %cst_239 : f32 to vector<8x1xf32>
    %271 = arith.mulf %269, %270 : vector<8x1xf32>
    %272 = vector.broadcast %271 : vector<8x1xf32> to vector<8x8xf32>
    %273 = arith.subf %240, %272 : vector<8x8xf32>
    %274 = vector.broadcast %271 : vector<8x1xf32> to vector<8x8xf32>
    %275 = arith.subf %246, %274 : vector<8x8xf32>
    %276 = vector.broadcast %271 : vector<8x1xf32> to vector<8x8xf32>
    %277 = arith.subf %252, %276 : vector<8x8xf32>
    %278 = vector.broadcast %271 : vector<8x1xf32> to vector<8x8xf32>
    %279 = arith.subf %258, %278 : vector<8x8xf32>
    %280 = arith.mulf %273, %273 : vector<8x8xf32>
    %cst_240 = arith.constant dense<0.000000e+00> : vector<8xf32>
    %281 = vector.multi_reduction <add>, %280, %cst_240 [1] : vector<8x8xf32> to vector<8xf32>
    %282 = vector.shape_cast %281 : vector<8xf32> to vector<8x1xf32>
    %283 = arith.mulf %275, %275 : vector<8x8xf32>
    %cst_241 = arith.constant dense<0.000000e+00> : vector<8xf32>
    %284 = vector.multi_reduction <add>, %283, %cst_241 [1] : vector<8x8xf32> to vector<8xf32>
    %285 = vector.shape_cast %284 : vector<8xf32> to vector<8x1xf32>
    %286 = arith.addf %282, %285 : vector<8x1xf32>
    %287 = arith.mulf %277, %277 : vector<8x8xf32>
    %cst_242 = arith.constant dense<0.000000e+00> : vector<8xf32>
    %288 = vector.multi_reduction <add>, %287, %cst_242 [1] : vector<8x8xf32> to vector<8xf32>
    %289 = vector.shape_cast %288 : vector<8xf32> to vector<8x1xf32>
    %290 = arith.addf %286, %289 : vector<8x1xf32>
    %291 = arith.mulf %279, %279 : vector<8x8xf32>
    %cst_243 = arith.constant dense<0.000000e+00> : vector<8xf32>
    %292 = vector.multi_reduction <add>, %291, %cst_243 [1] : vector<8x8xf32> to vector<8xf32>
    %293 = vector.shape_cast %292 : vector<8xf32> to vector<8x1xf32>
    %294 = arith.addf %290, %293 : vector<8x1xf32>
    %cst_244 = arith.constant 3.125000e-02 : f32
    %295 = vector.broadcast %cst_244 : f32 to vector<8x1xf32>
    %296 = arith.mulf %294, %295 : vector<8x1xf32>
    %cst_245 = arith.constant 9.99999974E-6 : f32
    %297 = vector.broadcast %cst_245 : f32 to vector<8x1xf32>
    %298 = arith.addf %296, %297 : vector<8x1xf32>
    %299 = math.rsqrt %298 : vector<8x1xf32>
    %300 = vector.broadcast %299 : vector<8x1xf32> to vector<8x8xf32>
    %301 = arith.mulf %273, %300 : vector<8x8xf32>
    %cst_246 = arith.constant 0.000000e+00 : f32
    %302 = vector.broadcast %cst_246 : f32 to vector<8x8xf32>
    %303 = arith.maximumf %301, %302 : vector<8x8xf32>
    %c0_247 = arith.constant 0 : index
    %c0_248 = arith.constant 0 : index
    %c0_249 = arith.constant 0 : index
    %304 = vector.load %arg14[%c0_247, %c0_248, %c0_249] : memref<4x8x32xf32, #tpu.memory_space<vmem>>, vector<1x8x32xf32>
    %305 = vector.shape_cast %304 : vector<1x8x32xf32> to vector<8x32xf32>
    %cst_250 = arith.constant dense<0.000000e+00> : vector<8x32xf32>
    %306 = tpu.matmul %303, %305, %cst_250 {dimension_numbers = #tpu.dot_dimension_numbers<[1], [0], [0], [1], [0, 0, 1, 1], [], []>} : vector<8x8xf32>, vector<8x32xf32>, vector<8x32xf32> -> vector<8x32xf32>
    %307 = vector.broadcast %299 : vector<8x1xf32> to vector<8x8xf32>
    %308 = arith.mulf %275, %307 : vector<8x8xf32>
    %cst_251 = arith.constant 0.000000e+00 : f32
    %309 = vector.broadcast %cst_251 : f32 to vector<8x8xf32>
    %310 = arith.maximumf %308, %309 : vector<8x8xf32>
    %c1_252 = arith.constant 1 : index
    %c0_253 = arith.constant 0 : index
    %c0_254 = arith.constant 0 : index
    %311 = vector.load %arg14[%c1_252, %c0_253, %c0_254] : memref<4x8x32xf32, #tpu.memory_space<vmem>>, vector<1x8x32xf32>
    %312 = vector.shape_cast %311 : vector<1x8x32xf32> to vector<8x32xf32>
    %cst_255 = arith.constant dense<0.000000e+00> : vector<8x32xf32>
    %313 = tpu.matmul %310, %312, %cst_255 {dimension_numbers = #tpu.dot_dimension_numbers<[1], [0], [0], [1], [0, 0, 1, 1], [], []>} : vector<8x8xf32>, vector<8x32xf32>, vector<8x32xf32> -> vector<8x32xf32>
    %314 = arith.addf %306, %313 : vector<8x32xf32>
    %315 = vector.broadcast %299 : vector<8x1xf32> to vector<8x8xf32>
    %316 = arith.mulf %277, %315 : vector<8x8xf32>
    %cst_256 = arith.constant 0.000000e+00 : f32
    %317 = vector.broadcast %cst_256 : f32 to vector<8x8xf32>
    %318 = arith.maximumf %316, %317 : vector<8x8xf32>
    %c2_257 = arith.constant 2 : index
    %c0_258 = arith.constant 0 : index
    %c0_259 = arith.constant 0 : index
    %319 = vector.load %arg14[%c2_257, %c0_258, %c0_259] : memref<4x8x32xf32, #tpu.memory_space<vmem>>, vector<1x8x32xf32>
    %320 = vector.shape_cast %319 : vector<1x8x32xf32> to vector<8x32xf32>
    %cst_260 = arith.constant dense<0.000000e+00> : vector<8x32xf32>
    %321 = tpu.matmul %318, %320, %cst_260 {dimension_numbers = #tpu.dot_dimension_numbers<[1], [0], [0], [1], [0, 0, 1, 1], [], []>} : vector<8x8xf32>, vector<8x32xf32>, vector<8x32xf32> -> vector<8x32xf32>
    %322 = arith.addf %314, %321 : vector<8x32xf32>
    %323 = vector.broadcast %299 : vector<8x1xf32> to vector<8x8xf32>
    %324 = arith.mulf %279, %323 : vector<8x8xf32>
    %cst_261 = arith.constant 0.000000e+00 : f32
    %325 = vector.broadcast %cst_261 : f32 to vector<8x8xf32>
    %326 = arith.maximumf %324, %325 : vector<8x8xf32>
    %c3_262 = arith.constant 3 : index
    %c0_263 = arith.constant 0 : index
    %c0_264 = arith.constant 0 : index
    %327 = vector.load %arg14[%c3_262, %c0_263, %c0_264] : memref<4x8x32xf32, #tpu.memory_space<vmem>>, vector<1x8x32xf32>
    %328 = vector.shape_cast %327 : vector<1x8x32xf32> to vector<8x32xf32>
    %cst_265 = arith.constant dense<0.000000e+00> : vector<8x32xf32>
    %329 = tpu.matmul %326, %328, %cst_265 {dimension_numbers = #tpu.dot_dimension_numbers<[1], [0], [0], [1], [0, 0, 1, 1], [], []>} : vector<8x8xf32>, vector<8x32xf32>, vector<8x32xf32> -> vector<8x32xf32>
    %330 = arith.addf %322, %329 : vector<8x32xf32>
    %c0_266 = arith.constant 0 : index
    %c0_267 = arith.constant 0 : index
    %c0_268 = arith.constant 0 : index
    %331 = vector.load %arg15[%c0_266, %c0_267, %c0_268] : memref<4x16x8xf32, #tpu.memory_space<vmem>>, vector<1x16x8xf32>
    %332 = vector.shape_cast %331 : vector<1x16x8xf32> to vector<16x8xf32>
    %cst_269 = arith.constant dense<0.000000e+00> : vector<16x32xf32>
    %333 = tpu.matmul %332, %330, %cst_269 {dimension_numbers = #tpu.dot_dimension_numbers<[1], [0], [0], [1], [0, 0, 1, 1], [], []>} : vector<16x8xf32>, vector<8x32xf32>, vector<16x32xf32> -> vector<16x32xf32>
    %c0_270 = arith.constant 0 : index
    %c0_271 = arith.constant 0 : index
    %334 = vector.load %arg16[%c0_270, %c0_271] : memref<16x1xf32, #tpu.memory_space<vmem>>, vector<16x1xf32>
    %335 = vector.broadcast %334 : vector<16x1xf32> to vector<16x32xf32>
    %336 = arith.addf %333, %335 : vector<16x32xf32>
    %c1_272 = arith.constant 1 : index
    %c0_273 = arith.constant 0 : index
    %c0_274 = arith.constant 0 : index
    %337 = vector.load %arg15[%c1_272, %c0_273, %c0_274] : memref<4x16x8xf32, #tpu.memory_space<vmem>>, vector<1x16x8xf32>
    %338 = vector.shape_cast %337 : vector<1x16x8xf32> to vector<16x8xf32>
    %cst_275 = arith.constant dense<0.000000e+00> : vector<16x32xf32>
    %339 = tpu.matmul %338, %330, %cst_275 {dimension_numbers = #tpu.dot_dimension_numbers<[1], [0], [0], [1], [0, 0, 1, 1], [], []>} : vector<16x8xf32>, vector<8x32xf32>, vector<16x32xf32> -> vector<16x32xf32>
    %c0_276 = arith.constant 0 : index
    %c0_277 = arith.constant 0 : index
    %340 = vector.load %arg16[%c0_276, %c0_277] : memref<16x1xf32, #tpu.memory_space<vmem>>, vector<16x1xf32>
    %341 = vector.broadcast %340 : vector<16x1xf32> to vector<16x32xf32>
    %342 = arith.addf %339, %341 : vector<16x32xf32>
    %c2_278 = arith.constant 2 : index
    %c0_279 = arith.constant 0 : index
    %c0_280 = arith.constant 0 : index
    %343 = vector.load %arg15[%c2_278, %c0_279, %c0_280] : memref<4x16x8xf32, #tpu.memory_space<vmem>>, vector<1x16x8xf32>
    %344 = vector.shape_cast %343 : vector<1x16x8xf32> to vector<16x8xf32>
    %cst_281 = arith.constant dense<0.000000e+00> : vector<16x32xf32>
    %345 = tpu.matmul %344, %330, %cst_281 {dimension_numbers = #tpu.dot_dimension_numbers<[1], [0], [0], [1], [0, 0, 1, 1], [], []>} : vector<16x8xf32>, vector<8x32xf32>, vector<16x32xf32> -> vector<16x32xf32>
    %c0_282 = arith.constant 0 : index
    %c0_283 = arith.constant 0 : index
    %346 = vector.load %arg16[%c0_282, %c0_283] : memref<16x1xf32, #tpu.memory_space<vmem>>, vector<16x1xf32>
    %347 = vector.broadcast %346 : vector<16x1xf32> to vector<16x32xf32>
    %348 = arith.addf %345, %347 : vector<16x32xf32>
    %c3_284 = arith.constant 3 : index
    %c0_285 = arith.constant 0 : index
    %c0_286 = arith.constant 0 : index
    %349 = vector.load %arg15[%c3_284, %c0_285, %c0_286] : memref<4x16x8xf32, #tpu.memory_space<vmem>>, vector<1x16x8xf32>
    %350 = vector.shape_cast %349 : vector<1x16x8xf32> to vector<16x8xf32>
    %cst_287 = arith.constant dense<0.000000e+00> : vector<16x32xf32>
    %351 = tpu.matmul %350, %330, %cst_287 {dimension_numbers = #tpu.dot_dimension_numbers<[1], [0], [0], [1], [0, 0, 1, 1], [], []>} : vector<16x8xf32>, vector<8x32xf32>, vector<16x32xf32> -> vector<16x32xf32>
    %c0_288 = arith.constant 0 : index
    %c0_289 = arith.constant 0 : index
    %352 = vector.load %arg16[%c0_288, %c0_289] : memref<16x1xf32, #tpu.memory_space<vmem>>, vector<16x1xf32>
    %353 = vector.broadcast %352 : vector<16x1xf32> to vector<16x32xf32>
    %354 = arith.addf %351, %353 : vector<16x32xf32>
    %cst_290 = arith.constant dense<0.000000e+00> : vector<16xf32>
    %355 = vector.multi_reduction <add>, %336, %cst_290 [1] : vector<16x32xf32> to vector<16xf32>
    %356 = vector.shape_cast %355 : vector<16xf32> to vector<16x1xf32>
    %cst_291 = arith.constant dense<0.000000e+00> : vector<16xf32>
    %357 = vector.multi_reduction <add>, %342, %cst_291 [1] : vector<16x32xf32> to vector<16xf32>
    %358 = vector.shape_cast %357 : vector<16xf32> to vector<16x1xf32>
    %359 = arith.addf %356, %358 : vector<16x1xf32>
    %cst_292 = arith.constant dense<0.000000e+00> : vector<16xf32>
    %360 = vector.multi_reduction <add>, %348, %cst_292 [1] : vector<16x32xf32> to vector<16xf32>
    %361 = vector.shape_cast %360 : vector<16xf32> to vector<16x1xf32>
    %362 = arith.addf %359, %361 : vector<16x1xf32>
    %cst_293 = arith.constant dense<0.000000e+00> : vector<16xf32>
    %363 = vector.multi_reduction <add>, %354, %cst_293 [1] : vector<16x32xf32> to vector<16xf32>
    %364 = vector.shape_cast %363 : vector<16xf32> to vector<16x1xf32>
    %365 = arith.addf %362, %364 : vector<16x1xf32>
    %cst_294 = arith.constant 7.812500e-03 : f32
    %366 = vector.broadcast %cst_294 : f32 to vector<16x1xf32>
    %367 = arith.mulf %365, %366 : vector<16x1xf32>
    %368 = vector.broadcast %367 : vector<16x1xf32> to vector<16x32xf32>
    %369 = arith.subf %336, %368 : vector<16x32xf32>
    %370 = vector.broadcast %367 : vector<16x1xf32> to vector<16x32xf32>
    %371 = arith.subf %342, %370 : vector<16x32xf32>
    %372 = vector.broadcast %367 : vector<16x1xf32> to vector<16x32xf32>
    %373 = arith.subf %348, %372 : vector<16x32xf32>
    %374 = vector.broadcast %367 : vector<16x1xf32> to vector<16x32xf32>
    %375 = arith.subf %354, %374 : vector<16x32xf32>
    %376 = arith.mulf %369, %369 : vector<16x32xf32>
    %cst_295 = arith.constant dense<0.000000e+00> : vector<16xf32>
    %377 = vector.multi_reduction <add>, %376, %cst_295 [1] : vector<16x32xf32> to vector<16xf32>
    %378 = vector.shape_cast %377 : vector<16xf32> to vector<16x1xf32>
    %379 = arith.mulf %371, %371 : vector<16x32xf32>
    %cst_296 = arith.constant dense<0.000000e+00> : vector<16xf32>
    %380 = vector.multi_reduction <add>, %379, %cst_296 [1] : vector<16x32xf32> to vector<16xf32>
    %381 = vector.shape_cast %380 : vector<16xf32> to vector<16x1xf32>
    %382 = arith.addf %378, %381 : vector<16x1xf32>
    %383 = arith.mulf %373, %373 : vector<16x32xf32>
    %cst_297 = arith.constant dense<0.000000e+00> : vector<16xf32>
    %384 = vector.multi_reduction <add>, %383, %cst_297 [1] : vector<16x32xf32> to vector<16xf32>
    %385 = vector.shape_cast %384 : vector<16xf32> to vector<16x1xf32>
    %386 = arith.addf %382, %385 : vector<16x1xf32>
    %387 = arith.mulf %375, %375 : vector<16x32xf32>
    %cst_298 = arith.constant dense<0.000000e+00> : vector<16xf32>
    %388 = vector.multi_reduction <add>, %387, %cst_298 [1] : vector<16x32xf32> to vector<16xf32>
    %389 = vector.shape_cast %388 : vector<16xf32> to vector<16x1xf32>
    %390 = arith.addf %386, %389 : vector<16x1xf32>
    %cst_299 = arith.constant 7.812500e-03 : f32
    %391 = vector.broadcast %cst_299 : f32 to vector<16x1xf32>
    %392 = arith.mulf %390, %391 : vector<16x1xf32>
    %cst_300 = arith.constant 9.99999974E-6 : f32
    %393 = vector.broadcast %cst_300 : f32 to vector<16x1xf32>
    %394 = arith.addf %392, %393 : vector<16x1xf32>
    %395 = math.rsqrt %394 : vector<16x1xf32>
    %396 = vector.broadcast %395 : vector<16x1xf32> to vector<16x32xf32>
    %397 = arith.mulf %369, %396 : vector<16x32xf32>
    %cst_301 = arith.constant 0.000000e+00 : f32
    %398 = vector.broadcast %cst_301 : f32 to vector<16x32xf32>
    %399 = arith.maximumf %397, %398 : vector<16x32xf32>
    %c0_302 = arith.constant 0 : index
    %c0_303 = arith.constant 0 : index
    %c0_304 = arith.constant 0 : index
    %400 = vector.load %arg17[%c0_302, %c0_303, %c0_304] : memref<4x32x128xf32, #tpu.memory_space<vmem>>, vector<1x32x128xf32>
    %401 = vector.shape_cast %400 : vector<1x32x128xf32> to vector<32x128xf32>
    %cst_305 = arith.constant dense<0.000000e+00> : vector<16x128xf32>
    %402 = tpu.matmul %399, %401, %cst_305 {dimension_numbers = #tpu.dot_dimension_numbers<[1], [0], [0], [1], [0, 0, 1, 1], [], []>} : vector<16x32xf32>, vector<32x128xf32>, vector<16x128xf32> -> vector<16x128xf32>
    %403 = vector.broadcast %395 : vector<16x1xf32> to vector<16x32xf32>
    %404 = arith.mulf %371, %403 : vector<16x32xf32>
    %cst_306 = arith.constant 0.000000e+00 : f32
    %405 = vector.broadcast %cst_306 : f32 to vector<16x32xf32>
    %406 = arith.maximumf %404, %405 : vector<16x32xf32>
    %c1_307 = arith.constant 1 : index
    %c0_308 = arith.constant 0 : index
    %c0_309 = arith.constant 0 : index
    %407 = vector.load %arg17[%c1_307, %c0_308, %c0_309] : memref<4x32x128xf32, #tpu.memory_space<vmem>>, vector<1x32x128xf32>
    %408 = vector.shape_cast %407 : vector<1x32x128xf32> to vector<32x128xf32>
    %cst_310 = arith.constant dense<0.000000e+00> : vector<16x128xf32>
    %409 = tpu.matmul %406, %408, %cst_310 {dimension_numbers = #tpu.dot_dimension_numbers<[1], [0], [0], [1], [0, 0, 1, 1], [], []>} : vector<16x32xf32>, vector<32x128xf32>, vector<16x128xf32> -> vector<16x128xf32>
    %410 = arith.addf %402, %409 : vector<16x128xf32>
    %411 = vector.broadcast %395 : vector<16x1xf32> to vector<16x32xf32>
    %412 = arith.mulf %373, %411 : vector<16x32xf32>
    %cst_311 = arith.constant 0.000000e+00 : f32
    %413 = vector.broadcast %cst_311 : f32 to vector<16x32xf32>
    %414 = arith.maximumf %412, %413 : vector<16x32xf32>
    %c2_312 = arith.constant 2 : index
    %c0_313 = arith.constant 0 : index
    %c0_314 = arith.constant 0 : index
    %415 = vector.load %arg17[%c2_312, %c0_313, %c0_314] : memref<4x32x128xf32, #tpu.memory_space<vmem>>, vector<1x32x128xf32>
    %416 = vector.shape_cast %415 : vector<1x32x128xf32> to vector<32x128xf32>
    %cst_315 = arith.constant dense<0.000000e+00> : vector<16x128xf32>
    %417 = tpu.matmul %414, %416, %cst_315 {dimension_numbers = #tpu.dot_dimension_numbers<[1], [0], [0], [1], [0, 0, 1, 1], [], []>} : vector<16x32xf32>, vector<32x128xf32>, vector<16x128xf32> -> vector<16x128xf32>
    %418 = arith.addf %410, %417 : vector<16x128xf32>
    %419 = vector.broadcast %395 : vector<16x1xf32> to vector<16x32xf32>
    %420 = arith.mulf %375, %419 : vector<16x32xf32>
    %cst_316 = arith.constant 0.000000e+00 : f32
    %421 = vector.broadcast %cst_316 : f32 to vector<16x32xf32>
    %422 = arith.maximumf %420, %421 : vector<16x32xf32>
    %c3_317 = arith.constant 3 : index
    %c0_318 = arith.constant 0 : index
    %c0_319 = arith.constant 0 : index
    %423 = vector.load %arg17[%c3_317, %c0_318, %c0_319] : memref<4x32x128xf32, #tpu.memory_space<vmem>>, vector<1x32x128xf32>
    %424 = vector.shape_cast %423 : vector<1x32x128xf32> to vector<32x128xf32>
    %cst_320 = arith.constant dense<0.000000e+00> : vector<16x128xf32>
    %425 = tpu.matmul %422, %424, %cst_320 {dimension_numbers = #tpu.dot_dimension_numbers<[1], [0], [0], [1], [0, 0, 1, 1], [], []>} : vector<16x32xf32>, vector<32x128xf32>, vector<16x128xf32> -> vector<16x128xf32>
    %426 = arith.addf %418, %425 : vector<16x128xf32>
    %c0_321 = arith.constant 0 : index
    %c0_322 = arith.constant 0 : index
    %c0_323 = arith.constant 0 : index
    %427 = vector.load %arg18[%c0_321, %c0_322, %c0_323] : memref<4x8x16xf32, #tpu.memory_space<vmem>>, vector<1x8x16xf32>
    %428 = vector.shape_cast %427 : vector<1x8x16xf32> to vector<8x16xf32>
    %cst_324 = arith.constant dense<0.000000e+00> : vector<8x128xf32>
    %429 = tpu.matmul %428, %426, %cst_324 {dimension_numbers = #tpu.dot_dimension_numbers<[1], [0], [0], [1], [0, 0, 1, 1], [], []>} : vector<8x16xf32>, vector<16x128xf32>, vector<8x128xf32> -> vector<8x128xf32>
    %c0_325 = arith.constant 0 : index
    %c0_326 = arith.constant 0 : index
    %430 = vector.load %arg19[%c0_325, %c0_326] : memref<8x1xf32, #tpu.memory_space<vmem>>, vector<8x1xf32>
    %431 = vector.broadcast %430 : vector<8x1xf32> to vector<8x128xf32>
    %432 = arith.addf %429, %431 : vector<8x128xf32>
    %c1_327 = arith.constant 1 : index
    %c0_328 = arith.constant 0 : index
    %c0_329 = arith.constant 0 : index
    %433 = vector.load %arg18[%c1_327, %c0_328, %c0_329] : memref<4x8x16xf32, #tpu.memory_space<vmem>>, vector<1x8x16xf32>
    %434 = vector.shape_cast %433 : vector<1x8x16xf32> to vector<8x16xf32>
    %cst_330 = arith.constant dense<0.000000e+00> : vector<8x128xf32>
    %435 = tpu.matmul %434, %426, %cst_330 {dimension_numbers = #tpu.dot_dimension_numbers<[1], [0], [0], [1], [0, 0, 1, 1], [], []>} : vector<8x16xf32>, vector<16x128xf32>, vector<8x128xf32> -> vector<8x128xf32>
    %c0_331 = arith.constant 0 : index
    %c0_332 = arith.constant 0 : index
    %436 = vector.load %arg19[%c0_331, %c0_332] : memref<8x1xf32, #tpu.memory_space<vmem>>, vector<8x1xf32>
    %437 = vector.broadcast %436 : vector<8x1xf32> to vector<8x128xf32>
    %438 = arith.addf %435, %437 : vector<8x128xf32>
    %c2_333 = arith.constant 2 : index
    %c0_334 = arith.constant 0 : index
    %c0_335 = arith.constant 0 : index
    %439 = vector.load %arg18[%c2_333, %c0_334, %c0_335] : memref<4x8x16xf32, #tpu.memory_space<vmem>>, vector<1x8x16xf32>
    %440 = vector.shape_cast %439 : vector<1x8x16xf32> to vector<8x16xf32>
    %cst_336 = arith.constant dense<0.000000e+00> : vector<8x128xf32>
    %441 = tpu.matmul %440, %426, %cst_336 {dimension_numbers = #tpu.dot_dimension_numbers<[1], [0], [0], [1], [0, 0, 1, 1], [], []>} : vector<8x16xf32>, vector<16x128xf32>, vector<8x128xf32> -> vector<8x128xf32>
    %c0_337 = arith.constant 0 : index
    %c0_338 = arith.constant 0 : index
    %442 = vector.load %arg19[%c0_337, %c0_338] : memref<8x1xf32, #tpu.memory_space<vmem>>, vector<8x1xf32>
    %443 = vector.broadcast %442 : vector<8x1xf32> to vector<8x128xf32>
    %444 = arith.addf %441, %443 : vector<8x128xf32>
    %c3_339 = arith.constant 3 : index
    %c0_340 = arith.constant 0 : index
    %c0_341 = arith.constant 0 : index
    %445 = vector.load %arg18[%c3_339, %c0_340, %c0_341] : memref<4x8x16xf32, #tpu.memory_space<vmem>>, vector<1x8x16xf32>
    %446 = vector.shape_cast %445 : vector<1x8x16xf32> to vector<8x16xf32>
    %cst_342 = arith.constant dense<0.000000e+00> : vector<8x128xf32>
    %447 = tpu.matmul %446, %426, %cst_342 {dimension_numbers = #tpu.dot_dimension_numbers<[1], [0], [0], [1], [0, 0, 1, 1], [], []>} : vector<8x16xf32>, vector<16x128xf32>, vector<8x128xf32> -> vector<8x128xf32>
    %c0_343 = arith.constant 0 : index
    %c0_344 = arith.constant 0 : index
    %448 = vector.load %arg19[%c0_343, %c0_344] : memref<8x1xf32, #tpu.memory_space<vmem>>, vector<8x1xf32>
    %449 = vector.broadcast %448 : vector<8x1xf32> to vector<8x128xf32>
    %450 = arith.addf %447, %449 : vector<8x128xf32>
    %cst_345 = arith.constant dense<0.000000e+00> : vector<8xf32>
    %451 = vector.multi_reduction <add>, %432, %cst_345 [1] : vector<8x128xf32> to vector<8xf32>
    %452 = vector.shape_cast %451 : vector<8xf32> to vector<8x1xf32>
    %cst_346 = arith.constant dense<0.000000e+00> : vector<8xf32>
    %453 = vector.multi_reduction <add>, %438, %cst_346 [1] : vector<8x128xf32> to vector<8xf32>
    %454 = vector.shape_cast %453 : vector<8xf32> to vector<8x1xf32>
    %455 = arith.addf %452, %454 : vector<8x1xf32>
    %cst_347 = arith.constant dense<0.000000e+00> : vector<8xf32>
    %456 = vector.multi_reduction <add>, %444, %cst_347 [1] : vector<8x128xf32> to vector<8xf32>
    %457 = vector.shape_cast %456 : vector<8xf32> to vector<8x1xf32>
    %458 = arith.addf %455, %457 : vector<8x1xf32>
    %cst_348 = arith.constant dense<0.000000e+00> : vector<8xf32>
    %459 = vector.multi_reduction <add>, %450, %cst_348 [1] : vector<8x128xf32> to vector<8xf32>
    %460 = vector.shape_cast %459 : vector<8xf32> to vector<8x1xf32>
    %461 = arith.addf %458, %460 : vector<8x1xf32>
    %cst_349 = arith.constant 0.001953125 : f32
    %462 = vector.broadcast %cst_349 : f32 to vector<8x1xf32>
    %463 = arith.mulf %461, %462 : vector<8x1xf32>
    %464 = vector.broadcast %463 : vector<8x1xf32> to vector<8x128xf32>
    %465 = arith.subf %432, %464 : vector<8x128xf32>
    %466 = vector.broadcast %463 : vector<8x1xf32> to vector<8x128xf32>
    %467 = arith.subf %438, %466 : vector<8x128xf32>
    %468 = vector.broadcast %463 : vector<8x1xf32> to vector<8x128xf32>
    %469 = arith.subf %444, %468 : vector<8x128xf32>
    %470 = vector.broadcast %463 : vector<8x1xf32> to vector<8x128xf32>
    %471 = arith.subf %450, %470 : vector<8x128xf32>
    %472 = arith.mulf %465, %465 : vector<8x128xf32>
    %cst_350 = arith.constant dense<0.000000e+00> : vector<8xf32>
    %473 = vector.multi_reduction <add>, %472, %cst_350 [1] : vector<8x128xf32> to vector<8xf32>
    %474 = vector.shape_cast %473 : vector<8xf32> to vector<8x1xf32>
    %475 = arith.mulf %467, %467 : vector<8x128xf32>
    %cst_351 = arith.constant dense<0.000000e+00> : vector<8xf32>
    %476 = vector.multi_reduction <add>, %475, %cst_351 [1] : vector<8x128xf32> to vector<8xf32>
    %477 = vector.shape_cast %476 : vector<8xf32> to vector<8x1xf32>
    %478 = arith.addf %474, %477 : vector<8x1xf32>
    %479 = arith.mulf %469, %469 : vector<8x128xf32>
    %cst_352 = arith.constant dense<0.000000e+00> : vector<8xf32>
    %480 = vector.multi_reduction <add>, %479, %cst_352 [1] : vector<8x128xf32> to vector<8xf32>
    %481 = vector.shape_cast %480 : vector<8xf32> to vector<8x1xf32>
    %482 = arith.addf %478, %481 : vector<8x1xf32>
    %483 = arith.mulf %471, %471 : vector<8x128xf32>
    %cst_353 = arith.constant dense<0.000000e+00> : vector<8xf32>
    %484 = vector.multi_reduction <add>, %483, %cst_353 [1] : vector<8x128xf32> to vector<8xf32>
    %485 = vector.shape_cast %484 : vector<8xf32> to vector<8x1xf32>
    %486 = arith.addf %482, %485 : vector<8x1xf32>
    %cst_354 = arith.constant 0.001953125 : f32
    %487 = vector.broadcast %cst_354 : f32 to vector<8x1xf32>
    %488 = arith.mulf %486, %487 : vector<8x1xf32>
    %cst_355 = arith.constant 9.99999974E-6 : f32
    %489 = vector.broadcast %cst_355 : f32 to vector<8x1xf32>
    %490 = arith.addf %488, %489 : vector<8x1xf32>
    %491 = math.rsqrt %490 : vector<8x1xf32>
    %492 = vector.broadcast %491 : vector<8x1xf32> to vector<8x128xf32>
    %493 = arith.mulf %465, %492 : vector<8x128xf32>
    %cst_356 = arith.constant 0.000000e+00 : f32
    %494 = vector.broadcast %cst_356 : f32 to vector<8x128xf32>
    %495 = arith.maximumf %493, %494 : vector<8x128xf32>
    %c0_357 = arith.constant 0 : index
    %c0_358 = arith.constant 0 : index
    %c0_359 = arith.constant 0 : index
    %496 = vector.load %arg20[%c0_357, %c0_358, %c0_359] : memref<4x128x512xf32, #tpu.memory_space<vmem>>, vector<1x128x512xf32>
    %497 = vector.shape_cast %496 : vector<1x128x512xf32> to vector<128x512xf32>
    %cst_360 = arith.constant dense<0.000000e+00> : vector<8x512xf32>
    %498 = tpu.matmul %495, %497, %cst_360 {dimension_numbers = #tpu.dot_dimension_numbers<[1], [0], [0], [1], [0, 0, 1, 1], [], []>} : vector<8x128xf32>, vector<128x512xf32>, vector<8x512xf32> -> vector<8x512xf32>
    %499 = vector.broadcast %491 : vector<8x1xf32> to vector<8x128xf32>
    %500 = arith.mulf %467, %499 : vector<8x128xf32>
    %cst_361 = arith.constant 0.000000e+00 : f32
    %501 = vector.broadcast %cst_361 : f32 to vector<8x128xf32>
    %502 = arith.maximumf %500, %501 : vector<8x128xf32>
    %c1_362 = arith.constant 1 : index
    %c0_363 = arith.constant 0 : index
    %c0_364 = arith.constant 0 : index
    %503 = vector.load %arg20[%c1_362, %c0_363, %c0_364] : memref<4x128x512xf32, #tpu.memory_space<vmem>>, vector<1x128x512xf32>
    %504 = vector.shape_cast %503 : vector<1x128x512xf32> to vector<128x512xf32>
    %cst_365 = arith.constant dense<0.000000e+00> : vector<8x512xf32>
    %505 = tpu.matmul %502, %504, %cst_365 {dimension_numbers = #tpu.dot_dimension_numbers<[1], [0], [0], [1], [0, 0, 1, 1], [], []>} : vector<8x128xf32>, vector<128x512xf32>, vector<8x512xf32> -> vector<8x512xf32>
    %506 = arith.addf %498, %505 : vector<8x512xf32>
    %507 = vector.broadcast %491 : vector<8x1xf32> to vector<8x128xf32>
    %508 = arith.mulf %469, %507 : vector<8x128xf32>
    %cst_366 = arith.constant 0.000000e+00 : f32
    %509 = vector.broadcast %cst_366 : f32 to vector<8x128xf32>
    %510 = arith.maximumf %508, %509 : vector<8x128xf32>
    %c2_367 = arith.constant 2 : index
    %c0_368 = arith.constant 0 : index
    %c0_369 = arith.constant 0 : index
    %511 = vector.load %arg20[%c2_367, %c0_368, %c0_369] : memref<4x128x512xf32, #tpu.memory_space<vmem>>, vector<1x128x512xf32>
    %512 = vector.shape_cast %511 : vector<1x128x512xf32> to vector<128x512xf32>
    %cst_370 = arith.constant dense<0.000000e+00> : vector<8x512xf32>
    %513 = tpu.matmul %510, %512, %cst_370 {dimension_numbers = #tpu.dot_dimension_numbers<[1], [0], [0], [1], [0, 0, 1, 1], [], []>} : vector<8x128xf32>, vector<128x512xf32>, vector<8x512xf32> -> vector<8x512xf32>
    %514 = arith.addf %506, %513 : vector<8x512xf32>
    %515 = vector.broadcast %491 : vector<8x1xf32> to vector<8x128xf32>
    %516 = arith.mulf %471, %515 : vector<8x128xf32>
    %cst_371 = arith.constant 0.000000e+00 : f32
    %517 = vector.broadcast %cst_371 : f32 to vector<8x128xf32>
    %518 = arith.maximumf %516, %517 : vector<8x128xf32>
    %c3_372 = arith.constant 3 : index
    %c0_373 = arith.constant 0 : index
    %c0_374 = arith.constant 0 : index
    %519 = vector.load %arg20[%c3_372, %c0_373, %c0_374] : memref<4x128x512xf32, #tpu.memory_space<vmem>>, vector<1x128x512xf32>
    %520 = vector.shape_cast %519 : vector<1x128x512xf32> to vector<128x512xf32>
    %cst_375 = arith.constant dense<0.000000e+00> : vector<8x512xf32>
    %521 = tpu.matmul %518, %520, %cst_375 {dimension_numbers = #tpu.dot_dimension_numbers<[1], [0], [0], [1], [0, 0, 1, 1], [], []>} : vector<8x128xf32>, vector<128x512xf32>, vector<8x512xf32> -> vector<8x512xf32>
    %522 = arith.addf %514, %521 : vector<8x512xf32>
    %c0_376 = arith.constant 0 : index
    %c0_377 = arith.constant 0 : index
    %523 = vector.load %arg21[%c0_376, %c0_377] : memref<8x512xf32, #tpu.memory_space<vmem>>, vector<8x512xf32>
    tpu.vector_store %arg21[%c0_376, %c0_377], %522 {strides = array<i32>} : memref<8x512xf32, #tpu.memory_space<vmem>>, vector<8x512xf32>,
    return
  }
}

module attributes {stable_mosaic.version = 11 : i64} {
  func.func @_conv3x3_bn_relu_kernel(%arg0: memref<72x512xf32, #tpu.memory_space<vmem>>, %arg1: memref<1x72xf32, #tpu.memory_space<vmem>>, %arg2: memref<1x1xf32, #tpu.memory_space<vmem>>, %arg3: memref<1x512xf32, #tpu.memory_space<vmem>>) attributes {dimension_semantics = [], scalar_prefetch = 0 : i64, scratch_operands = 0 : i64, tpu.core_type = #tpu.core_type<tc>} {
    %c0 = arith.constant 0 : index
    %c0_0 = arith.constant 0 : index
    %0 = vector.load %arg1[%c0, %c0_0] : memref<1x72xf32, #tpu.memory_space<vmem>>, vector<1x72xf32>
    %c0_1 = arith.constant 0 : index
    %c0_2 = arith.constant 0 : index
    %1 = vector.load %arg0[%c0_1, %c0_2] : memref<72x512xf32, #tpu.memory_space<vmem>>, vector<72x512xf32>
    %cst = arith.constant dense<0.000000e+00> : vector<1x512xf32>
    %2 = tpu.matmul %0, %1, %cst {dimension_numbers = #tpu.dot_dimension_numbers<[1], [0], [0], [1], [0, 0, 1, 1], [], []>} : vector<1x72xf32>, vector<72x512xf32>, vector<1x512xf32> -> vector<1x512xf32>
    %c0_3 = arith.constant 0 : index
    %c0_4 = arith.constant 0 : index
    %3 = vector.load %arg2[%c0_3, %c0_4] : memref<1x1xf32, #tpu.memory_space<vmem>>, vector<1x1xf32>
    %4 = vector.broadcast %3 : vector<1x1xf32> to vector<1x512xf32>
    %5 = arith.addf %2, %4 : vector<1x512xf32>
    %cst_5 = arith.constant dense<0.000000e+00> : vector<1xf32>
    %6 = vector.multi_reduction <add>, %5, %cst_5 [1] : vector<1x512xf32> to vector<1xf32>
    %7 = vector.shape_cast %6 : vector<1xf32> to vector<1x1xf32>
    %cst_6 = arith.constant 0.001953125 : f32
    %8 = vector.broadcast %cst_6 : f32 to vector<1x1xf32>
    %9 = arith.mulf %7, %8 : vector<1x1xf32>
    %10 = vector.broadcast %9 : vector<1x1xf32> to vector<1x512xf32>
    %11 = arith.subf %5, %10 : vector<1x512xf32>
    %12 = arith.mulf %11, %11 : vector<1x512xf32>
    %cst_7 = arith.constant dense<0.000000e+00> : vector<1xf32>
    %13 = vector.multi_reduction <add>, %12, %cst_7 [1] : vector<1x512xf32> to vector<1xf32>
    %14 = vector.shape_cast %13 : vector<1xf32> to vector<1x1xf32>
    %cst_8 = arith.constant 0.001953125 : f32
    %15 = vector.broadcast %cst_8 : f32 to vector<1x1xf32>
    %16 = arith.mulf %14, %15 : vector<1x1xf32>
    %cst_9 = arith.constant 9.99999974E-6 : f32
    %17 = vector.broadcast %cst_9 : f32 to vector<1x1xf32>
    %18 = arith.addf %16, %17 : vector<1x1xf32>
    %19 = math.rsqrt %18 : vector<1x1xf32>
    %20 = vector.broadcast %19 : vector<1x1xf32> to vector<1x512xf32>
    %21 = arith.mulf %11, %20 : vector<1x512xf32>
    %cst_10 = arith.constant 0.000000e+00 : f32
    %22 = vector.broadcast %cst_10 : f32 to vector<1x512xf32>
    %23 = arith.maximumf %21, %22 : vector<1x512xf32>
    %c0_11 = arith.constant 0 : index
    %c0_12 = arith.constant 0 : index
    %24 = vector.load %arg3[%c0_11, %c0_12] : memref<1x512xf32, #tpu.memory_space<vmem>>, vector<1x512xf32>
    tpu.vector_store %arg3[%c0_11, %c0_12], %23 {strides = array<i32>} : memref<1x512xf32, #tpu.memory_space<vmem>>, vector<1x512xf32>,
    return
  }
}

</mosaic_0001>

<bundles_post_ra>
// kernel: forward.3
= control target key start
LH: loop header
LB: loop body
LE: loop exit
PB: predicated region body
PF: predicated region fallthrough
CT: control target
= control target key end

     0   :  { %v222_v3 = vmov 0   ;;  %vm60_vm0 = vcmask 588800   ;;  %vm144_vm1 = vcmask 1040384   ;;  %vm200_vm5 = vcmask 1042434   ;;  %s369_s0 = inlined_call_operand.vmem [shape: f32[72,512], index: 0, kind: input, shape index: {}]   ;;  %s370_s2 = inlined_call_operand.<no memory space> [shape: f32[1,1], index: 2, kind: input, shape index: {}]   ;;  %s371_s1 = inlined_call_operand.vmem [shape: f32[1,72], index: 1, kind: input, shape index: {}]   ;;  %s372_s3 = inlined_call_operand.vmem [shape: f32[1,512], index: 3, kind: output, shape index: {}]  }
   0x1   :  { %v51_v0 = vld [vmem:[%s369_s0 + $0x110] sm:$0xff]  ;;  %v52_v1 = vld [vmem:[%s369_s0 + $0x118] sm:$0xff]  ;;  %219 = vset.pattern.permute.xlu0 %v222_v3  ;;  %v8_v4 = vstv %s370_s2  ;;  %v49_v6 = vld [vmem:[%s369_s0 + $0x100] sm:$0xff]  ;;  %vm202_vm6 = vcmask 1041408  }
   0x2   :  { %v47_v2 = vld [vmem:[%s369_s0 + $0xf0] sm:$0xff]  ;;  %111 = vmatpush.msra.mxu2 %v51_v0  ;;  %131 = vmatpush.msra.mxu3 %v52_v1  ;;  %v48_v5 = vld [vmem:[%s369_s0 + $0xf8] sm:$0xff]  ;;  %v50_v7 = vld [vmem:[%s369_s0 + $0x108] sm:$0xff]  ;;  %9 = vst [vmem:[#allocation2] sm:$0x1] %v8_v4 }
   0x3   :  { %71 = vmatpush.msra.mxu0 %v49_v6  ;;  %91 = vmatpush.msra.mxu1 %v50_v7  ;;  %v43_v8 = vld [vmem:[%s369_s0 + $0xd0] sm:$0xff]  ;;  %v44_v9 = vld [vmem:[%s369_s0 + $0xd8] sm:$0xff]  ;;  %v45_v10 = vld [vmem:[%s369_s0 + $0xe0] sm:$0xff] }
   0x4   :  { %112 = vmatpush.msra.mxu2 %v47_v2  ;;  %132 = vmatpush.msra.mxu3 %v48_v5  ;;  %v46_v11 = vld [vmem:[%s369_s0 + $0xe8] sm:$0xff]  ;;  %v39_v12 = vld [vmem:[%s369_s0 + $0xb0] sm:$0xff]  ;;  %v40_v13 = vld [vmem:[%s369_s0 + $0xb8] sm:$0xff] }
   0x5   :  { %72 = vmatpush.msra.mxu0 %v45_v10  ;;  %92 = vmatpush.msra.mxu1 %v46_v11  ;;  %v41_v14 = vld [vmem:[%s369_s0 + $0xc0] sm:$0xff]  ;;  %v42_v15 = vld [vmem:[%s369_s0 + $0xc8] sm:$0xff]  ;;  %v35_v18 = vld [vmem:[%s369_s0 + $0x90] sm:$0xff] }
   0x6   :  { %113 = vmatpush.msra.mxu2 %v43_v8  ;;  %133 = vmatpush.msra.mxu3 %v44_v9  ;;  %v37_v16 = vld [vmem:[%s369_s0 + $0xa0] sm:$0xff]  ;;  %v38_v17 = vld [vmem:[%s369_s0 + $0xa8] sm:$0xff]  ;;  %v36_v19 = vld [vmem:[%s369_s0 + $0x98] sm:$0xff] }
   0x7   :  { %73 = vmatpush.msra.mxu0 %v41_v14  ;;  %93 = vmatpush.msra.mxu1 %v42_v15  ;;  %v33_v20 = vld [vmem:[%s369_s0 + $0x80] sm:$0xff]  ;;  %v34_v21 = vld [vmem:[%s369_s0 + $0x88] sm:$0xff]  ;;  %v31_v22 = vld [vmem:[%s369_s0 + $0x70] sm:$0xff] }
   0x8   :  { %114 = vmatpush.msra.mxu2 %v39_v12  ;;  %134 = vmatpush.msra.mxu3 %v40_v13  ;;  %v32_v23 = vld [vmem:[%s369_s0 + $0x78] sm:$0xff]  ;;  %v29_v24 = vld [vmem:[%s369_s0 + $0x60] sm:$0xff]  ;;  %v30_v25 = vld [vmem:[%s369_s0 + $0x68] sm:$0xff] }
   0x9   :  { %74 = vmatpush.msra.mxu0 %v37_v16  ;;  %94 = vmatpush.msra.mxu1 %v38_v17  ;;  %v27_v26 = vld [vmem:[%s369_s0 + $0x50] sm:$0xff]  ;;  %v28_v27 = vld [vmem:[%s369_s0 + $0x58] sm:$0xff]  ;;  %v25_v28 = vld [vmem:[%s369_s0 + $0x40] sm:$0xff] }
   0xa   :  { %115 = vmatpush.msra.mxu2 %v35_v18  ;;  %135 = vmatpush.msra.mxu3 %v36_v19  ;;  %v26_v29 = vld [vmem:[%s369_s0 + $0x48] sm:$0xff]  ;;  %v23_v30 = vld [vmem:[%s369_s0 + $0x30] sm:$0xff]  ;;  %v24_v31 = vld [vmem:[%s369_s0 + $0x38] sm:$0xff] }
   0xb   :  { %75 = vmatpush.msra.mxu0 %v33_v20  ;;  %95 = vmatpush.msra.mxu1 %v34_v21  ;;  %v21_v32 = vld [vmem:[%s369_s0 + $0x20] sm:$0xff]  ;;  %v22_v33 = vld [vmem:[%s369_s0 + $0x28] sm:$0xff]  ;;  %v19_v34 = vld [vmem:[%s369_s0 + $0x10] sm:$0xff] }
   0xc   :  { %116 = vmatpush.msra.mxu2 %v31_v22  ;;  %136 = vmatpush.msra.mxu3 %v32_v23  ;;  %v20_v35 = vld [vmem:[%s369_s0 + $0x18] sm:$0xff]  ;;  %v16_v36 = vld [vmem:[%s371_s1] sm:$0x1]  ;;  %v18_v38 = vld [vmem:[%s369_s0 + $0x8] sm:$0xff] }
   0xd   :  { %76 = vmatpush.msra.mxu0 %v29_v24  ;;  %96 = vmatpush.msra.mxu1 %v30_v25  ;;  %v17_v37 = vld [vmem:[%s369_s0] sm:$0xff]  ;;  %v205_v24 = vlaneseq }
   0xe   :  { %117 = vmatpush.msra.mxu2 %v27_v26  ;;  %137 = vmatpush.msra.mxu3 %v28_v27  ;;  %v53_v39 = vld [vmem:[#allocation2] sm:$0x1] }
   0xf   :  { %77 = vmatpush.msra.mxu0 %v25_v28  ;;  %97 = vmatpush.msra.mxu1 %v26_v29  ;;  %vm207_vm7 = vcmp.lt.s32.totalorder %v205_v24, 512 }
  0x10   :  { %118 = vmatpush.msra.mxu2 %v23_v30  ;;  %138 = vmatpush.msra.mxu3 %v24_v31 }
  0x11   :  { %78 = vmatpush.msra.mxu0 %v21_v32  ;;  %98 = vmatpush.msra.mxu1 %v22_v33 }
  0x12   :  { %119 = vmatpush.msra.mxu2 %v19_v34  ;;  %139 = vmatpush.msra.mxu3 %v20_v35 }
  0x13   :  { %216 = vmatmul.msk.f32.vlgmr.msra.gmra.mxu2 %vm60_vm0, %v16_v36  ;;  %217 = vmatmul.msk.f32.vlgmr.msra.gmra.mxu3 %vm60_vm0, %v16_v36 }
  0x14   :  { %79 = vmatpush.msra.mxu0 %v17_v37  ;;  %99 = vmatpush.msra.mxu1 %v18_v38 }
  0x15   :  { %214 = vmatmul.msk.f32.vlgmr.msra.gmra.mxu0 %vm60_vm0, %v16_v36  ;;  %215 = vmatmul.msk.f32.vlgmr.msra.gmra.mxu1 %vm60_vm0, %v16_v36 }
  0x16   :  { %56 = vperm.xlu0 %219, %v53_v39  }
  0x88   :  { %v57_v40 = vpop.permute.xlu0 %56 }
  0x89   :  { %v59_v41 = vperm.slane %v57_v40, 0 }
  0x92   :  { %v81_v42 = vpop.f32.mrf.mxu0  ;;  %v101_v43 = vpop.f32.mrf.mxu1 }
  0x93   :  { %v82_v44 = vadd.f32 %v81_v42, %v59_v41  ;;  %v102_v45 = vadd.f32 %v101_v43, %v59_v41 }
  0x95   :  { %v145_v46 = vsel %vm144_vm1, %v82_v44, 0.0  ;;  %v146_v47 = vsel %vm144_vm1, %v102_v45, 0.0 }
  0x96   :  { %v147_v48 = vadd.f32 %v146_v47, %v145_v46  ;;  %v121_v49 = vpop.f32.mrf.mxu2  ;;  %v141_v50 = vpop.f32.mrf.mxu3 }
  0x97   :  { %v122_v51 = vadd.f32 %v121_v49, %v59_v41  ;;  %v142_v52 = vadd.f32 %v141_v50, %v59_v41 }
  0x99   :  { %v148_v53 = vsel %vm144_vm1, %v122_v51, 0.0  ;;  %v150_v55 = vsel %vm144_vm1, %v142_v52, 0.0 }
  0x9a   :  { %v149_v54 = vadd.f32 %v148_v53, %v147_v48 }
  0x9c   :  { %v151_v56 = vadd.f32 %v150_v55, %v149_v54 }
  0x9e   :  { %152 = vadd.xlane.f32.xlu0 %v151_v56 }
 0x111   :  { %v153_v57 = vpop.xlane.xlu0 %152 }
 0x112   :  { %v154_v58 = vmul.f32 0.001953125, %v153_v57 }
 0x114   :  { %v155_v59 = vsub.f32 %v82_v44, %v154_v58  ;;  %v156_v60 = vsub.f32 %v102_v45, %v154_v58  ;;  %v157_v61 = vsub.f32 %v122_v51, %v154_v58  ;;  %v158_v62 = vsub.f32 %v142_v52, %v154_v58 }
 0x116   :  { %v159_v63 = vmul.f32 %v155_v59, %v155_v59  ;;  %v160_v0 = vmul.f32 %v156_v60, %v156_v60  ;;  %v161_v1 = vmul.f32 %v157_v61, %v157_v61  ;;  %v162_v2 = vmul.f32 %v158_v62, %v158_v62 }
 0x118   :  { %v163_v3 = vsel %vm144_vm1, %v159_v63, 0.0  ;;  %v164_v4 = vsel %vm144_vm1, %v160_v0, 0.0  ;;  %v166_v6 = vsel %vm144_vm1, %v161_v1, 0.0  ;;  %v168_v8 = vsel %vm144_vm1, %v162_v2, 0.0 }
 0x119   :  { %v165_v5 = vadd.f32 %v164_v4, %v163_v3 }
 0x11b   :  { %v167_v7 = vadd.f32 %v166_v6, %v165_v5 }
 0x11d   :  { %v169_v9 = vadd.f32 %v168_v8, %v167_v7 }
 0x11f   :  { %170 = vadd.xlane.f32.xlu1 %v169_v9 }
 0x192   :  { %v171_v10 = vpop.xlane.xlu1 %170 }
 0x193   :  { %v172_v11 = vmul.f32 0.001953125, %v171_v10 }
 0x195   :  { %v173_v12 = vadd.f32 1e-05, %v172_v11 }
 0x197   :  { %220 = vrsqrt.f32 %v173_v12  ;;  %vm180_vm3 = vweird.f32 %v173_v12 }
 0x19d   :  { %v221_v13 = vpop.eup %220 }
 0x19e   :  { %v175_v14 = vmul.f32 %v221_v13, %v173_v12  ;;  %vm181_vm2 = vweird.f32 %v221_v13 }
 0x19f   :  { %vm182_vm4 = vmor %vm180_vm3, %vm181_vm2 }
 0x1a0   :  { %v176_v15 = vmul.f32 %v221_v13, %v175_v14 }
 0x1a2   :  { %v177_v16 = vmul.f32 0.5, %v176_v15 }
 0x1a4   :  { %v178_v17 = vsub.f32 1.5, %v177_v16 }
 0x1a6   :  { %v179_v18 = vmul.f32 %v221_v13, %v178_v17 }
 0x1a8   :  { %v183_v19 = vsel %vm182_vm4, %v221_v13, %v179_v18 }
 0x1a9   :  { %v184_v20 = vmul.f32 %v183_v19, %v155_v59  ;;  %v185_v21 = vmul.f32 %v183_v19, %v156_v60  ;;  %v186_v22 = vmul.f32 %v183_v19, %v157_v61  ;;  %v187_v23 = vmul.f32 %v183_v19, %v158_v62 }
 0x1ab   :  { %v189_v25 = vmax.f32 %v185_v21, 0.0  ;;  %v190_v26 = vmax.f32 %v186_v22, 0.0  ;;  %v191_v27 = vmax.f32 %v187_v23, 0.0  ;;  %v188_v28 = vmax.f32 %v184_v20, 0.0 }
 0x1ad   :  { %v196_v29 = vrot.slane %v189_v25, 7  ;;  %v197_v30 = vrot.slane %v190_v26, 6  ;;  %v198_v31 = vrot.slane %v191_v27, 5 }
 0x1af   :  { %v199_v32 = vsel %vm144_vm1, %v188_v28, %v196_v29  ;;  %v201_v33 = vsel %vm200_vm5, %v197_v30, %v198_v31 }
 0x1b0   :  { %v203_v34 = vsel %vm202_vm6, %v199_v32, %v201_v33 }
 0x1b1   :  { %209 = vst.msk [vmem:[%s372_s3] sm:$0xf] %vm207_vm7, %v203_v34 }

// kernel: forward.2
= control target key start
LH: loop header
LB: loop body
LE: loop exit
PB: predicated region body
PF: predicated region fallthrough
CT: control target
= control target key end

     0   :  { %s4881_s0 = inlined_call_operand.vmem [shape: f32[9,512], index: 0, kind: input, shape index: {}]   ;;  %s4882_s1 = inlined_call_operand.vmem [shape: f32[16,9], index: 1, kind: input, shape index: {}]   ;;  %s4883_s2 = inlined_call_operand.vmem [shape: f32[16,1], index: 2, kind: input, shape index: {}]   ;;  %s4884_s3 = inlined_call_operand.hbm [shape: f32[4,512,128], index: 3, kind: input, shape index: {}]   ;;  %s4885_s4 = inlined_call_operand.hbm [shape: f32[9,8,16], index: 4, kind: input, shape index: {}]   ;;  %s4886_s5 = inlined_call_operand.vmem [shape: f32[8,1], index: 5, kind: input, shape index: {}]   ;;  %s4887_s6 = inlined_call_operand.hbm [shape: f32[9,128,128], index: 6, kind: input, shape index: {}]   ;;  %s4888_s7 = inlined_call_operand.hbm [shape: f32[4,128,32], index: 7, kind: input, shape index: {}]   ;;  %s4889_s8 = inlined_call_operand.hbm [shape: f32[9,8,8], index: 8, kind: input, shape index: {}]   ;;  %s4890_s9 = inlined_call_operand.vmem [shape: f32[8,1], index: 9, kind: input, shape index: {}]   ;;  %s4891_s10 = inlined_call_operand.hbm [shape: f32[9,32,32], index: 10, kind: input, shape index: {}]   ;;  %s4892_s11 = inlined_call_operand.hbm [shape: f32[4,32,8], index: 11, kind: input, shape index: {}]   ;;  %s4893_s12 = inlined_call_operand.vmem [shape: f32[4,8,8], index: 12, kind: input, shape index: {}]   ;;  %s4894_s13 = inlined_call_operand.vmem [shape: f32[8,1], index: 13, kind: input, shape index: {}]   ;;  %s4895_s14 = inlined_call_operand.hbm [shape: f32[4,8,32], index: 14, kind: input, shape index: {}]   ;;  %s4896_s15 = inlined_call_operand.vmem [shape: f32[4,16,8], index: 15, kind: input, shape index: {}]   ;;  %s4897_s16 = inlined_call_operand.vmem [shape: f32[16,1], index: 16, kind: input, shape index: {}]   ;;  %s4898_s17 = inlined_call_operand.hbm [shape: f32[4,32,128], index: 17, kind: input, shape index: {}]   ;;  %s4899_s18 = inlined_call_operand.vmem [shape: f32[4,8,16], index: 18, kind: input, shape index: {}]   ;;  %s4900_s19 = inlined_call_operand.vmem [shape: f32[8,1], index: 19, kind: input, shape index: {}]   ;;  %s4901_s20 = inlined_call_operand.hbm [shape: f32[4,128,512], index: 20, kind: input, shape index: {}]   ;;  %s4902_s21 = inlined_call_operand.vmem [shape: f32[8,512], index: 21, kind: output, shape index: {}]  }
   0x1   :  { %4906 = sst [smem:[#allocation24_spill]] %s4881_s0 }
   0x2   :  { %4907 = sst [smem:[#allocation25_spill]] %s4882_s1 }
   0x3   :  { %4908 = sst [smem:[#allocation26_spill]] %s4883_s2 }
   0x4   :  { %4909 = sst [smem:[#allocation27_spill]] %s4884_s3 }
   0x5   :  { %4910 = sst [smem:[#allocation28_spill]] %s4885_s4 }
   0x6   :  { %4911 = sst [smem:[#allocation29_spill]] %s4886_s5 }
   0x7   :  { %26 = vsyncpa [#allocation3], 0 }
   0x8   :  { %27 = vsyncpa [#allocation5], 0 }
   0x9   :  { %28 = vsyncpa [#allocation8], 0 }
   0xa   :  { %29 = vsyncpa [#allocation11], 0 }
   0xb   :  { %30 = vsyncpa [#allocation14], 0 }
   0xc   :  { %31 = vsyncpa [#allocation17], 0  ;;  %s4912_s26 = sld [smem:[#allocation28_spill]]  ;;  %s4222_s3 = smov [#allocation4]  }
   0xd   :  { %s57_s28 = sshll.u32 %s4222_s3, 4  ;;  %s83_s4 = sshll.u32 %s4888_s7, 4  ;;  %s58_s28 = int_to_ptr.vmem [resolvable:$true] %s57_s28  ;;  %s84_s4 = int_to_ptr.hbm [resolvable:$true] %s83_s4 }
   0xe   :  { %s4223_s30 = smov 128   ;;  %s4224_s5 = smov 8  }
   0xf   :  { %s4225_s22 = smov [#allocation7]   ;;  %s111_s2 = sshll.u32 %s4891_s10, 4  ;;  %s112_s2 = int_to_ptr.hbm [resolvable:$true] %s111_s2 }
  0x10   :  { %s85_s23 = sshll.u32 %s4225_s22, 4  ;;  %s4226_s3 = smov [#allocation10]   ;;  %s86_s23 = int_to_ptr.vmem [resolvable:$true] %s85_s23 }
  0x11   :  { %91 = dma.hbm_to_vmem [thread:$0]  %s84_s4, 8192, %s86_s23, [#allocation8], %s4223_s30, %s4223_s30, %s4224_s5  }
  0x12   :  { %s55_s27 = sshll.u32 %s4912_s26, 4  ;;  %s141_s26 = sshll.u32 %s4895_s14, 4  ;;  %s56_s27 = int_to_ptr.hbm [resolvable:$true] %s55_s27  ;;  %s142_s26 = int_to_ptr.hbm [resolvable:$true] %s141_s26 }
  0x13   :  { %63 = dma.hbm_to_vmem [thread:$0]  %s56_s27, 1152, %s58_s28, [#allocation5], %s4223_s30, %s4223_s30, %s4224_s5  }
  0x14   :  { %s113_s29 = sshll.u32 %s4226_s3, 4  ;;  %s4227_s27 = smov [#allocation13]   ;;  %s114_s29 = int_to_ptr.vmem [resolvable:$true] %s113_s29 }
  0x15   :  { %119 = dma.hbm_to_vmem [thread:$0]  %s112_s2, 4608, %s114_s29, [#allocation11], %s4223_s30, %s4223_s30, %s4224_s5  }
  0x16   :  { %s143_s10 = sshll.u32 %s4227_s27, 4  ;;  %s4913_s22 = sld [smem:[#allocation27_spill]]  ;;  %s144_s10 = int_to_ptr.vmem [resolvable:$true] %s143_s10 }
  0x17   :  { %149 = dma.hbm_to_vmem [thread:$0]  %s142_s26, 512, %s144_s10, [#allocation14], %s4223_s30, %s4223_s30, %s4224_s5  }
  0x18   :  { %s70_s23 = sshll.u32 %s4887_s6, 4  ;;  %s4228_s24 = smov [#allocation2]   ;;  %s71_s23 = int_to_ptr.hbm [resolvable:$true] %s70_s23 }
  0x19   :  { %s44_s7 = sshll.u32 %s4228_s24, 4  ;;  %s4229_s2 = smov [#allocation6]   ;;  %s45_s7 = int_to_ptr.vmem [resolvable:$true] %s44_s7 }
  0x1a   :  { %s72_s25 = sshll.u32 %s4229_s2, 4  ;;  %s96_s27 = sshll.u32 %s4889_s8, 4  ;;  %s73_s25 = int_to_ptr.vmem [resolvable:$true] %s72_s25  ;;  %s97_s27 = int_to_ptr.hbm [resolvable:$true] %s96_s27 }
  0x1b   :  { %78 = dma.hbm_to_vmem [thread:$0]  %s71_s23, 18432, %s73_s25, [#allocation5], %s4223_s30, %s4223_s30, %s4224_s5  }
  0x1c   :  { %s42_s1 = sshll.u32 %s4913_s22, 4  ;;  %s124_s10 = sshll.u32 %s4892_s11, 4  ;;  %s43_s1 = int_to_ptr.hbm [resolvable:$true] %s42_s1  ;;  %s125_s10 = int_to_ptr.hbm [resolvable:$true] %s124_s10 }
  0x1d   :  { %50 = dma.hbm_to_vmem [thread:$0]  %s43_s1, 32768, %s45_s7, [#allocation3], %s4223_s30, %s4223_s30, %s4224_s5  }
  0x1e   :  { %s4230_s28 = smov [#allocation9]   ;;  %s4231_s22 = smov [#allocation12]  }
  0x1f   :  { %s98_s0 = sshll.u32 %s4230_s28, 4  ;;  %s126_s8 = sshll.u32 %s4231_s22, 4  ;;  %s99_s0 = int_to_ptr.vmem [resolvable:$true] %s98_s0  ;;  %s127_s8 = int_to_ptr.vmem [resolvable:$true] %s126_s8 }
  0x20   :  { %104 = dma.hbm_to_vmem [thread:$0]  %s97_s27, 1152, %s99_s0, [#allocation8], %s4223_s30, %s4223_s30, %s4224_s5  }
  0x21   :  { %s158_s4 = sshll.u32 %s4898_s17, 4  ;;  %s175_s24 = sshll.u32 %s4901_s20, 4  ;;  %s159_s4 = int_to_ptr.hbm [resolvable:$true] %s158_s4  ;;  %s176_s24 = int_to_ptr.hbm [resolvable:$true] %s175_s24 }
  0x22   :  { %132 = dma.hbm_to_vmem [thread:$0]  %s125_s10, 2048, %s127_s8, [#allocation11], %s4223_s30, %s4223_s30, %s4224_s5  }
  0x23   :  { %s4232_s7 = smov [#allocation15]   ;;  %s4233_s25 = smov [#allocation16]  }
  0x24   :  { %s160_s2 = sshll.u32 %s4232_s7, 4  ;;  %s177_s17 = sshll.u32 %s4233_s25, 4  ;;  %s161_s2 = int_to_ptr.vmem [resolvable:$true] %s160_s2  ;;  %s178_s17 = int_to_ptr.vmem [resolvable:$true] %s177_s17 }
  0x25   :  { %166 = dma.hbm_to_vmem [thread:$0]  %s159_s4, 2048, %s161_s2, [#allocation14], %s4223_s30, %s4223_s30, %s4224_s5  }
  0x26   :  { %s4234_s3 = smov 512   ;;  %s4235_s29 = smov 32  }
  0x27   :  { %183 = dma.hbm_to_vmem [thread:$0]  %s176_s24, 32768, %s178_s17, [#allocation17], %s4234_s3, %s4234_s3, %s4235_s29  }
  0x28   :  { %4210 = dma.done.wait [#allocation3], 32768  }
  0x29   :  { %4211 = vsyncadd [#allocation3], 4294934528 }
  0x2a   :  { %4212 = dma.done.wait [#allocation5], 19584  }
  0x2b   :  { %4213 = vsyncadd [#allocation5], 4294947712 }
  0x2c   :  { %4214 = dma.done.wait [#allocation8], 9344  }
  0x2d   :  { %4215 = vsyncadd [#allocation8], 4294957952 }
  0x2e   :  { %4216 = dma.done.wait [#allocation11], 6656  }
  0x2f   :  { %4217 = vsyncadd [#allocation11], 4294960640 }
  0x30   :  { %4218 = dma.done.wait [#allocation14], 2560  }
  0x31   :  { %4219 = vsyncadd [#allocation14], 4294964736 }
  0x32   :  { %4220 = dma.done.wait [#allocation17], 32768  }
  0x33   :  { %4221 = vsyncadd [#allocation17], 4294934528  ;;  %v4236_v0 = vmov 0   ;;  %vm253_vm0 = vcmask 1040384   ;;  %s4914_s5 = sld [smem:[#allocation26_spill]]  ;;  %vm246_vm1 = vcmask 72704  }
  0x34   :  { %3951 = vset.pattern.permute.xlu0 %v4236_v0  ;;  %3953 = vset.pattern.permute.xlu1 %v4236_v0  ;;  %s4915_s26 = sld [smem:[#allocation24_spill]]  ;;  %v1839_v14 = vld [vmem:[%s4890_s9] sm:$0xff]  ;;  %v451_v40 = vld [vmem:[#allocation2 + $0x78] sm:$0xff]  ;;  %v450_v44 = vld [vmem:[#allocation2 + $0x70] sm:$0xff]  ;;  %vm1110_vm8 = vcmask 130048   ;;  %vm1845_vm12 = vcmask 261120  }
  0x35   :  { %3952 = vset.pattern.permute.xlu2 %v4236_v0  ;;  %s4916_s29 = sld [smem:[#allocation25_spill]]  ;;  %v2436_v15 = vld [vmem:[%s4894_s13] sm:$0xff]  ;;  %v467_v41 = vld [vmem:[#allocation2 + $0xf8] sm:$0xff]  ;;  %v466_v45 = vld [vmem:[#allocation2 + $0xf0] sm:$0xff]  ;;  %vm1869_vm13 = vcmask 64512  }
  0x36   :  { %s4917_s28 = sld [smem:[#allocation29_spill]]  ;;  %v483_v42 = vld [vmem:[#allocation2 + $0x178] sm:$0xff]  ;;  %v482_v46 = vld [vmem:[#allocation2 + $0x170] sm:$0xff]  ;;  %v449_v48 = vld [vmem:[#allocation2 + $0x68] sm:$0xff] }
  0x37   :  { %v499_v43 = vld [vmem:[#allocation2 + $0x1f8] sm:$0xff]  ;;  %v498_v47 = vld [vmem:[#allocation2 + $0x1f0] sm:$0xff]  ;;  %v465_v49 = vld [vmem:[#allocation2 + $0xe8] sm:$0xff] }
  0x38   :  { %v481_v50 = vld [vmem:[#allocation2 + $0x168] sm:$0xff]  ;;  %v448_v52 = vld [vmem:[#allocation2 + $0x60] sm:$0xff]  ;;  %v447_v56 = vld [vmem:[#allocation2 + $0x58] sm:$0xff] }
  0x39   :  { %v234_v1 = vld [vmem:[%s4914_s5] sm:$0xff]  ;;  %v235_v11 = vld [vmem:[%s4914_s5 + $0x8] sm:$0xff]  ;;  %v463_v57 = vld [vmem:[#allocation2 + $0xd8] sm:$0xff] }
  0x3a   :  { %v230_v2 = vld [vmem:[%s4915_s26 + $0x20] sm:$0x1]  ;;  %v231_v3 = vld [vmem:[%s4915_s26 + $0x28] sm:$0x1]  ;;  %238 = vperm.xlu0 %3951, %v234_v1   ;;  %v232_v4 = vld [vmem:[%s4915_s26 + $0x30] sm:$0x1] }
  0x3b   :  { %3853 = vmatpush.msk.msra.mxu0 %vm253_vm0, %v230_v2  ;;  %v233_v5 = vld [vmem:[%s4915_s26 + $0x38] sm:$0x1]  ;;  %v226_v6 = vld [vmem:[%s4915_s26] sm:$0xff]  ;;  %3856 = vmatpush.msk.msra.mxu1 %vm253_vm0, %v231_v3  ;;  %v227_v7 = vld [vmem:[%s4915_s26 + $0x8] sm:$0xff] }
  0x3c   :  { %3859 = vmatpush.msk.msra.mxu2 %vm253_vm0, %v232_v4  ;;  %v228_v8 = vld [vmem:[%s4915_s26 + $0x10] sm:$0xff]  ;;  %v229_v9 = vld [vmem:[%s4915_s26 + $0x18] sm:$0xff]  ;;  %3862 = vmatpush.msk.msra.mxu3 %vm253_vm0, %v233_v5  ;;  %v224_v10 = vld [vmem:[%s4916_s29] sm:$0xff] }
  0x3d   :  { %281 = vmatpush.msra.mxu0 %v226_v6  ;;  %304 = vmatpush.msra.mxu1 %v227_v7  ;;  %v225_v12 = vld [vmem:[%s4916_s29 + $0x8] sm:$0xff]  ;;  %v1069_v13 = vld [vmem:[%s4917_s28] sm:$0xff]  ;;  %v479_v58 = vld [vmem:[#allocation2 + $0x158] sm:$0xff] }
  0x3e   :  { %327 = vmatpush.msra.mxu2 %v228_v8  ;;  %350 = vmatpush.msra.mxu3 %v229_v9  ;;  %v497_v51 = vld [vmem:[#allocation2 + $0x1e8] sm:$0xff]  ;;  %v464_v53 = vld [vmem:[#allocation2 + $0xe0] sm:$0xff]  ;;  %v495_v59 = vld [vmem:[#allocation2 + $0x1d8] sm:$0xff] }
  0x3f   :  { %3854 = vmatmul.msk.f32.vlgmr.msra.gmra.mxu0 %vm246_vm1, %v224_v10  ;;  %3857 = vmatmul.msk.f32.vlgmr.msra.gmra.mxu1 %vm246_vm1, %v224_v10  ;;  %v480_v54 = vld [vmem:[#allocation2 + $0x160] sm:$0xff]  ;;  %v446_v60 = vld [vmem:[#allocation2 + $0x50] sm:$0xff]  ;;  %v445_v0 = vld [vmem:[#allocation2 + $0x48] sm:$0xff] }
  0x40   :  { %3860 = vmatmul.msk.f32.vlgmr.msra.gmra.mxu2 %vm246_vm1, %v224_v10  ;;  %3863 = vmatmul.msk.f32.vlgmr.msra.gmra.mxu3 %vm246_vm1, %v224_v10  ;;  %v496_v55 = vld [vmem:[#allocation2 + $0x1e0] sm:$0xff]  ;;  %v462_v61 = vld [vmem:[#allocation2 + $0xd0] sm:$0xff]  ;;  %v461_v1 = vld [vmem:[#allocation2 + $0xc8] sm:$0xff] }
  0x41   :  { %500 = vmatpush.msrb.mxu0 %v451_v40  ;;  %523 = vmatpush.msrb.mxu1 %v467_v41  ;;  %v478_v62 = vld [vmem:[#allocation2 + $0x150] sm:$0xff]  ;;  %v477_v3 = vld [vmem:[#allocation2 + $0x148] sm:$0xff]  ;;  %v444_v6 = vld [vmem:[#allocation2 + $0x40] sm:$0xff] }
  0x42   :  { %243 = vperm.xlu0 %3951, %v235_v11   ;;  %546 = vmatpush.msrb.mxu2 %v483_v42  ;;  %v494_v63 = vld [vmem:[#allocation2 + $0x1d0] sm:$0xff]  ;;  %v493_v5 = vld [vmem:[#allocation2 + $0x1c8] sm:$0xff]  ;;  %v460_v7 = vld [vmem:[#allocation2 + $0xc0] sm:$0xff] }
  0x43   :  { %569 = vmatpush.msrb.mxu3 %v499_v43  ;;  %501 = vmatpush.msrb.mxu0 %v450_v44  ;;  %v476_v11 = vld [vmem:[#allocation2 + $0x140] sm:$0xff] }
  0x44   :  { %524 = vmatpush.msrb.mxu1 %v466_v45  ;;  %547 = vmatpush.msrb.mxu2 %v482_v46  ;;  %v440_v42 = vld [vmem:[#allocation2 + $0x20] sm:$0xff] }
  0x45   :  { %570 = vmatpush.msrb.mxu3 %v498_v47  ;;  %502 = vmatpush.msrb.mxu0 %v449_v48  ;;  %v456_v43 = vld [vmem:[#allocation2 + $0xa0] sm:$0xff]  ;;  %v455_v47 = vld [vmem:[#allocation2 + $0x98] sm:$0xff] }
  0x46   :  { %525 = vmatpush.msrb.mxu1 %v465_v49  ;;  %548 = vmatpush.msrb.mxu2 %v481_v50  ;;  %v472_v44 = vld [vmem:[#allocation2 + $0x120] sm:$0xff]  ;;  %v471_v48 = vld [vmem:[#allocation2 + $0x118] sm:$0xff] }
  0x47   :  { %3855 = vmatmul.msk.f32.gmra.mxu0 %vm246_vm1, %v225_v12  ;;  %3858 = vmatmul.msk.f32.gmra.mxu1 %vm246_vm1, %v225_v12  ;;  %v488_v45 = vld [vmem:[#allocation2 + $0x1a0] sm:$0xff]  ;;  %v487_v49 = vld [vmem:[#allocation2 + $0x198] sm:$0xff] }
  0x48   :  { %3861 = vmatmul.msk.f32.gmra.mxu2 %vm246_vm1, %v225_v12  ;;  %3864 = vmatmul.msk.f32.gmra.mxu3 %vm246_vm1, %v225_v12  ;;  %v492_v12 = vld [vmem:[#allocation2 + $0x1c0] sm:$0xff] }
  0x49   :  { %571 = vmatpush.msrb.mxu3 %v497_v51  ;;  %503 = vmatpush.msrb.mxu0 %v448_v52  ;;  %v454_v52 = vld [vmem:[#allocation2 + $0x90] sm:$0xff] }
  0x4a   :  { %1136 = vperm.xlu0 %3951, %v1069_v13   ;;  %526 = vmatpush.msrb.mxu1 %v464_v53  ;;  %v443_v13 = vld [vmem:[#allocation2 + $0x38] sm:$0xff]  ;;  %v470_v53 = vld [vmem:[#allocation2 + $0x110] sm:$0xff] }
  0x4b   :  { %549 = vmatpush.msrb.mxu2 %v480_v54  ;;  %572 = vmatpush.msrb.mxu3 %v496_v55  ;;  %v486_v54 = vld [vmem:[#allocation2 + $0x190] sm:$0xff] }
  0x4c   :  { %504 = vmatpush.msrb.mxu0 %v447_v56  ;;  %527 = vmatpush.msrb.mxu1 %v463_v57  ;;  %v437_v57 = vld [vmem:[#allocation2 + $0x8] sm:$0xff] }
  0x4d   :  { %550 = vmatpush.msrb.mxu2 %v479_v58  ;;  %573 = vmatpush.msrb.mxu3 %v495_v59  ;;  %v453_v58 = vld [vmem:[#allocation2 + $0x88] sm:$0xff] }
  0x4e   :  { %505 = vmatpush.msrb.mxu0 %v446_v60  ;;  %528 = vmatpush.msrb.mxu1 %v462_v61  ;;  %v469_v59 = vld [vmem:[#allocation2 + $0x108] sm:$0xff] }
  0x4f   :  { %551 = vmatpush.msrb.mxu2 %v478_v62  ;;  %574 = vmatpush.msrb.mxu3 %v494_v63  ;;  %v485_v61 = vld [vmem:[#allocation2 + $0x188] sm:$0xff]  ;;  %v436_v62 = vld [vmem:[#allocation2] sm:$0xff] }
  0x50   :  { %506 = vmatpush.msrb.mxu0 %v445_v0  ;;  %529 = vmatpush.msrb.mxu1 %v461_v1  ;;  %v452_v63 = vld [vmem:[#allocation2 + $0x80] sm:$0xff] }
  0x51   :  { %552 = vmatpush.msrb.mxu2 %v477_v3  ;;  %575 = vmatpush.msrb.mxu3 %v493_v5  ;;  %v468_v0 = vld [vmem:[#allocation2 + $0x100] sm:$0xff]  ;;  %v624_v3 = vld [vmem:[#allocation2 + $0x2f8] sm:$0xff] }
  0x52   :  { %1895 = vperm.xlu0 %3951, %v1839_v14   ;;  %507 = vmatpush.msrb.mxu0 %v444_v6  ;;  %v459_v14 = vld [vmem:[#allocation2 + $0xb8] sm:$0xff]  ;;  %v484_v1 = vld [vmem:[#allocation2 + $0x180] sm:$0xff]  ;;  %v607_v6 = vld [vmem:[#allocation2 + $0x270] sm:$0xff] }
  0x53   :  { %530 = vmatpush.msrb.mxu1 %v460_v7  ;;  %553 = vmatpush.msrb.mxu2 %v476_v11  ;;  %v656_v5 = vld [vmem:[#allocation2 + $0x3f8] sm:$0xff]  ;;  %v623_v7 = vld [vmem:[#allocation2 + $0x2f0] sm:$0xff] }
  0x54   :  { %576 = vmatpush.msrb.mxu3 %v492_v12  ;;  %508 = vmatpush.msrb.mxu0 %v443_v13  ;;  %v639_v11 = vld [vmem:[#allocation2 + $0x370] sm:$0xff]  ;;  %v606_v13 = vld [vmem:[#allocation2 + $0x268] sm:$0xff] }
  0x55   :  { %531 = vmatpush.msrb.mxu1 %v459_v14  ;;  %v655_v12 = vld [vmem:[#allocation2 + $0x3f0] sm:$0xff]  ;;  %v622_v14 = vld [vmem:[#allocation2 + $0x2e8] sm:$0xff] }
  0x5a   :  { %2439 = vperm.xlu0 %3951, %v2436_v15  }
  0xac   :  { %v239_v17 = vpop.permute.xlu0 %238 }
  0xb4   :  { %v244_v29 = vpop.permute.xlu0 %243 }
  0xbc   :  { %v283_v16 = vpop.f32.mrf.mxu0  ;;  %v306_v18 = vpop.f32.mrf.mxu1 }
  0xbd   :  { %v4457_v19 = vadd.f32 %v283_v16, %v239_v17  ;;  %v4459_v20 = vadd.f32 %v306_v18, %v239_v17  ;;  %v475_v18 = vld [vmem:[#allocation2 + $0x138] sm:$0xff] }
  0xbe   :  { %554 = vmatpush.msrb.mxu2 %v475_v18  ;;  %v605_v18 = vld [vmem:[#allocation2 + $0x260] sm:$0xff] }
  0xbf   :  { %v358_v21 = vadd.f32 %v4459_v20, %v4457_v19 }
  0xc3   :  { %v329_v22 = vpop.f32.mrf.mxu2  ;;  %v352_v24 = vpop.f32.mrf.mxu3 }
  0xc4   :  { %v4463_v23 = vadd.f32 %v329_v22, %v239_v17  ;;  %v286_v25 = vpop.f32.mrf.mxu0  ;;  %v309_v26 = vpop.f32.mrf.mxu1  ;;  %v4465_v27 = vadd.f32 %v352_v24, %v239_v17  ;;  %v474_v24 = vld [vmem:[#allocation2 + $0x130] sm:$0xff] }
  0xc5   :  { %v4468_v30 = vadd.f32 %v286_v25, %v244_v29  ;;  %v4470_v31 = vadd.f32 %v309_v26, %v244_v29  ;;  %v490_v25 = vld [vmem:[#allocation2 + $0x1b0] sm:$0xff]  ;;  %555 = vmatpush.msrb.mxu2 %v474_v24  ;;  %v636_v24 = vld [vmem:[#allocation2 + $0x358] sm:$0xff] }
  0xc6   :  { %v359_v28 = vadd.f32 %v358_v21, %v4463_v23  ;;  %v458_v21 = vld [vmem:[#allocation2 + $0xb0] sm:$0xff] }
  0xc7   :  { %v363_v34 = vadd.f32 %v4470_v31, %v4468_v30  ;;  %532 = vmatpush.msrb.mxu1 %v458_v21  ;;  %v653_v21 = vld [vmem:[#allocation2 + $0x3e0] sm:$0xff] }
  0xc8   :  { %v360_v32 = vadd.f32 %v359_v28, %v4465_v27 }
  0xca   :  { %361 = vadd.xlane.f32.xlu1 %v360_v32 }
  0xcb   :  { %v332_v33 = vpop.f32.mrf.mxu2  ;;  %v355_v36 = vpop.f32.mrf.mxu3 }
  0xcc   :  { %v4475_v35 = vadd.f32 %v332_v33, %v244_v29  ;;  %v4477_v37 = vadd.f32 %v355_v36, %v244_v29  ;;  %v457_v33 = vld [vmem:[#allocation2 + $0xa8] sm:$0xff] }
  0xcd   :  { %v489_v36 = vld [vmem:[#allocation2 + $0x1a8] sm:$0xff]  ;;  %533 = vmatpush.msrb.mxu1 %v457_v33 }
  0xce   :  { %v364_v38 = vadd.f32 %v363_v34, %v4475_v35  ;;  %v473_v34 = vld [vmem:[#allocation2 + $0x128] sm:$0xff] }
  0xcf   :  { %556 = vmatpush.msrb.mxu2 %v473_v34  ;;  %534 = vmatpush.msrb.mxu1 %v456_v43  ;;  %v618_v33 = vld [vmem:[#allocation2 + $0x2c8] sm:$0xff]  ;;  %v633_v43 = vld [vmem:[#allocation2 + $0x340] sm:$0xff] }
  0xd0   :  { %v365_v39 = vadd.f32 %v364_v38, %v4477_v37  ;;  %v634_v34 = vld [vmem:[#allocation2 + $0x348] sm:$0xff] }
  0xd1   :  { %557 = vmatpush.msrb.mxu2 %v472_v44  ;;  %535 = vmatpush.msrb.mxu1 %v455_v47  ;;  %v649_v44 = vld [vmem:[#allocation2 + $0x3c0] sm:$0xff]  ;;  %v599_v47 = vld [vmem:[#allocation2 + $0x230] sm:$0xff] }
  0xd2   :  { %366 = vadd.xlane.f32.xlu1 %v365_v39 }
  0xd3   :  { %558 = vmatpush.msrb.mxu2 %v471_v48  ;;  %536 = vmatpush.msrb.mxu1 %v454_v52  ;;  %v615_v48 = vld [vmem:[#allocation2 + $0x2b0] sm:$0xff]  ;;  %v630_v52 = vld [vmem:[#allocation2 + $0x328] sm:$0xff] }
  0xd5   :  { %559 = vmatpush.msrb.mxu2 %v470_v53  ;;  %537 = vmatpush.msrb.mxu1 %v453_v58  ;;  %v646_v53 = vld [vmem:[#allocation2 + $0x3a8] sm:$0xff]  ;;  %v596_v58 = vld [vmem:[#allocation2 + $0x218] sm:$0xff] }
  0xd7   :  { %560 = vmatpush.msrb.mxu2 %v469_v59  ;;  %538 = vmatpush.msrb.mxu1 %v452_v63  ;;  %v612_v59 = vld [vmem:[#allocation2 + $0x298] sm:$0xff]  ;;  %v611_v63 = vld [vmem:[#allocation2 + $0x290] sm:$0xff] }
  0xd9   :  { %561 = vmatpush.msrb.mxu2 %v468_v0  ;;  %680 = vmatpush.msra.mxu1 %v624_v3  ;;  %v627_v0 = vld [vmem:[#allocation2 + $0x310] sm:$0xff]  ;;  %v610_v3 = vld [vmem:[#allocation2 + $0x288] sm:$0xff] }
  0xdb   :  { %681 = vmatpush.msra.mxu1 %v623_v7  ;;  %v609_v7 = vld [vmem:[#allocation2 + $0x280] sm:$0xff] }
  0xdd   :  { %682 = vmatpush.msra.mxu1 %v622_v14 }
 0x13d   :  { %v362_v2 = vpop.xlane.xlu1 %361 }
 0x13e   :  { %v368_v4 = vmul.f32 0.001953125, %v362_v2  ;;  %v608_v2 = vld [vmem:[#allocation2 + $0x278] sm:$0xff] }
 0x140   :  { %v4482_v8 = vsub.f32 %v4457_v19, %v368_v4  ;;  %v4485_v9 = vsub.f32 %v4459_v20, %v368_v4  ;;  %v4488_v10 = vsub.f32 %v4463_v23, %v368_v4  ;;  %v4491_v15 = vsub.f32 %v4465_v27, %v368_v4  ;;  %v491_v19 = vld [vmem:[#allocation2 + $0x1b8] sm:$0xff]  ;;  %v442_v20 = vld [vmem:[#allocation2 + $0x30] sm:$0xff]  ;;  %v441_v27 = vld [vmem:[#allocation2 + $0x28] sm:$0xff] }
 0x141   :  { %577 = vmatpush.msrb.mxu3 %v491_v19  ;;  %509 = vmatpush.msrb.mxu0 %v442_v20  ;;  %v640_v4 = vld [vmem:[#allocation2 + $0x378] sm:$0xff]  ;;  %v621_v19 = vld [vmem:[#allocation2 + $0x2e0] sm:$0xff] }
 0x142   :  { %v378_v16 = vmul.f32 %v4482_v8, %v4482_v8  ;;  %v379_v17 = vmul.f32 %v4485_v9, %v4485_v9  ;;  %v380_v22 = vmul.f32 %v4488_v10, %v4488_v10  ;;  %v381_v29 = vmul.f32 %v4491_v15, %v4491_v15  ;;  %703 = vmatpush.msra.mxu2 %v640_v4  ;;  %v637_v20 = vld [vmem:[#allocation2 + $0x360] sm:$0xff]  ;;  %v626_v4 = vld [vmem:[#allocation2 + $0x308] sm:$0xff] }
 0x143   :  { %578 = vmatpush.msrb.mxu3 %v490_v25  ;;  %510 = vmatpush.msrb.mxu0 %v441_v27  ;;  %v652_v25 = vld [vmem:[#allocation2 + $0x3d8] sm:$0xff]  ;;  %v619_v27 = vld [vmem:[#allocation2 + $0x2d0] sm:$0xff] }
 0x144   :  { %v386_v23 = vadd.f32 %v379_v17, %v378_v16  ;;  %v638_v16 = vld [vmem:[#allocation2 + $0x368] sm:$0xff]  ;;  %704 = vmatpush.msra.mxu2 %v639_v11  ;;  %683 = vmatpush.msra.mxu1 %v621_v19  ;;  %v625_v11 = vld [vmem:[#allocation2 + $0x300] sm:$0xff] }
 0x145   :  { %v367_v26 = vpop.xlane.xlu1 %366  ;;  %579 = vmatpush.msrb.mxu3 %v489_v36  ;;  %511 = vmatpush.msrb.mxu0 %v440_v42  ;;  %v654_v17 = vld [vmem:[#allocation2 + $0x3e8] sm:$0xff]  ;;  %v617_v42 = vld [vmem:[#allocation2 + $0x2c0] sm:$0xff] }
 0x146   :  { %v369_v28 = vmul.f32 0.001953125, %v367_v26  ;;  %v387_v32 = vadd.f32 %v386_v23, %v380_v22  ;;  %705 = vmatpush.msra.mxu2 %v638_v16  ;;  %v604_v22 = vld [vmem:[#allocation2 + $0x258] sm:$0xff]  ;;  %v603_v26 = vld [vmem:[#allocation2 + $0x250] sm:$0xff]  ;;  %v650_v36 = vld [vmem:[#allocation2 + $0x3c8] sm:$0xff] }
 0x147   :  { %580 = vmatpush.msrb.mxu3 %v488_v45  ;;  %v620_v23 = vld [vmem:[#allocation2 + $0x2d8] sm:$0xff] }
 0x148   :  { %v4502_v38 = vsub.f32 %v4468_v30, %v369_v28  ;;  %v4505_v39 = vsub.f32 %v4470_v31, %v369_v28  ;;  %v388_v40 = vadd.f32 %v387_v32, %v381_v29  ;;  %v4508_v41 = vsub.f32 %v4475_v35, %v369_v28  ;;  %v439_v35 = vld [vmem:[#allocation2 + $0x18] sm:$0xff]  ;;  %706 = vmatpush.msra.mxu2 %v637_v20  ;;  %v651_v29 = vld [vmem:[#allocation2 + $0x3d0] sm:$0xff]  ;;  %v602_v32 = vld [vmem:[#allocation2 + $0x248] sm:$0xff] }
 0x149   :  { %v4511_v46 = vsub.f32 %v4477_v37, %v369_v28  ;;  %v438_v37 = vld [vmem:[#allocation2 + $0x10] sm:$0xff]  ;;  %512 = vmatpush.msrb.mxu0 %v439_v35  ;;  %581 = vmatpush.msrb.mxu3 %v487_v49  ;;  %v600_v45 = vld [vmem:[#allocation2 + $0x238] sm:$0xff] }
 0x14a   :  { %389 = vadd.xlane.f32.xlu2 %v388_v40  ;;  %v382_v30 = vmul.f32 %v4502_v38, %v4502_v38  ;;  %v383_v31 = vmul.f32 %v4505_v39, %v4505_v39  ;;  %v384_v50 = vmul.f32 %v4508_v41, %v4508_v41  ;;  %684 = vmatpush.msra.mxu1 %v620_v23  ;;  %v635_v28 = vld [vmem:[#allocation2 + $0x350] sm:$0xff]  ;;  %v601_v40 = vld [vmem:[#allocation2 + $0x240] sm:$0xff]  ;;  %v648_v35 = vld [vmem:[#allocation2 + $0x3b8] sm:$0xff] }
 0x14b   :  { %v385_v55 = vmul.f32 %v4511_v46, %v4511_v46  ;;  %513 = vmatpush.msrb.mxu0 %v438_v37  ;;  %582 = vmatpush.msrb.mxu3 %v486_v54  ;;  %v631_v49 = vld [vmem:[#allocation2 + $0x330] sm:$0xff]  ;;  %v614_v37 = vld [vmem:[#allocation2 + $0x2a8] sm:$0xff]  ;;  %v597_v54 = vld [vmem:[#allocation2 + $0x220] sm:$0xff] }
 0x14c   :  { %v391_v51 = vadd.f32 %v383_v31, %v382_v30  ;;  %707 = vmatpush.msra.mxu2 %v636_v24  ;;  %685 = vmatpush.msra.mxu1 %v619_v27  ;;  %v616_v30 = vld [vmem:[#allocation2 + $0x2b8] sm:$0xff] }
 0x14d   :  { %514 = vmatpush.msrb.mxu0 %v437_v57  ;;  %583 = vmatpush.msrb.mxu3 %v485_v61  ;;  %v632_v31 = vld [vmem:[#allocation2 + $0x338] sm:$0xff]  ;;  %v645_v57 = vld [vmem:[#allocation2 + $0x3a0] sm:$0xff] }
 0x14e   :  { %v392_v56 = vadd.f32 %v391_v51, %v384_v50  ;;  %708 = vmatpush.msra.mxu2 %v635_v28  ;;  %686 = vmatpush.msra.mxu1 %v618_v33  ;;  %v647_v50 = vld [vmem:[#allocation2 + $0x3b0] sm:$0xff]  ;;  %v598_v51 = vld [vmem:[#allocation2 + $0x228] sm:$0xff]  ;;  %v644_v61 = vld [vmem:[#allocation2 + $0x398] sm:$0xff] }
 0x14f   :  { %515 = vmatpush.msrb.mxu0 %v436_v62  ;;  %584 = vmatpush.msrb.mxu3 %v484_v1  ;;  %v595_v62 = vld [vmem:[#allocation2 + $0x210] sm:$0xff] }
 0x150   :  { %v393_v60 = vadd.f32 %v392_v56, %v385_v55  ;;  %709 = vmatpush.msra.mxu2 %v634_v34  ;;  %687 = vmatpush.msra.mxu1 %v617_v42  ;;  %v613_v55 = vld [vmem:[#allocation2 + $0x2a0] sm:$0xff]  ;;  %v643_v1 = vld [vmem:[#allocation2 + $0x390] sm:$0xff] }
 0x151   :  { %657 = vmatpush.msra.mxu0 %v608_v2  ;;  %726 = vmatpush.msra.mxu3 %v656_v5  ;;  %v629_v56 = vld [vmem:[#allocation2 + $0x320] sm:$0xff]  ;;  %v594_v2 = vld [vmem:[#allocation2 + $0x208] sm:$0xff] }
 0x152   :  { %394 = vadd.xlane.f32.xlu2 %v393_v60  ;;  %710 = vmatpush.msra.mxu2 %v633_v43  ;;  %v628_v60 = vld [vmem:[#allocation2 + $0x318] sm:$0xff]  ;;  %v642_v5 = vld [vmem:[#allocation2 + $0x388] sm:$0xff] }
 0x153   :  { %658 = vmatpush.msra.mxu0 %v607_v6  ;;  %727 = vmatpush.msra.mxu3 %v655_v12  ;;  %v593_v6 = vld [vmem:[#allocation2 + $0x200] sm:$0xff] }
 0x154   :  { %688 = vmatpush.msra.mxu1 %v616_v30  ;;  %711 = vmatpush.msra.mxu2 %v632_v31  ;;  %v641_v12 = vld [vmem:[#allocation2 + $0x380] sm:$0xff]  ;;  %v765_v31 = vld [vmem:[#allocation2 + $0x478] sm:$0xff] }
 0x155   :  { %659 = vmatpush.msra.mxu0 %v606_v13  ;;  %728 = vmatpush.msra.mxu3 %v654_v17 }
 0x156   :  { %689 = vmatpush.msra.mxu1 %v615_v48  ;;  %712 = vmatpush.msra.mxu2 %v631_v49  ;;  %v796_v48 = vld [vmem:[#allocation2 + $0x570] sm:$0xff] }
 0x157   :  { %660 = vmatpush.msra.mxu0 %v605_v18  ;;  %729 = vmatpush.msra.mxu3 %v653_v21  ;;  %v812_v49 = vld [vmem:[#allocation2 + $0x5f0] sm:$0xff] }
 0x158   :  { %690 = vmatpush.msra.mxu1 %v614_v37  ;;  %713 = vmatpush.msra.mxu2 %v630_v52  ;;  %v779_v37 = vld [vmem:[#allocation2 + $0x4e8] sm:$0xff] }
 0x159   :  { %661 = vmatpush.msra.mxu0 %v604_v22  ;;  %730 = vmatpush.msra.mxu3 %v652_v25  ;;  %v795_v52 = vld [vmem:[#allocation2 + $0x568] sm:$0xff] }
 0x15a   :  { %691 = vmatpush.msra.mxu1 %v613_v55  ;;  %714 = vmatpush.msra.mxu2 %v629_v56 }
 0x15b   :  { %662 = vmatpush.msra.mxu0 %v603_v26  ;;  %731 = vmatpush.msra.mxu3 %v651_v29 }
 0x15c   :  { %692 = vmatpush.msra.mxu1 %v612_v59  ;;  %715 = vmatpush.msra.mxu2 %v628_v60  ;;  %v794_v60 = vld [vmem:[#allocation2 + $0x560] sm:$0xff] }
 0x15d   :  { %663 = vmatpush.msra.mxu0 %v602_v32  ;;  %732 = vmatpush.msra.mxu3 %v650_v36 }
 0x15e   :  { %693 = vmatpush.msra.mxu1 %v611_v63  ;;  %716 = vmatpush.msra.mxu2 %v627_v0  ;;  %v793_v0 = vld [vmem:[#allocation2 + $0x558] sm:$0xff] }
 0x15f   :  { %664 = vmatpush.msra.mxu0 %v601_v40  ;;  %733 = vmatpush.msra.mxu3 %v649_v44 }
 0x160   :  { %694 = vmatpush.msra.mxu1 %v610_v3  ;;  %717 = vmatpush.msra.mxu2 %v626_v4  ;;  %v776_v3 = vld [vmem:[#allocation2 + $0x4d0] sm:$0xff] }
 0x161   :  { %665 = vmatpush.msra.mxu0 %v600_v45  ;;  %734 = vmatpush.msra.mxu3 %v648_v35  ;;  %v781_v35 = vld [vmem:[#allocation2 + $0x4f8] sm:$0xff]  ;;  %v792_v4 = vld [vmem:[#allocation2 + $0x550] sm:$0xff] }
 0x162   :  { %695 = vmatpush.msra.mxu1 %v609_v7  ;;  %718 = vmatpush.msra.mxu2 %v625_v11  ;;  %v775_v7 = vld [vmem:[#allocation2 + $0x4c8] sm:$0xff] }
 0x163   :  { %666 = vmatpush.msra.mxu0 %v599_v47  ;;  %735 = vmatpush.msra.mxu3 %v647_v50  ;;  %v780_v47 = vld [vmem:[#allocation2 + $0x4f0] sm:$0xff]  ;;  %v791_v11 = vld [vmem:[#allocation2 + $0x548] sm:$0xff] }
 0x165   :  { %667 = vmatpush.msra.mxu0 %v598_v51  ;;  %736 = vmatpush.msra.mxu3 %v646_v53  ;;  %v763_v51 = vld [vmem:[#allocation2 + $0x468] sm:$0xff] }
 0x166   :  { %v811_v53 = vld [vmem:[#allocation2 + $0x5e8] sm:$0xff] }
 0x167   :  { %668 = vmatpush.msra.mxu0 %v597_v54  ;;  %737 = vmatpush.msra.mxu3 %v645_v57  ;;  %v762_v57 = vld [vmem:[#allocation2 + $0x460] sm:$0xff] }
 0x169   :  { %669 = vmatpush.msra.mxu0 %v596_v58  ;;  %738 = vmatpush.msra.mxu3 %v644_v61  ;;  %v778_v58 = vld [vmem:[#allocation2 + $0x4e0] sm:$0xff] }
 0x16a   :  { %v810_v61 = vld [vmem:[#allocation2 + $0x5e0] sm:$0xff] }
 0x16b   :  { %670 = vmatpush.msra.mxu0 %v595_v62  ;;  %739 = vmatpush.msra.mxu3 %v643_v1  ;;  %v809_v1 = vld [vmem:[#allocation2 + $0x5d8] sm:$0xff] }
 0x16d   :  { %671 = vmatpush.msra.mxu0 %v594_v2  ;;  %740 = vmatpush.msra.mxu3 %v642_v5  ;;  %v760_v2 = vld [vmem:[#allocation2 + $0x450] sm:$0xff] }
 0x16e   :  { %v808_v5 = vld [vmem:[#allocation2 + $0x5d0] sm:$0xff] }
 0x16f   :  { %672 = vmatpush.msra.mxu0 %v593_v6  ;;  %741 = vmatpush.msra.mxu3 %v641_v12  ;;  %v759_v6 = vld [vmem:[#allocation2 + $0x448] sm:$0xff] }
 0x170   :  { %v807_v12 = vld [vmem:[#allocation2 + $0x5c8] sm:$0xff] }
 0x1bd   :  { %v390_v13 = vpop.xlane.xlu2 %389 }
 0x1be   :  { %v396_v14 = vmul.f32 0.001953125, %v390_v13  ;;  %v758_v13 = vld [vmem:[#allocation2 + $0x440] sm:$0xff] }
 0x1c0   :  { %v398_v16 = vadd.f32 1e-05, %v396_v14  ;;  %v774_v14 = vld [vmem:[#allocation2 + $0x4c0] sm:$0xff] }
 0x1c2   :  { %3954 = vrsqrt.f32 %v398_v16  ;;  %vm406_vm3 = vweird.f32 %v398_v16 }
 0x1c5   :  { %v395_v17 = vpop.xlane.xlu2 %394 }
 0x1c6   :  { %v397_v18 = vmul.f32 0.001953125, %v395_v17  ;;  %v806_v17 = vld [vmem:[#allocation2 + $0x5c0] sm:$0xff] }
 0x1c8   :  { %v3955_v19 = vpop.eup %3954  ;;  %v399_v20 = vadd.f32 1e-05, %v397_v18  ;;  %v757_v18 = vld [vmem:[#allocation2 + $0x438] sm:$0xff] }
 0x1c9   :  { %v401_v21 = vmul.f32 %v3955_v19, %v398_v16  ;;  %vm407_vm2 = vweird.f32 %v3955_v19  ;;  %v790_v16 = vld [vmem:[#allocation2 + $0x540] sm:$0xff] }
 0x1ca   :  { %3956 = vrsqrt.f32 %v399_v20  ;;  %vm408_vm4 = vmor %vm406_vm3, %vm407_vm2  ;;  %vm416_vm6 = vweird.f32 %v399_v20 }
 0x1cb   :  { %v402_v22 = vmul.f32 %v3955_v19, %v401_v21  ;;  %v805_v21 = vld [vmem:[#allocation2 + $0x5b8] sm:$0xff] }
 0x1cd   :  { %v403_v23 = vmul.f32 0.5, %v402_v22  ;;  %v756_v22 = vld [vmem:[#allocation2 + $0x430] sm:$0xff] }
 0x1cf   :  { %v404_v24 = vsub.f32 1.5, %v403_v23  ;;  %v772_v23 = vld [vmem:[#allocation2 + $0x4b0] sm:$0xff] }
 0x1d0   :  { %v3957_v25 = vpop.eup %3956 }
 0x1d1   :  { %v405_v26 = vmul.f32 %v3955_v19, %v404_v24  ;;  %v411_v27 = vmul.f32 %v3957_v25, %v399_v20  ;;  %vm417_vm5 = vweird.f32 %v3957_v25  ;;  %v789_v20 = vld [vmem:[#allocation2 + $0x538] sm:$0xff]  ;;  %v788_v24 = vld [vmem:[#allocation2 + $0x530] sm:$0xff] }
 0x1d2   :  { %vm418_vm7 = vmor %vm416_vm6, %vm417_vm5 }
 0x1d3   :  { %v409_v28 = vsel %vm408_vm4, %v3955_v19, %v405_v26  ;;  %v412_v29 = vmul.f32 %v3957_v25, %v411_v27  ;;  %v773_v19 = vld [vmem:[#allocation2 + $0x4b8] sm:$0xff]  ;;  %v755_v26 = vld [vmem:[#allocation2 + $0x428] sm:$0xff] }
 0x1d4   :  { %v420_v32 = vmul.f32 %v409_v28, %v4482_v8  ;;  %v421_v33 = vmul.f32 %v409_v28, %v4485_v9  ;;  %v422_v34 = vmul.f32 %v409_v28, %v4488_v10  ;;  %v423_v36 = vmul.f32 %v409_v28, %v4491_v15  ;;  %v797_v8 = vld [vmem:[#allocation2 + $0x578] sm:$0xff]  ;;  %v764_v15 = vld [vmem:[#allocation2 + $0x470] sm:$0xff]  ;;  %v771_v27 = vld [vmem:[#allocation2 + $0x4a8] sm:$0xff] }
 0x1d5   :  { %v413_v40 = vmul.f32 0.5, %v412_v29  ;;  %v813_v9 = vld [vmem:[#allocation2 + $0x5f8] sm:$0xff]  ;;  %v787_v28 = vld [vmem:[#allocation2 + $0x528] sm:$0xff] }
 0x1d6   :  { %v4525_v42 = vmax.f32 %v420_v32, 0.0  ;;  %v4527_v43 = vmax.f32 %v421_v33, 0.0  ;;  %v4529_v44 = vmax.f32 %v422_v34, 0.0  ;;  %v4531_v45 = vmax.f32 %v423_v36, 0.0  ;;  %v803_v29 = vld [vmem:[#allocation2 + $0x5a8] sm:$0xff]  ;;  %v754_v32 = vld [vmem:[#allocation2 + $0x420] sm:$0xff] }
 0x1d7   :  { %v414_v30 = vsub.f32 1.5, %v413_v40  ;;  %v770_v33 = vld [vmem:[#allocation2 + $0x4a0] sm:$0xff]  ;;  %v753_v40 = vld [vmem:[#allocation2 + $0x418] sm:$0xff] }
 0x1d8   :  { %516 = vmatmul.f32.vlgmr.msrb.gmra.mxu0 %v4525_v42  ;;  %539 = vmatmul.f32.vlgmr.msrb.gmra.mxu1 %v4527_v43  ;;  %v786_v34 = vld [vmem:[#allocation2 + $0x520] sm:$0xff] }
 0x1d9   :  { %v415_v10 = vmul.f32 %v3957_v25, %v414_v30  ;;  %562 = vmatmul.f32.vlgmr.msrb.gmra.mxu2 %v4529_v44  ;;  %585 = vmatmul.f32.vlgmr.msrb.gmra.mxu3 %v4531_v45  ;;  %v802_v36 = vld [vmem:[#allocation2 + $0x5a0] sm:$0xff]  ;;  %v769_v30 = vld [vmem:[#allocation2 + $0x498] sm:$0xff] }
 0x1da   :  { %814 = vmatpush.msrb.mxu0 %v765_v31  ;;  %837 = vmatpush.msrb.mxu1 %v781_v35  ;;  %v785_v31 = vld [vmem:[#allocation2 + $0x518] sm:$0xff] }
 0x1db   :  { %v419_v50 = vsel %vm418_vm7, %v3957_v25, %v415_v10  ;;  %860 = vmatpush.msrb.mxu2 %v797_v8  ;;  %883 = vmatpush.msrb.mxu3 %v813_v9  ;;  %v804_v25 = vld [vmem:[#allocation2 + $0x5b0] sm:$0xff]  ;;  %v801_v35 = vld [vmem:[#allocation2 + $0x598] sm:$0xff] }
 0x1dc   :  { %815 = vmatpush.msrb.mxu0 %v764_v15  ;;  %838 = vmatpush.msrb.mxu1 %v780_v47  ;;  %v424_v54 = vmul.f32 %v419_v50, %v4502_v38  ;;  %v425_v55 = vmul.f32 %v419_v50, %v4505_v39  ;;  %v426_v56 = vmul.f32 %v419_v50, %v4508_v41  ;;  %v761_v41 = vld [vmem:[#allocation2 + $0x458] sm:$0xff]  ;;  %v752_v8 = vld [vmem:[#allocation2 + $0x410] sm:$0xff]  ;;  %v751_v47 = vld [vmem:[#allocation2 + $0x408] sm:$0xff] }
 0x1dd   :  { %861 = vmatpush.msrb.mxu2 %v796_v48  ;;  %884 = vmatpush.msrb.mxu3 %v812_v49  ;;  %v427_v59 = vmul.f32 %v419_v50, %v4511_v46  ;;  %v777_v46 = vld [vmem:[#allocation2 + $0x4d8] sm:$0xff]  ;;  %v768_v9 = vld [vmem:[#allocation2 + $0x490] sm:$0xff]  ;;  %v767_v48 = vld [vmem:[#allocation2 + $0x488] sm:$0xff] }
 0x1de   :  { %816 = vmatpush.msrb.mxu0 %v763_v51  ;;  %839 = vmatpush.msrb.mxu1 %v779_v37  ;;  %v4541_v62 = vmax.f32 %v424_v54, 0.0  ;;  %v4543_v63 = vmax.f32 %v425_v55, 0.0  ;;  %v4545_v38 = vmax.f32 %v426_v56, 0.0  ;;  %v784_v10 = vld [vmem:[#allocation2 + $0x510] sm:$0xff]  ;;  %v783_v49 = vld [vmem:[#allocation2 + $0x508] sm:$0xff]  ;;  %v750_v51 = vld [vmem:[#allocation2 + $0x400] sm:$0xff] }
 0x1df   :  { %862 = vmatpush.msrb.mxu2 %v795_v52  ;;  %885 = vmatpush.msrb.mxu3 %v811_v53  ;;  %v4547_v39 = vmax.f32 %v427_v59, 0.0  ;;  %v800_v15 = vld [vmem:[#allocation2 + $0x590] sm:$0xff]  ;;  %v799_v50 = vld [vmem:[#allocation2 + $0x588] sm:$0xff]  ;;  %v766_v37 = vld [vmem:[#allocation2 + $0x480] sm:$0xff] }
 0x1e0   :  { %817 = vmatpush.msrb.mxu0 %v762_v57  ;;  %840 = vmatpush.msrb.mxu1 %v778_v58  ;;  %v782_v52 = vld [vmem:[#allocation2 + $0x500] sm:$0xff]  ;;  %v922_v54 = vld [vmem:[#allocation2 + $0x678] sm:$0xff]  ;;  %v921_v58 = vld [vmem:[#allocation2 + $0x670] sm:$0xff] }
 0x1e1   :  { %863 = vmatpush.msrb.mxu2 %v794_v60  ;;  %886 = vmatpush.msrb.mxu3 %v810_v61  ;;  %v798_v53 = vld [vmem:[#allocation2 + $0x580] sm:$0xff]  ;;  %v938_v55 = vld [vmem:[#allocation2 + $0x6f8] sm:$0xff]  ;;  %v937_v59 = vld [vmem:[#allocation2 + $0x6f0] sm:$0xff] }
 0x1e2   :  { %519 = vmatmul.f32.gmra.mxu0 %v4541_v62  ;;  %542 = vmatmul.f32.gmra.mxu1 %v4543_v63  ;;  %v954_v56 = vld [vmem:[#allocation2 + $0x778] sm:$0xff]  ;;  %v953_v60 = vld [vmem:[#allocation2 + $0x770] sm:$0xff] }
 0x1e3   :  { %565 = vmatmul.f32.gmra.mxu2 %v4545_v38  ;;  %588 = vmatmul.f32.gmra.mxu3 %v4547_v39  ;;  %v970_v57 = vld [vmem:[#allocation2 + $0x7f8] sm:$0xff]  ;;  %v969_v61 = vld [vmem:[#allocation2 + $0x7f0] sm:$0xff] }
 0x1e4   :  { %818 = vmatpush.msrb.mxu0 %v761_v41  ;;  %841 = vmatpush.msrb.mxu1 %v777_v46  ;;  %v920_v41 = vld [vmem:[#allocation2 + $0x668] sm:$0xff] }
 0x1e5   :  { %864 = vmatpush.msrb.mxu2 %v793_v0  ;;  %887 = vmatpush.msrb.mxu3 %v809_v1  ;;  %v936_v46 = vld [vmem:[#allocation2 + $0x6e8] sm:$0xff] }
 0x1e6   :  { %819 = vmatpush.msrb.mxu0 %v760_v2  ;;  %842 = vmatpush.msrb.mxu1 %v776_v3  ;;  %v952_v0 = vld [vmem:[#allocation2 + $0x768] sm:$0xff]  ;;  %v919_v2 = vld [vmem:[#allocation2 + $0x660] sm:$0xff] }
 0x1e7   :  { %865 = vmatpush.msrb.mxu2 %v792_v4  ;;  %888 = vmatpush.msrb.mxu3 %v808_v5  ;;  %v968_v1 = vld [vmem:[#allocation2 + $0x7e8] sm:$0xff]  ;;  %v935_v3 = vld [vmem:[#allocation2 + $0x6e0] sm:$0xff] }
 0x1e8   :  { %820 = vmatpush.msrb.mxu0 %v759_v6  ;;  %843 = vmatpush.msrb.mxu1 %v775_v7  ;;  %v951_v4 = vld [vmem:[#allocation2 + $0x760] sm:$0xff]  ;;  %v918_v6 = vld [vmem:[#allocation2 + $0x658] sm:$0xff] }
 0x1e9   :  { %866 = vmatpush.msrb.mxu2 %v791_v11  ;;  %889 = vmatpush.msrb.mxu3 %v807_v12  ;;  %v967_v5 = vld [vmem:[#allocation2 + $0x7e0] sm:$0xff]  ;;  %v934_v7 = vld [vmem:[#allocation2 + $0x6d8] sm:$0xff] }
 0x1ea   :  { %821 = vmatpush.msrb.mxu0 %v758_v13  ;;  %844 = vmatpush.msrb.mxu1 %v774_v14  ;;  %v950_v11 = vld [vmem:[#allocation2 + $0x758] sm:$0xff]  ;;  %v917_v13 = vld [vmem:[#allocation2 + $0x650] sm:$0xff] }
 0x1eb   :  { %867 = vmatpush.msrb.mxu2 %v790_v16  ;;  %890 = vmatpush.msrb.mxu3 %v806_v17  ;;  %v966_v12 = vld [vmem:[#allocation2 + $0x7d8] sm:$0xff]  ;;  %v933_v14 = vld [vmem:[#allocation2 + $0x6d0] sm:$0xff] }
 0x1ec   :  { %673 = vmatmul.f32.vlgmr.msra.gmra.mxu0 %v4525_v42  ;;  %696 = vmatmul.f32.vlgmr.msra.gmra.mxu1 %v4527_v43  ;;  %v949_v16 = vld [vmem:[#allocation2 + $0x750] sm:$0xff] }
 0x1ed   :  { %719 = vmatmul.f32.vlgmr.msra.gmra.mxu2 %v4529_v44  ;;  %742 = vmatmul.f32.vlgmr.msra.gmra.mxu3 %v4531_v45  ;;  %v965_v17 = vld [vmem:[#allocation2 + $0x7d0] sm:$0xff] }
 0x1ee   :  { %822 = vmatpush.msrb.mxu0 %v757_v18  ;;  %845 = vmatpush.msrb.mxu1 %v773_v19  ;;  %v916_v18 = vld [vmem:[#allocation2 + $0x648] sm:$0xff] }
 0x1ef   :  { %868 = vmatpush.msrb.mxu2 %v789_v20  ;;  %891 = vmatpush.msrb.mxu3 %v805_v21  ;;  %v932_v19 = vld [vmem:[#allocation2 + $0x6c8] sm:$0xff] }
 0x1f0   :  { %823 = vmatpush.msrb.mxu0 %v756_v22  ;;  %846 = vmatpush.msrb.mxu1 %v772_v23  ;;  %v948_v20 = vld [vmem:[#allocation2 + $0x748] sm:$0xff]  ;;  %v915_v22 = vld [vmem:[#allocation2 + $0x640] sm:$0xff] }
 0x1f1   :  { %869 = vmatpush.msrb.mxu2 %v788_v24  ;;  %892 = vmatpush.msrb.mxu3 %v804_v25  ;;  %v964_v21 = vld [vmem:[#allocation2 + $0x7c8] sm:$0xff]  ;;  %v931_v23 = vld [vmem:[#allocation2 + $0x6c0] sm:$0xff] }
 0x1f2   :  { %824 = vmatpush.msrb.mxu0 %v755_v26  ;;  %847 = vmatpush.msrb.mxu1 %v771_v27  ;;  %v947_v24 = vld [vmem:[#allocation2 + $0x740] sm:$0xff]  ;;  %v914_v26 = vld [vmem:[#allocation2 + $0x638] sm:$0xff] }
 0x1f3   :  { %870 = vmatpush.msrb.mxu2 %v787_v28  ;;  %893 = vmatpush.msrb.mxu3 %v803_v29  ;;  %v963_v25 = vld [vmem:[#allocation2 + $0x7c0] sm:$0xff]  ;;  %v930_v27 = vld [vmem:[#allocation2 + $0x6b8] sm:$0xff] }
 0x1f4   :  { %825 = vmatpush.msrb.mxu0 %v754_v32  ;;  %848 = vmatpush.msrb.mxu1 %v770_v33  ;;  %v946_v28 = vld [vmem:[#allocation2 + $0x738] sm:$0xff]  ;;  %v913_v32 = vld [vmem:[#allocation2 + $0x630] sm:$0xff] }
 0x1f5   :  { %871 = vmatpush.msrb.mxu2 %v786_v34  ;;  %894 = vmatpush.msrb.mxu3 %v802_v36  ;;  %v962_v29 = vld [vmem:[#allocation2 + $0x7b8] sm:$0xff]  ;;  %v929_v33 = vld [vmem:[#allocation2 + $0x6b0] sm:$0xff] }
 0x1f6   :  { %676 = vmatmul.f32.gmra.mxu0 %v4541_v62  ;;  %699 = vmatmul.f32.gmra.mxu1 %v4543_v63  ;;  %v945_v34 = vld [vmem:[#allocation2 + $0x730] sm:$0xff] }
 0x1f7   :  { %722 = vmatmul.f32.gmra.mxu2 %v4545_v38  ;;  %745 = vmatmul.f32.gmra.mxu3 %v4547_v39  ;;  %v961_v36 = vld [vmem:[#allocation2 + $0x7b0] sm:$0xff] }
 0x1f8   :  { %826 = vmatpush.msrb.mxu0 %v753_v40  ;;  %849 = vmatpush.msrb.mxu1 %v769_v30  ;;  %v912_v40 = vld [vmem:[#allocation2 + $0x628] sm:$0xff] }
 0x1f9   :  { %872 = vmatpush.msrb.mxu2 %v785_v31  ;;  %895 = vmatpush.msrb.mxu3 %v801_v35  ;;  %v928_v30 = vld [vmem:[#allocation2 + $0x6a8] sm:$0xff] }
 0x1fa   :  { %827 = vmatpush.msrb.mxu0 %v752_v8  ;;  %850 = vmatpush.msrb.mxu1 %v768_v9  ;;  %v944_v31 = vld [vmem:[#allocation2 + $0x728] sm:$0xff]  ;;  %v911_v8 = vld [vmem:[#allocation2 + $0x620] sm:$0xff] }
 0x1fb   :  { %873 = vmatpush.msrb.mxu2 %v784_v10  ;;  %896 = vmatpush.msrb.mxu3 %v800_v15  ;;  %v960_v35 = vld [vmem:[#allocation2 + $0x7a8] sm:$0xff]  ;;  %v927_v9 = vld [vmem:[#allocation2 + $0x6a0] sm:$0xff] }
 0x1fc   :  { %828 = vmatpush.msrb.mxu0 %v751_v47  ;;  %851 = vmatpush.msrb.mxu1 %v767_v48  ;;  %v943_v10 = vld [vmem:[#allocation2 + $0x720] sm:$0xff]  ;;  %v910_v47 = vld [vmem:[#allocation2 + $0x618] sm:$0xff] }
 0x1fd   :  { %874 = vmatpush.msrb.mxu2 %v783_v49  ;;  %897 = vmatpush.msrb.mxu3 %v799_v50  ;;  %v959_v15 = vld [vmem:[#allocation2 + $0x7a0] sm:$0xff]  ;;  %v926_v48 = vld [vmem:[#allocation2 + $0x698] sm:$0xff] }
 0x1fe   :  { %829 = vmatpush.msrb.mxu0 %v750_v51  ;;  %852 = vmatpush.msrb.mxu1 %v766_v37  ;;  %v942_v49 = vld [vmem:[#allocation2 + $0x718] sm:$0xff]  ;;  %v909_v51 = vld [vmem:[#allocation2 + $0x610] sm:$0xff] }
 0x1ff   :  { %875 = vmatpush.msrb.mxu2 %v782_v52  ;;  %898 = vmatpush.msrb.mxu3 %v798_v53  ;;  %v958_v50 = vld [vmem:[#allocation2 + $0x798] sm:$0xff]  ;;  %v925_v37 = vld [vmem:[#allocation2 + $0x690] sm:$0xff] }
 0x200   :  { %971 = vmatpush.msra.mxu0 %v922_v54  ;;  %994 = vmatpush.msra.mxu1 %v938_v55  ;;  %v941_v52 = vld [vmem:[#allocation2 + $0x710] sm:$0xff]  ;;  %v908_v54 = vld [vmem:[#allocation2 + $0x608] sm:$0xff] }
 0x201   :  { %1017 = vmatpush.msra.mxu2 %v954_v56  ;;  %1040 = vmatpush.msra.mxu3 %v970_v57  ;;  %v957_v53 = vld [vmem:[#allocation2 + $0x790] sm:$0xff]  ;;  %v924_v55 = vld [vmem:[#allocation2 + $0x688] sm:$0xff] }
 0x202   :  { %830 = vmatmul.f32.vlgmr.msrb.gmra.mxu0 %v4525_v42  ;;  %853 = vmatmul.f32.vlgmr.msrb.gmra.mxu1 %v4527_v43  ;;  %v940_v56 = vld [vmem:[#allocation2 + $0x708] sm:$0xff] }
 0x203   :  { %876 = vmatmul.f32.vlgmr.msrb.gmra.mxu2 %v4529_v44  ;;  %899 = vmatmul.f32.vlgmr.msrb.gmra.mxu3 %v4531_v45  ;;  %v956_v57 = vld [vmem:[#allocation2 + $0x788] sm:$0xff] }
 0x204   :  { %972 = vmatpush.msra.mxu0 %v921_v58  ;;  %995 = vmatpush.msra.mxu1 %v937_v59  ;;  %v907_v58 = vld [vmem:[#allocation2 + $0x600] sm:$0xff] }
 0x205   :  { %1018 = vmatpush.msra.mxu2 %v953_v60  ;;  %1041 = vmatpush.msra.mxu3 %v969_v61  ;;  %v923_v59 = vld [vmem:[#allocation2 + $0x680] sm:$0xff] }
 0x206   :  { %973 = vmatpush.msra.mxu0 %v920_v41  ;;  %996 = vmatpush.msra.mxu1 %v936_v46  ;;  %v939_v60 = vld [vmem:[#allocation2 + $0x700] sm:$0xff]  ;;  %v1157_v46 = vld [vmem:[#allocation6 + $0xf0] sm:$0xff] }
 0x207   :  { %1019 = vmatpush.msra.mxu2 %v952_v0  ;;  %1042 = vmatpush.msra.mxu3 %v968_v1  ;;  %v955_v61 = vld [vmem:[#allocation2 + $0x780] sm:$0xff]  ;;  %v1156_v0 = vld [vmem:[#allocation6 + $0xe8] sm:$0xff] }
 0x208   :  { %974 = vmatpush.msra.mxu0 %v919_v2  ;;  %997 = vmatpush.msra.mxu1 %v935_v3  ;;  %v1158_v41 = vld [vmem:[#allocation6 + $0xf8] sm:$0xff]  ;;  %v1147_v3 = vld [vmem:[#allocation6 + $0xa0] sm:$0xff] }
 0x209   :  { %1020 = vmatpush.msra.mxu2 %v951_v4  ;;  %1043 = vmatpush.msra.mxu3 %v967_v5  ;;  %v1146_v4 = vld [vmem:[#allocation6 + $0x98] sm:$0xff]  ;;  %v1145_v5 = vld [vmem:[#allocation6 + $0x90] sm:$0xff] }
 0x20a   :  { %975 = vmatpush.msra.mxu0 %v918_v6  ;;  %998 = vmatpush.msra.mxu1 %v934_v7  ;;  %v1144_v6 = vld [vmem:[#allocation6 + $0x88] sm:$0xff] }
 0x20b   :  { %1021 = vmatpush.msra.mxu2 %v950_v11  ;;  %1044 = vmatpush.msra.mxu3 %v966_v12  ;;  %v1086_v12 = vld [vmem:[#allocation6 + $0x78] sm:$0xff] }
 0x20c   :  { %833 = vmatmul.f32.gmra.mxu0 %v4541_v62  ;;  %856 = vmatmul.f32.gmra.mxu1 %v4543_v63 }
 0x20d   :  { %879 = vmatmul.f32.gmra.mxu2 %v4545_v38  ;;  %902 = vmatmul.f32.gmra.mxu3 %v4547_v39 }
 0x20e   :  { %976 = vmatpush.msra.mxu0 %v917_v13  ;;  %999 = vmatpush.msra.mxu1 %v933_v14  ;;  %v1143_v13 = vld [vmem:[#allocation6 + $0x80] sm:$0xff] }
 0x20f   :  { %1022 = vmatpush.msra.mxu2 %v949_v16  ;;  %1045 = vmatpush.msra.mxu3 %v965_v17  ;;  %v1356_v17 = vld [vmem:[#allocation6 + $0x278] sm:$0xff] }
 0x210   :  { %977 = vmatpush.msra.mxu0 %v916_v18  ;;  %1000 = vmatpush.msra.mxu1 %v932_v19  ;;  %v1085_v18 = vld [vmem:[#allocation6 + $0x70] sm:$0xff] }
 0x211   :  { %1023 = vmatpush.msra.mxu2 %v948_v20  ;;  %1046 = vmatpush.msra.mxu3 %v964_v21  ;;  %v1355_v19 = vld [vmem:[#allocation6 + $0x270] sm:$0xff]  ;;  %v1084_v20 = vld [vmem:[#allocation6 + $0x68] sm:$0xff] }
 0x212   :  { %978 = vmatpush.msra.mxu0 %v915_v22  ;;  %1001 = vmatpush.msra.mxu1 %v931_v23  ;;  %v1354_v21 = vld [vmem:[#allocation6 + $0x268] sm:$0xff]  ;;  %v1083_v22 = vld [vmem:[#allocation6 + $0x60] sm:$0xff] }
 0x213   :  { %1024 = vmatpush.msra.mxu2 %v947_v24  ;;  %1047 = vmatpush.msra.mxu3 %v963_v25  ;;  %v1353_v23 = vld [vmem:[#allocation6 + $0x260] sm:$0xff]  ;;  %v1082_v24 = vld [vmem:[#allocation6 + $0x58] sm:$0xff] }
 0x214   :  { %979 = vmatpush.msra.mxu0 %v914_v26  ;;  %1002 = vmatpush.msra.mxu1 %v930_v27  ;;  %v1352_v27 = vld [vmem:[#allocation6 + $0x258] sm:$0xff] }
 0x215   :  { %1025 = vmatpush.msra.mxu2 %v946_v28  ;;  %1048 = vmatpush.msra.mxu3 %v962_v29  ;;  %v1081_v28 = vld [vmem:[#allocation6 + $0x50] sm:$0xff] }
 0x216   :  { %980 = vmatpush.msra.mxu0 %v913_v32  ;;  %1003 = vmatpush.msra.mxu1 %v929_v33  ;;  %v1351_v29 = vld [vmem:[#allocation6 + $0x250] sm:$0xff]  ;;  %v1080_v32 = vld [vmem:[#allocation6 + $0x48] sm:$0xff] }
 0x217   :  { %1026 = vmatpush.msra.mxu2 %v945_v34  ;;  %1049 = vmatpush.msra.mxu3 %v961_v36  ;;  %v1350_v36 = vld [vmem:[#allocation6 + $0x248] sm:$0xff] }
 0x218   :  { %981 = vmatpush.msra.mxu0 %v912_v40  ;;  %1004 = vmatpush.msra.mxu1 %v928_v30  ;;  %v1079_v40 = vld [vmem:[#allocation6 + $0x40] sm:$0xff] }
 0x219   :  { %1027 = vmatpush.msra.mxu2 %v944_v31  ;;  %1050 = vmatpush.msra.mxu3 %v960_v35  ;;  %v1349_v30 = vld [vmem:[#allocation6 + $0x240] sm:$0xff]  ;;  %v1078_v31 = vld [vmem:[#allocation6 + $0x38] sm:$0xff] }
 0x21a   :  { %982 = vmatpush.msra.mxu0 %v911_v8  ;;  %1005 = vmatpush.msra.mxu1 %v927_v9  ;;  %v1348_v9 = vld [vmem:[#allocation6 + $0x238] sm:$0xff] }
 0x21b   :  { %1028 = vmatpush.msra.mxu2 %v943_v10  ;;  %1051 = vmatpush.msra.mxu3 %v959_v15  ;;  %v1077_v10 = vld [vmem:[#allocation6 + $0x30] sm:$0xff] }
 0x21c   :  { %983 = vmatpush.msra.mxu0 %v910_v47  ;;  %1006 = vmatpush.msra.mxu1 %v926_v48  ;;  %v1347_v15 = vld [vmem:[#allocation6 + $0x230] sm:$0xff]  ;;  %v1076_v47 = vld [vmem:[#allocation6 + $0x28] sm:$0xff] }
 0x21d   :  { %1029 = vmatpush.msra.mxu2 %v942_v49  ;;  %1052 = vmatpush.msra.mxu3 %v958_v50  ;;  %v1346_v48 = vld [vmem:[#allocation6 + $0x228] sm:$0xff] }
 0x21e   :  { %984 = vmatpush.msra.mxu0 %v909_v51  ;;  %1007 = vmatpush.msra.mxu1 %v925_v37  ;;  %v1075_v51 = vld [vmem:[#allocation6 + $0x20] sm:$0xff] }
 0x21f   :  { %1030 = vmatpush.msra.mxu2 %v941_v52  ;;  %1053 = vmatpush.msra.mxu3 %v957_v53  ;;  %v1345_v37 = vld [vmem:[#allocation6 + $0x220] sm:$0xff]  ;;  %v1074_v52 = vld [vmem:[#allocation6 + $0x18] sm:$0xff] }
 0x220   :  { %985 = vmatpush.msra.mxu0 %v908_v54  ;;  %1008 = vmatpush.msra.mxu1 %v924_v55  ;;  %v1344_v53 = vld [vmem:[#allocation6 + $0x218] sm:$0xff]  ;;  %v1073_v54 = vld [vmem:[#allocation6 + $0x10] sm:$0xff] }
 0x221   :  { %1031 = vmatpush.msra.mxu2 %v940_v56  ;;  %1054 = vmatpush.msra.mxu3 %v956_v57  ;;  %v1343_v57 = vld [vmem:[#allocation6 + $0x210] sm:$0xff] }
 0x222   :  { %986 = vmatpush.msra.mxu0 %v907_v58  ;;  %1009 = vmatpush.msra.mxu1 %v923_v59  ;;  %v1072_v58 = vld [vmem:[#allocation6 + $0x8] sm:$0xff] }
 0x223   :  { %1032 = vmatpush.msra.mxu2 %v939_v60  ;;  %1055 = vmatpush.msra.mxu3 %v955_v61  ;;  %v1342_v59 = vld [vmem:[#allocation6 + $0x208] sm:$0xff]  ;;  %v1071_v60 = vld [vmem:[#allocation6] sm:$0xff] }
 0x224   :  { %987 = vmatmul.f32.vlgmr.msra.gmra.mxu0 %v4525_v42  ;;  %1010 = vmatmul.f32.vlgmr.msra.gmra.mxu1 %v4527_v43  ;;  %v1155_v42 = vld [vmem:[#allocation6 + $0xe0] sm:$0xff]  ;;  %v1154_v43 = vld [vmem:[#allocation6 + $0xd8] sm:$0xff] }
 0x225   :  { %1033 = vmatmul.f32.vlgmr.msra.gmra.mxu2 %v4529_v44  ;;  %1056 = vmatmul.f32.vlgmr.msra.gmra.mxu3 %v4531_v45  ;;  %v1153_v44 = vld [vmem:[#allocation6 + $0xd0] sm:$0xff]  ;;  %v1152_v45 = vld [vmem:[#allocation6 + $0xc8] sm:$0xff] }
 0x226   :  { %1159 = vmatpush.msrb.mxu2 %v1158_v41  ;;  %1087 = vmatpush.msrb.mxu0 %v1086_v12 }
 0x228   :  { %1160 = vmatpush.msrb.mxu2 %v1157_v46  ;;  %1088 = vmatpush.msrb.mxu0 %v1085_v18  ;;  %v1341_v46 = vld [vmem:[#allocation6 + $0x200] sm:$0xff] }
 0x22a   :  { %1161 = vmatpush.msrb.mxu2 %v1156_v0  ;;  %1089 = vmatpush.msrb.mxu0 %v1084_v20 }
 0x22c   :  { %990 = vmatmul.f32.gmra.mxu0 %v4541_v62  ;;  %1013 = vmatmul.f32.gmra.mxu1 %v4543_v63  ;;  %v1151_v62 = vld [vmem:[#allocation6 + $0xc0] sm:$0xff]  ;;  %v1150_v63 = vld [vmem:[#allocation6 + $0xb8] sm:$0xff] }
 0x22d   :  { %1036 = vmatmul.f32.gmra.mxu2 %v4545_v38  ;;  %1059 = vmatmul.f32.gmra.mxu3 %v4547_v39  ;;  %v1149_v38 = vld [vmem:[#allocation6 + $0xb0] sm:$0xff]  ;;  %v1148_v39 = vld [vmem:[#allocation6 + $0xa8] sm:$0xff] }
 0x22e   :  { %1162 = vmatpush.msrb.mxu2 %v1155_v42  ;;  %1090 = vmatpush.msrb.mxu0 %v1083_v22 }
 0x230   :  { %1163 = vmatpush.msrb.mxu2 %v1154_v43  ;;  %1091 = vmatpush.msrb.mxu0 %v1082_v24 }
 0x232   :  { %1164 = vmatpush.msrb.mxu2 %v1153_v44  ;;  %1092 = vmatpush.msrb.mxu0 %v1081_v28 }
 0x234   :  { %1165 = vmatpush.msrb.mxu2 %v1152_v45  ;;  %1093 = vmatpush.msrb.mxu0 %v1080_v32 }
 0x236   :  { %1166 = vmatpush.msrb.mxu2 %v1151_v62  ;;  %1094 = vmatpush.msrb.mxu0 %v1079_v40 }
 0x238   :  { %1167 = vmatpush.msrb.mxu2 %v1150_v63  ;;  %1095 = vmatpush.msrb.mxu0 %v1078_v31 }
 0x23a   :  { %1168 = vmatpush.msrb.mxu2 %v1149_v38  ;;  %1096 = vmatpush.msrb.mxu0 %v1077_v10 }
 0x23c   :  { %1169 = vmatpush.msrb.mxu2 %v1148_v39  ;;  %1097 = vmatpush.msrb.mxu0 %v1076_v47 }
 0x23e   :  { %1170 = vmatpush.msrb.mxu2 %v1147_v3  ;;  %1098 = vmatpush.msrb.mxu0 %v1075_v51  ;;  %v1549_v51 = vld [vmem:[#allocation6 + $0x3d0] sm:$0xff] }
 0x240   :  { %1171 = vmatpush.msrb.mxu2 %v1146_v4  ;;  %1099 = vmatpush.msrb.mxu0 %v1074_v52  ;;  %v1546_v52 = vld [vmem:[#allocation6 + $0x3b8] sm:$0xff] }
 0x242   :  { %1172 = vmatpush.msrb.mxu2 %v1145_v5  ;;  %1100 = vmatpush.msrb.mxu0 %v1073_v54  ;;  %v1544_v54 = vld [vmem:[#allocation6 + $0x3a8] sm:$0xff] }
 0x244   :  { %1173 = vmatpush.msrb.mxu2 %v1144_v6  ;;  %1101 = vmatpush.msrb.mxu0 %v1072_v58  ;;  %v1540_v58 = vld [vmem:[#allocation6 + $0x388] sm:$0xff] }
 0x246   :  { %1174 = vmatpush.msrb.mxu2 %v1143_v13  ;;  %1102 = vmatpush.msrb.mxu0 %v1071_v60 }
 0x248   :  { %1357 = vmatpush.msra.mxu2 %v1356_v17 }
 0x24a   :  { %1358 = vmatpush.msra.mxu2 %v1355_v19 }
 0x24c   :  { %1359 = vmatpush.msra.mxu2 %v1354_v21 }
 0x24e   :  { %1360 = vmatpush.msra.mxu2 %v1353_v23 }
 0x250   :  { %1361 = vmatpush.msra.mxu2 %v1352_v27 }
 0x252   :  { %1362 = vmatpush.msra.mxu2 %v1351_v29 }
 0x254   :  { %1363 = vmatpush.msra.mxu2 %v1350_v36 }
 0x255   :  { %v4577_v1 = vpop.f32.mrf.mxu0  ;;  %v4579_v2 = vpop.f32.mrf.mxu1 }
 0x256   :  { %1364 = vmatpush.msra.mxu2 %v1349_v30  ;;  %v541_v3 = vadd.f32 %v4579_v2, %v4577_v1  ;;  %v1554_v30 = vld [vmem:[#allocation6 + $0x3f8] sm:$0xff] }
 0x258   :  { %1365 = vmatpush.msra.mxu2 %v1348_v9 }
 0x25a   :  { %1366 = vmatpush.msra.mxu2 %v1347_v15 }
 0x25c   :  { %v4581_v7 = vpop.f32.mrf.mxu2  ;;  %v4583_v11 = vpop.f32.mrf.mxu3  ;;  %1367 = vmatpush.msra.mxu2 %v1346_v48  ;;  %v1551_v48 = vld [vmem:[#allocation6 + $0x3e0] sm:$0xff] }
 0x25d   :  { %v564_v6 = vadd.f32 %v4581_v7, %v541_v3  ;;  %v1217_v3 = vld [vmem:[#allocation6 + $0x140] sm:$0xff] }
 0x25e   :  { %1368 = vmatpush.msra.mxu2 %v1345_v37  ;;  %v1548_v37 = vld [vmem:[#allocation6 + $0x3c8] sm:$0xff] }
 0x25f   :  { %v4585_v14 = vpop.f32.mrf.mxu0  ;;  %v4587_v16 = vpop.f32.mrf.mxu1  ;;  %v587_v21 = vadd.f32 %v4583_v11, %v564_v6  ;;  %v1214_v6 = vld [vmem:[#allocation6 + $0x128] sm:$0xff] }
 0x260   :  { %1369 = vmatpush.msra.mxu2 %v1344_v53  ;;  %v544_v27 = vadd.f32 %v4587_v16, %v4585_v14  ;;  %v1553_v14 = vld [vmem:[#allocation6 + $0x3f0] sm:$0xff] }
 0x261   :  { %v1545_v53 = vld [vmem:[#allocation6 + $0x3b0] sm:$0xff] }
 0x262   :  { %1370 = vmatpush.msra.mxu2 %v1343_v57  ;;  %v1541_v57 = vld [vmem:[#allocation6 + $0x390] sm:$0xff] }
 0x264   :  { %1371 = vmatpush.msra.mxu2 %v1342_v59  ;;  %v1539_v59 = vld [vmem:[#allocation6 + $0x380] sm:$0xff] }
 0x266   :  { %v4589_v25 = vpop.f32.mrf.mxu2  ;;  %v4591_v26 = vpop.f32.mrf.mxu3  ;;  %1372 = vmatpush.msra.mxu2 %v1341_v46  ;;  %v1070_v46 = vld [vmem:[#allocation4] sm:$0xff] }
 0x269   :  { %v674_v33 = vpop.f32.mrf.mxu0  ;;  %v697_v34 = vpop.f32.mrf.mxu1 }
 0x26a   :  { %v698_v39 = vadd.f32 %v697_v34, %v674_v33  ;;  %v567_v33 = vadd.f32 %v4589_v25, %v544_v27  ;;  %v1552_v25 = vld [vmem:[#allocation6 + $0x3e8] sm:$0xff]  ;;  %v1417_v27 = vld [vmem:[#allocation6 + $0x2d0] sm:$0xff] }
 0x270   :  { %v720_v35 = vpop.f32.mrf.mxu2  ;;  %v743_v8 = vpop.f32.mrf.mxu3 }
 0x271   :  { %v721_v4 = vadd.f32 %v720_v35, %v698_v39  ;;  %v1218_v39 = vld [vmem:[#allocation6 + $0x148] sm:$0xff] }
 0x273   :  { %v677_v49 = vpop.f32.mrf.mxu0  ;;  %v700_v50 = vpop.f32.mrf.mxu1  ;;  %v744_v19 = vadd.f32 %v743_v8, %v721_v4  ;;  %v590_v8 = vadd.f32 %v4591_v26, %v567_v33  ;;  %v1547_v26 = vld [vmem:[#allocation6 + $0x3c0] sm:$0xff]  ;;  %v1216_v4 = vld [vmem:[#allocation6 + $0x138] sm:$0xff] }
 0x274   :  { %v701_v22 = vadd.f32 %v700_v50, %v677_v49  ;;  %v1550_v50 = vld [vmem:[#allocation6 + $0x3d8] sm:$0xff] }
 0x275   :  { %v1063_v2 = vmax.f32 %v587_v21, %v744_v19  ;;  %v1209_v19 = vld [vmem:[#allocation6 + $0x100] sm:$0xff]  ;;  %v1421_v21 = vld [vmem:[#allocation6 + $0x2f0] sm:$0xff]  ;;  %v1410_v33 = vld [vmem:[#allocation6 + $0x298] sm:$0xff] }
 0x27a   :  { %v723_v55 = vpop.f32.mrf.mxu2  ;;  %v746_v56 = vpop.f32.mrf.mxu3 }
 0x27b   :  { %v724_v29 = vadd.f32 %v723_v55, %v701_v22  ;;  %v1543_v55 = vld [vmem:[#allocation6 + $0x3a0] sm:$0xff]  ;;  %v1420_v22 = vld [vmem:[#allocation6 + $0x2e8] sm:$0xff] }
 0x27d   :  { %v747_v31 = vadd.f32 %v746_v56, %v724_v29  ;;  %v1542_v56 = vld [vmem:[#allocation6 + $0x398] sm:$0xff]  ;;  %v1413_v29 = vld [vmem:[#allocation6 + $0x2b0] sm:$0xff] }
 0x27f   :  { %v831_v61 = vpop.f32.mrf.mxu0  ;;  %v854_v41 = vpop.f32.mrf.mxu1  ;;  %v1064_v15 = vmax.f32 %v590_v8, %v747_v31  ;;  %v1289_v8 = vld [vmem:[#allocation6 + $0x1f0] sm:$0xff] }
 0x280   :  { %v855_v5 = vadd.f32 %v854_v41, %v831_v61 }
 0x286   :  { %v877_v0 = vpop.f32.mrf.mxu2  ;;  %v900_v42 = vpop.f32.mrf.mxu3 }
 0x287   :  { %v878_v12 = vadd.f32 %v877_v0, %v855_v5  ;;  %v1224_v0 = vld [vmem:[#allocation6 + $0x178] sm:$0xff]  ;;  %v1215_v5 = vld [vmem:[#allocation6 + $0x130] sm:$0xff] }
 0x289   :  { %v834_v43 = vpop.f32.mrf.mxu0  ;;  %v857_v44 = vpop.f32.mrf.mxu1  ;;  %v901_v23 = vadd.f32 %v900_v42, %v878_v12  ;;  %v1223_v42 = vld [vmem:[#allocation6 + $0x170] sm:$0xff]  ;;  %v1213_v12 = vld [vmem:[#allocation6 + $0x120] sm:$0xff] }
 0x28a   :  { %v858_v32 = vadd.f32 %v857_v44, %v834_v43  ;;  %v1222_v44 = vld [vmem:[#allocation6 + $0x168] sm:$0xff] }
 0x290   :  { %v880_v45 = vpop.f32.mrf.mxu2  ;;  %v903_v62 = vpop.f32.mrf.mxu3 }
 0x291   :  { %v881_v34 = vadd.f32 %v880_v45, %v858_v32  ;;  %v1141_v45 = vld [vmem:[#allocation4 + $0x8] sm:$0xff]  ;;  %v1412_v32 = vld [vmem:[#allocation6 + $0x2a8] sm:$0xff] }
 0x293   :  { %v904_v9 = vadd.f32 %v903_v62, %v881_v34  ;;  %v1221_v62 = vld [vmem:[#allocation6 + $0x160] sm:$0xff]  ;;  %v1409_v34 = vld [vmem:[#allocation6 + $0x290] sm:$0xff] }
 0x2a1   :  { %v988_v63 = vpop.f32.mrf.mxu0  ;;  %v1011_v38 = vpop.f32.mrf.mxu1 }
 0x2a2   :  { %v1012_v13 = vadd.f32 %v1011_v38, %v988_v63  ;;  %v1220_v63 = vld [vmem:[#allocation6 + $0x158] sm:$0xff]  ;;  %v1219_v38 = vld [vmem:[#allocation6 + $0x150] sm:$0xff] }
 0x2a8   :  { %v1034_v17 = vpop.f32.mrf.mxu2  ;;  %v1057_v18 = vpop.f32.mrf.mxu3 }
 0x2a9   :  { %v1035_v20 = vadd.f32 %v1034_v17, %v1012_v13  ;;  %v991_v28 = vpop.f32.mrf.mxu0  ;;  %v1014_v1 = vpop.f32.mrf.mxu1  ;;  %v1212_v13 = vld [vmem:[#allocation6 + $0x118] sm:$0xff]  ;;  %v1211_v17 = vld [vmem:[#allocation6 + $0x110] sm:$0xff] }
 0x2aa   :  { %v1015_v40 = vadd.f32 %v1014_v1, %v991_v28  ;;  %v1416_v28 = vld [vmem:[#allocation6 + $0x2c8] sm:$0xff]  ;;  %v1415_v1 = vld [vmem:[#allocation6 + $0x2c0] sm:$0xff] }
 0x2ab   :  { %v1058_v24 = vadd.f32 %v1057_v18, %v1035_v20  ;;  %v1210_v18 = vld [vmem:[#allocation6 + $0x108] sm:$0xff]  ;;  %v1422_v20 = vld [vmem:[#allocation6 + $0x2f8] sm:$0xff] }
 0x2ad   :  { %v1065_v7 = vmax.f32 %v901_v23, %v1058_v24  ;;  %v1419_v23 = vld [vmem:[#allocation6 + $0x2e0] sm:$0xff]  ;;  %v1418_v24 = vld [vmem:[#allocation6 + $0x2d8] sm:$0xff] }
 0x2af   :  { %v4600_v36 = vmax.f32 %v1063_v2, %v1065_v7  ;;  %v1414_v2 = vld [vmem:[#allocation6 + $0x2b8] sm:$0xff]  ;;  %v1411_v7 = vld [vmem:[#allocation6 + $0x2a0] sm:$0xff] }
 0x2b0   :  { %v1037_v11 = vpop.f32.mrf.mxu2  ;;  %v1060_v16 = vpop.f32.mrf.mxu3 }
 0x2b1   :  { %v1038_v35 = vadd.f32 %v1037_v11, %v1015_v40  ;;  %1103 = vmatmul.f32.vlgmr.msrb.gmra.mxu0 %v4600_v36  ;;  %1175 = vmatmul.f32.vlgmr.msrb.gmra.mxu2 %v4600_v36  ;;  %v1408_v40 = vld [vmem:[#allocation6 + $0x288] sm:$0xff] }
 0x2b2   :  { %1555 = vmatpush.msrb.mxu2 %v1554_v30  ;;  %v1407_v30 = vld [vmem:[#allocation6 + $0x280] sm:$0xff] }
 0x2b3   :  { %v1061_v10 = vadd.f32 %v1060_v16, %v1038_v35  ;;  %v1290_v16 = vld [vmem:[#allocation6 + $0x1f8] sm:$0xff] }
 0x2b4   :  { %1556 = vmatpush.msrb.mxu2 %v1553_v14  ;;  %v1207_v14 = vld [vmem:[#allocation4 + $0x10] sm:$0xff] }
 0x2b5   :  { %v1066_v47 = vmax.f32 %v904_v9, %v1061_v10  ;;  %v1288_v9 = vld [vmem:[#allocation6 + $0x1e8] sm:$0xff]  ;;  %v1287_v10 = vld [vmem:[#allocation6 + $0x1e0] sm:$0xff] }
 0x2b6   :  { %1557 = vmatpush.msrb.mxu2 %v1552_v25  ;;  %v1286_v25 = vld [vmem:[#allocation6 + $0x1d8] sm:$0xff] }
 0x2b7   :  { %v4605_v49 = vmax.f32 %v1064_v15, %v1066_v47  ;;  %v1285_v15 = vld [vmem:[#allocation6 + $0x1d0] sm:$0xff]  ;;  %v1284_v47 = vld [vmem:[#allocation6 + $0x1c8] sm:$0xff] }
 0x2b8   :  { %1558 = vmatpush.msrb.mxu2 %v1551_v48  ;;  %v1283_v48 = vld [vmem:[#allocation6 + $0x1c0] sm:$0xff] }
 0x2b9   :  { %1106 = vmatmul.f32.gmra.mxu0 %v4605_v49  ;;  %1178 = vmatmul.f32.gmra.mxu2 %v4605_v49 }
 0x2ba   :  { %1559 = vmatpush.msrb.mxu2 %v1550_v50  ;;  %v1282_v50 = vld [vmem:[#allocation6 + $0x1b8] sm:$0xff] }
 0x2bc   :  { %1560 = vmatpush.msrb.mxu2 %v1549_v51  ;;  %v1281_v51 = vld [vmem:[#allocation6 + $0x1b0] sm:$0xff] }
 0x2be   :  { %1561 = vmatpush.msrb.mxu2 %v1548_v37  ;;  %v1280_v37 = vld [vmem:[#allocation6 + $0x1a8] sm:$0xff] }
 0x2c0   :  { %1562 = vmatpush.msrb.mxu2 %v1547_v26  ;;  %v1279_v26 = vld [vmem:[#allocation6 + $0x1a0] sm:$0xff] }
 0x2c1   :  { %1373 = vmatmul.f32.vlgmr.msra.gmra.mxu2 %v4600_v36 }
 0x2c2   :  { %1563 = vmatpush.msrb.mxu2 %v1546_v52  ;;  %v1278_v52 = vld [vmem:[#allocation6 + $0x198] sm:$0xff] }
 0x2c4   :  { %1564 = vmatpush.msrb.mxu2 %v1545_v53  ;;  %v1277_v53 = vld [vmem:[#allocation6 + $0x190] sm:$0xff] }
 0x2c6   :  { %1565 = vmatpush.msrb.mxu2 %v1544_v54  ;;  %v1276_v54 = vld [vmem:[#allocation6 + $0x188] sm:$0xff] }
 0x2c8   :  { %1566 = vmatpush.msrb.mxu2 %v1543_v55  ;;  %v1275_v55 = vld [vmem:[#allocation6 + $0x180] sm:$0xff] }
 0x2c9   :  { %1376 = vmatmul.f32.gmra.mxu2 %v4605_v49 }
 0x2ca   :  { %1567 = vmatpush.msrb.mxu2 %v1542_v56  ;;  %v1488_v56 = vld [vmem:[#allocation6 + $0x378] sm:$0xff] }
 0x2cc   :  { %1568 = vmatpush.msrb.mxu2 %v1541_v57  ;;  %v1487_v57 = vld [vmem:[#allocation6 + $0x370] sm:$0xff] }
 0x2ce   :  { %1569 = vmatpush.msrb.mxu2 %v1540_v58  ;;  %v1486_v58 = vld [vmem:[#allocation6 + $0x368] sm:$0xff] }
 0x2d0   :  { %1570 = vmatpush.msrb.mxu2 %v1539_v59  ;;  %v1485_v59 = vld [vmem:[#allocation6 + $0x360] sm:$0xff] }
 0x2d1   :  { %1571 = vmatmul.f32.vlgmr.msrb.gmra.mxu2 %v4600_v36 }
 0x2d9   :  { %1574 = vmatmul.f32.gmra.mxu2 %v4605_v49 }
 0x32e   :  { %v1104_v60 = vpop.f32.mrf.mxu0 }
 0x334   :  { %v1176_v61 = vpop.f32.mrf.mxu2 }
 0x336   :  { %v1107_v41 = vpop.f32.mrf.mxu0 }
 0x337   :  { %1128 = vmatpush.msrb.mxu1 %v1107_v41  ;;  %v1482_v41 = vld [vmem:[#allocation6 + $0x348] sm:$0xff] }
 0x339   :  { %1129 = vmatpush.msrb.mxu1 %v1104_v60  ;;  %v1484_v60 = vld [vmem:[#allocation6 + $0x358] sm:$0xff] }
 0x33a   :  { %3865 = vmatmul.msk.f32.vlgmr.msrb.gmra.mxu1 %vm1110_vm8, %v1070_v46  ;;  %v1481_v46 = vld [vmem:[#allocation6 + $0x340] sm:$0xff] }
 0x33b   :  { %1225 = vmatpush.msra.mxu1 %v1224_v0  ;;  %v1480_v0 = vld [vmem:[#allocation6 + $0x338] sm:$0xff] }
 0x33c   :  { %v1179_v43 = vpop.f32.mrf.mxu2 }
 0x33d   :  { %1226 = vmatpush.msra.mxu1 %v1223_v42  ;;  %1199 = vmatpush.msrb.mxu3 %v1179_v43  ;;  %v1479_v42 = vld [vmem:[#allocation6 + $0x330] sm:$0xff]  ;;  %v1478_v43 = vld [vmem:[#allocation6 + $0x328] sm:$0xff] }
 0x33f   :  { %1227 = vmatpush.msra.mxu1 %v1222_v44  ;;  %1200 = vmatpush.msrb.mxu3 %v1176_v61  ;;  %v1483_v61 = vld [vmem:[#allocation6 + $0x350] sm:$0xff]  ;;  %v1477_v44 = vld [vmem:[#allocation6 + $0x320] sm:$0xff] }
 0x340   :  { %3866 = vmatmul.msk.f32.vlgmr.msrb.gmra.mxu3 %vm1110_vm8, %v1141_v45  ;;  %v1476_v45 = vld [vmem:[#allocation6 + $0x318] sm:$0xff] }
 0x341   :  { %1228 = vmatpush.msra.mxu1 %v1221_v62  ;;  %v1475_v62 = vld [vmem:[#allocation6 + $0x310] sm:$0xff] }
 0x343   :  { %1229 = vmatpush.msra.mxu1 %v1220_v63  ;;  %v1474_v63 = vld [vmem:[#allocation6 + $0x308] sm:$0xff] }
 0x345   :  { %1230 = vmatpush.msra.mxu1 %v1219_v38  ;;  %v1473_v38 = vld [vmem:[#allocation6 + $0x300] sm:$0xff] }
 0x347   :  { %1231 = vmatpush.msra.mxu1 %v1218_v39 }
 0x349   :  { %1232 = vmatpush.msra.mxu1 %v1217_v3  ;;  %v1137_v3 = vpop.permute.xlu0 %1136 }
 0x34b   :  { %1233 = vmatpush.msra.mxu1 %v1216_v4 }
 0x34d   :  { %1234 = vmatpush.msra.mxu1 %v1215_v5 }
 0x34f   :  { %1235 = vmatpush.msra.mxu1 %v1214_v6 }
 0x351   :  { %1236 = vmatpush.msra.mxu1 %v1213_v12 }
 0x353   :  { %1237 = vmatpush.msra.mxu1 %v1212_v13 }
 0x355   :  { %1238 = vmatpush.msra.mxu1 %v1211_v17  ;;  %v1374_v17 = vpop.f32.mrf.mxu2 }
 0x357   :  { %1239 = vmatpush.msra.mxu1 %v1210_v18 }
 0x359   :  { %1240 = vmatpush.msra.mxu1 %v1209_v19 }
 0x35a   :  { %1241 = vmatmul.f32.vlgmr.msra.gmra.mxu1 %v4600_v36 }
 0x35b   :  { %1423 = vmatpush.msrb.mxu1 %v1422_v20  ;;  %v1273_v20 = vld [vmem:[#allocation4 + $0x18] sm:$0xff] }
 0x35d   :  { %1424 = vmatpush.msrb.mxu1 %v1421_v21  ;;  %v1377_v21 = vpop.f32.mrf.mxu2 }
 0x35f   :  { %1425 = vmatpush.msrb.mxu1 %v1420_v22 }
 0x361   :  { %1426 = vmatpush.msrb.mxu1 %v1419_v23  ;;  %v1339_v23 = vld [vmem:[#allocation4 + $0x20] sm:$0xff] }
 0x362   :  { %1244 = vmatmul.f32.gmra.mxu1 %v4605_v49 }
 0x363   :  { %1427 = vmatpush.msrb.mxu1 %v1418_v24  ;;  %v1405_v24 = vld [vmem:[#allocation4 + $0x28] sm:$0xff] }
 0x365   :  { %1428 = vmatpush.msrb.mxu1 %v1417_v27 }
 0x367   :  { %1429 = vmatpush.msrb.mxu1 %v1416_v28  ;;  %v1572_v28 = vpop.f32.mrf.mxu2 }
 0x369   :  { %1430 = vmatpush.msrb.mxu1 %v1415_v1 }
 0x36b   :  { %1431 = vmatpush.msrb.mxu1 %v1414_v2  ;;  %v1471_v2 = vld [vmem:[#allocation4 + $0x30] sm:$0xff] }
 0x36d   :  { %1432 = vmatpush.msrb.mxu1 %v1413_v29 }
 0x36f   :  { %1433 = vmatpush.msrb.mxu1 %v1412_v32  ;;  %v1575_v29 = vpop.f32.mrf.mxu2  ;;  %v1620_v32 = vld [vmem:[#allocation6 + $0x478] sm:$0xff] }
 0x371   :  { %1434 = vmatpush.msrb.mxu1 %v1411_v7  ;;  %v1619_v7 = vld [vmem:[#allocation6 + $0x470] sm:$0xff] }
 0x373   :  { %1435 = vmatpush.msrb.mxu1 %v1410_v33  ;;  %v1618_v33 = vld [vmem:[#allocation6 + $0x468] sm:$0xff] }
 0x375   :  { %1436 = vmatpush.msrb.mxu1 %v1409_v34  ;;  %v1537_v34 = vld [vmem:[#allocation4 + $0x38] sm:$0xff] }
 0x377   :  { %1437 = vmatpush.msrb.mxu1 %v1408_v40  ;;  %v1617_v40 = vld [vmem:[#allocation6 + $0x460] sm:$0xff] }
 0x379   :  { %1438 = vmatpush.msrb.mxu1 %v1407_v30  ;;  %v1616_v30 = vld [vmem:[#allocation6 + $0x458] sm:$0xff] }
 0x37a   :  { %1439 = vmatmul.f32.vlgmr.msrb.gmra.mxu1 %v4600_v36 }
 0x382   :  { %1442 = vmatmul.f32.gmra.mxu1 %v4605_v49 }
 0x3b7   :  { %v4619_v11 = vpop.f32.mrf.mxu1 }
 0x3b8   :  { %v1139_v4 = vadd.f32 %v1137_v3, %v4619_v11  ;;  %v1615_v11 = vld [vmem:[#allocation6 + $0x450] sm:$0xff] }
 0x3c3   :  { %v1202_v39 = vpop.f32.mrf.mxu3 }
 0x3c4   :  { %v1205_v5 = vadd.f32 %v1202_v39, %v1139_v4 }
 0x3d7   :  { %v1242_v31 = vpop.f32.mrf.mxu1 }
 0x3df   :  { %v1245_v35 = vpop.f32.mrf.mxu1 }
 0x3e0   :  { %1265 = vmatpush.msra.mxu3 %v1245_v35  ;;  %v1613_v35 = vld [vmem:[#allocation6 + $0x440] sm:$0xff] }
 0x3e2   :  { %1266 = vmatpush.msra.mxu3 %v1242_v31  ;;  %v1614_v31 = vld [vmem:[#allocation6 + $0x448] sm:$0xff] }
 0x3e3   :  { %3867 = vmatmul.msk.f32.vlgmr.msra.gmra.mxu3 %vm1110_vm8, %v1207_v14  ;;  %v1612_v14 = vld [vmem:[#allocation6 + $0x438] sm:$0xff] }
 0x3e4   :  { %1291 = vmatpush.msrb.mxu3 %v1290_v16  ;;  %v1611_v16 = vld [vmem:[#allocation6 + $0x430] sm:$0xff] }
 0x3e6   :  { %1292 = vmatpush.msrb.mxu3 %v1289_v8  ;;  %v1610_v8 = vld [vmem:[#allocation6 + $0x428] sm:$0xff] }
 0x3e8   :  { %1293 = vmatpush.msrb.mxu3 %v1288_v9  ;;  %v1609_v9 = vld [vmem:[#allocation6 + $0x420] sm:$0xff] }
 0x3ea   :  { %1294 = vmatpush.msrb.mxu3 %v1287_v10  ;;  %v1608_v10 = vld [vmem:[#allocation6 + $0x418] sm:$0xff] }
 0x3ec   :  { %1295 = vmatpush.msrb.mxu3 %v1286_v25  ;;  %v1607_v25 = vld [vmem:[#allocation6 + $0x410] sm:$0xff] }
 0x3ee   :  { %1296 = vmatpush.msrb.mxu3 %v1285_v15  ;;  %v1606_v15 = vld [vmem:[#allocation6 + $0x408] sm:$0xff] }
 0x3f0   :  { %1297 = vmatpush.msrb.mxu3 %v1284_v47  ;;  %v1605_v47 = vld [vmem:[#allocation6 + $0x400] sm:$0xff] }
 0x3f2   :  { %1298 = vmatpush.msrb.mxu3 %v1283_v48 }
 0x3f4   :  { %1299 = vmatpush.msrb.mxu3 %v1282_v50 }
 0x3f6   :  { %1300 = vmatpush.msrb.mxu3 %v1281_v51 }
 0x3f7   :  { %v1440_v18 = vpop.f32.mrf.mxu1 }
 0x3f8   :  { %1301 = vmatpush.msrb.mxu3 %v1280_v37 }
 0x3fa   :  { %1302 = vmatpush.msrb.mxu3 %v1279_v26 }
 0x3fc   :  { %1303 = vmatpush.msrb.mxu3 %v1278_v52 }
 0x3fe   :  { %1304 = vmatpush.msrb.mxu3 %v1277_v53 }
 0x3ff   :  { %v1443_v22 = vpop.f32.mrf.mxu1 }
 0x400   :  { %1305 = vmatpush.msrb.mxu3 %v1276_v54 }
 0x402   :  { %1306 = vmatpush.msrb.mxu3 %v1275_v55 }
 0x403   :  { %1307 = vmatmul.f32.vlgmr.msrb.gmra.mxu3 %v4600_v36 }
 0x404   :  { %1489 = vmatpush.msra.mxu3 %v1488_v56 }
 0x406   :  { %1490 = vmatpush.msra.mxu3 %v1487_v57 }
 0x408   :  { %1491 = vmatpush.msra.mxu3 %v1486_v58 }
 0x40a   :  { %1492 = vmatpush.msra.mxu3 %v1485_v59  ;;  %v1603_v59 = vld [vmem:[#allocation4 + $0x40] sm:$0xff] }
 0x40b   :  { %1310 = vmatmul.f32.gmra.mxu3 %v4605_v49 }
 0x40c   :  { %1493 = vmatpush.msra.mxu3 %v1484_v60  ;;  %v1704_v60 = vld [vmem:[#allocation7 + $0x78] sm:$0xff] }
 0x40e   :  { %1494 = vmatpush.msra.mxu3 %v1483_v61  ;;  %v1741_v61 = vld [vmem:[#allocation7 + $0xf8] sm:$0xff] }
 0x410   :  { %1495 = vmatpush.msra.mxu3 %v1482_v41  ;;  %v1778_v41 = vld [vmem:[#allocation7 + $0x178] sm:$0xff] }
 0x411   :  { %1779 = vmatpush.msra.mxu2 %v1778_v41  ;;  %v1763_v41 = vld [vmem:[#allocation7 + $0x100] sm:$0xff] }
 0x412   :  { %1496 = vmatpush.msra.mxu3 %v1481_v46  ;;  %v1815_v46 = vld [vmem:[#allocation7 + $0x1f8] sm:$0xff] }
 0x414   :  { %1497 = vmatpush.msra.mxu3 %v1480_v0  ;;  %v1703_v0 = vld [vmem:[#allocation7 + $0x70] sm:$0xff] }
 0x416   :  { %1498 = vmatpush.msra.mxu3 %v1479_v42  ;;  %v1740_v42 = vld [vmem:[#allocation7 + $0xf0] sm:$0xff] }
 0x418   :  { %1499 = vmatpush.msra.mxu3 %v1478_v43  ;;  %v1777_v43 = vld [vmem:[#allocation7 + $0x170] sm:$0xff] }
 0x419   :  { %1780 = vmatpush.msra.mxu2 %v1777_v43 }
 0x41a   :  { %1500 = vmatpush.msra.mxu3 %v1477_v44  ;;  %v1814_v44 = vld [vmem:[#allocation7 + $0x1f0] sm:$0xff] }
 0x41c   :  { %1501 = vmatpush.msra.mxu3 %v1476_v45  ;;  %v1702_v45 = vld [vmem:[#allocation7 + $0x68] sm:$0xff] }
 0x41e   :  { %1502 = vmatpush.msra.mxu3 %v1475_v62  ;;  %v1739_v62 = vld [vmem:[#allocation7 + $0xe8] sm:$0xff] }
 0x420   :  { %1503 = vmatpush.msra.mxu3 %v1474_v63  ;;  %v1776_v63 = vld [vmem:[#allocation7 + $0x168] sm:$0xff] }
 0x421   :  { %1781 = vmatpush.msra.mxu2 %v1776_v63 }
 0x422   :  { %1504 = vmatpush.msra.mxu3 %v1473_v38  ;;  %v1813_v38 = vld [vmem:[#allocation7 + $0x1e8] sm:$0xff] }
 0x423   :  { %1505 = vmatmul.f32.vlgmr.msra.gmra.mxu3 %v4600_v36 }
 0x424   :  { %1705 = vmatpush.msrb.mxu3 %v1704_v60  ;;  %v1689_v60 = vld [vmem:[#allocation7] sm:$0xff] }
 0x426   :  { %1706 = vmatpush.msrb.mxu3 %v1703_v0 }
 0x428   :  { %1707 = vmatpush.msrb.mxu3 %v1702_v45 }
 0x42b   :  { %1508 = vmatmul.f32.gmra.mxu3 %v4605_v49 }
 0x466   :  { %v1268_v6 = vpop.f32.mrf.mxu3 }
 0x467   :  { %v4627_v12 = vadd.f32 %v1268_v6, %v1205_v5  ;;  %v1701_v6 = vld [vmem:[#allocation7 + $0x60] sm:$0xff] }
 0x468   :  { %1708 = vmatpush.msrb.mxu3 %v1701_v6 }
 0x486   :  { %v1308_v13 = vpop.f32.mrf.mxu3 }
 0x48e   :  { %v1311_v19 = vpop.f32.mrf.mxu3 }
 0x48f   :  { %1331 = vmatpush.msra.mxu0 %v1311_v19  ;;  %v1737_v19 = vld [vmem:[#allocation7 + $0xd8] sm:$0xff] }
 0x491   :  { %1332 = vmatpush.msra.mxu0 %v1308_v13  ;;  %v1775_v13 = vld [vmem:[#allocation7 + $0x160] sm:$0xff] }
 0x492   :  { %3868 = vmatmul.msk.f32.vlgmr.msra.gmra.mxu0 %vm1110_vm8, %v1273_v20  ;;  %1782 = vmatpush.msra.mxu2 %v1775_v13  ;;  %v1774_v20 = vld [vmem:[#allocation7 + $0x158] sm:$0xff]  ;;  %v1905_v13 = vld [vmem:[#allocation10 + $0x38] sm:$0xff] }
 0x493   :  { %1397 = vmatpush.msrb.mxu0 %v1377_v21  ;;  %v1811_v21 = vld [vmem:[#allocation7 + $0x1d8] sm:$0xff] }
 0x494   :  { %1783 = vmatpush.msra.mxu2 %v1774_v20  ;;  %v1903_v20 = vld [vmem:[#allocation10 + $0x28] sm:$0xff] }
 0x495   :  { %1398 = vmatpush.msrb.mxu0 %v1374_v17  ;;  %v1812_v17 = vld [vmem:[#allocation7 + $0x1e0] sm:$0xff] }
 0x497   :  { %1463 = vmatpush.msra.mxu0 %v1443_v22  ;;  %v1699_v22 = vld [vmem:[#allocation7 + $0x50] sm:$0xff] }
 0x499   :  { %1464 = vmatpush.msra.mxu0 %v1440_v18  ;;  %v1700_v18 = vld [vmem:[#allocation7 + $0x58] sm:$0xff] }
 0x49a   :  { %3869 = vmatmul.msk.f32.vlgmr.msrb.gmra.mxu0 %vm1110_vm8, %v1339_v23  ;;  %1709 = vmatpush.msrb.mxu3 %v1700_v18  ;;  %v1736_v23 = vld [vmem:[#allocation7 + $0xd0] sm:$0xff]  ;;  %v1904_v18 = vld [vmem:[#allocation10 + $0x30] sm:$0xff] }
 0x49c   :  { %1710 = vmatpush.msrb.mxu3 %v1699_v22  ;;  %v1902_v22 = vld [vmem:[#allocation10 + $0x20] sm:$0xff] }
 0x4a2   :  { %3870 = vmatmul.msk.f32.vlgmr.msra.gmra.mxu0 %vm1110_vm8, %v1405_v24  ;;  %v1773_v24 = vld [vmem:[#allocation7 + $0x150] sm:$0xff] }
 0x4a3   :  { %1784 = vmatpush.msra.mxu2 %v1773_v24 }
 0x4a6   :  { %v1506_v27 = vpop.f32.mrf.mxu3 }
 0x4ae   :  { %v1509_v1 = vpop.f32.mrf.mxu3 }
 0x4af   :  { %1529 = vmatpush.msrb.mxu0 %v1509_v1  ;;  %v1735_v1 = vld [vmem:[#allocation7 + $0xc8] sm:$0xff] }
 0x4b1   :  { %1530 = vmatpush.msrb.mxu0 %v1506_v27  ;;  %v1810_v27 = vld [vmem:[#allocation7 + $0x1d0] sm:$0xff] }
 0x4b2   :  { %3871 = vmatmul.msk.f32.vlgmr.msrb.gmra.mxu0 %vm1110_vm8, %v1471_v2  ;;  %v1772_v2 = vld [vmem:[#allocation7 + $0x148] sm:$0xff] }
 0x4b3   :  { %1595 = vmatpush.msra.mxu0 %v1575_v29  ;;  %v1809_v29 = vld [vmem:[#allocation7 + $0x1c8] sm:$0xff]  ;;  %1785 = vmatpush.msra.mxu2 %v1772_v2 }
 0x4b5   :  { %1596 = vmatpush.msra.mxu0 %v1572_v28  ;;  %v1698_v28 = vld [vmem:[#allocation7 + $0x48] sm:$0xff] }
 0x4b6   :  { %1711 = vmatpush.msrb.mxu3 %v1698_v28 }
 0x4b7   :  { %1621 = vmatpush.msrb.mxu0 %v1620_v32  ;;  %v1697_v32 = vld [vmem:[#allocation7 + $0x40] sm:$0xff] }
 0x4b8   :  { %1712 = vmatpush.msrb.mxu3 %v1697_v32  ;;  %v1900_v32 = vld [vmem:[#allocation9 + $0x8] sm:$0xff] }
 0x4b9   :  { %1622 = vmatpush.msrb.mxu0 %v1619_v7  ;;  %v1734_v7 = vld [vmem:[#allocation7 + $0xc0] sm:$0xff] }
 0x4ba   :  { %3872 = vmatmul.msk.f32.vlgmr.msra.gmra.mxu0 %vm1110_vm8, %v1537_v34  ;;  %v1808_v34 = vld [vmem:[#allocation7 + $0x1c0] sm:$0xff] }
 0x4bb   :  { %1623 = vmatpush.msrb.mxu0 %v1618_v33  ;;  %v1771_v33 = vld [vmem:[#allocation7 + $0x140] sm:$0xff] }
 0x4bc   :  { %1786 = vmatpush.msra.mxu2 %v1771_v33 }
 0x4bd   :  { %1624 = vmatpush.msrb.mxu0 %v1617_v40  ;;  %v1696_v40 = vld [vmem:[#allocation7 + $0x38] sm:$0xff] }
 0x4be   :  { %1713 = vmatpush.msrb.mxu3 %v1696_v40  ;;  %v2007_v40 = vld [vmem:[#allocation10 + $0x78] sm:$0xff] }
 0x4bf   :  { %1625 = vmatpush.msrb.mxu0 %v1616_v30  ;;  %v1733_v30 = vld [vmem:[#allocation7 + $0xb8] sm:$0xff] }
 0x4c1   :  { %1626 = vmatpush.msrb.mxu0 %v1615_v11  ;;  %v1770_v11 = vld [vmem:[#allocation7 + $0x138] sm:$0xff] }
 0x4c2   :  { %1787 = vmatpush.msra.mxu2 %v1770_v11  ;;  %v2006_v11 = vld [vmem:[#allocation10 + $0x70] sm:$0xff] }
 0x4c3   :  { %1627 = vmatpush.msrb.mxu0 %v1614_v31  ;;  %v1807_v31 = vld [vmem:[#allocation7 + $0x1b8] sm:$0xff] }
 0x4c5   :  { %1628 = vmatpush.msrb.mxu0 %v1613_v35  ;;  %v1695_v35 = vld [vmem:[#allocation7 + $0x30] sm:$0xff] }
 0x4c6   :  { %1714 = vmatpush.msrb.mxu3 %v1695_v35  ;;  %v2005_v35 = vld [vmem:[#allocation10 + $0x68] sm:$0xff] }
 0x4c7   :  { %1629 = vmatpush.msrb.mxu0 %v1612_v14  ;;  %v1732_v14 = vld [vmem:[#allocation7 + $0xb0] sm:$0xff] }
 0x4c9   :  { %1630 = vmatpush.msrb.mxu0 %v1611_v16  ;;  %v1769_v16 = vld [vmem:[#allocation7 + $0x130] sm:$0xff] }
 0x4ca   :  { %1788 = vmatpush.msra.mxu2 %v1769_v16  ;;  %v2004_v16 = vld [vmem:[#allocation10 + $0x60] sm:$0xff] }
 0x4cb   :  { %1631 = vmatpush.msrb.mxu0 %v1610_v8  ;;  %v1806_v8 = vld [vmem:[#allocation7 + $0x1b0] sm:$0xff] }
 0x4cd   :  { %1632 = vmatpush.msrb.mxu0 %v1609_v9  ;;  %v1694_v9 = vld [vmem:[#allocation7 + $0x28] sm:$0xff] }
 0x4ce   :  { %1715 = vmatpush.msrb.mxu3 %v1694_v9  ;;  %v2109_v9 = vld [vmem:[#allocation10 + $0xb8] sm:$0xff] }
 0x4cf   :  { %1633 = vmatpush.msrb.mxu0 %v1608_v10  ;;  %v1731_v10 = vld [vmem:[#allocation7 + $0xa8] sm:$0xff] }
 0x4d1   :  { %1634 = vmatpush.msrb.mxu0 %v1607_v25  ;;  %v1768_v25 = vld [vmem:[#allocation7 + $0x128] sm:$0xff] }
 0x4d2   :  { %1789 = vmatpush.msra.mxu2 %v1768_v25  ;;  %v2108_v25 = vld [vmem:[#allocation10 + $0xb0] sm:$0xff] }
 0x4d3   :  { %1635 = vmatpush.msrb.mxu0 %v1606_v15  ;;  %v1805_v15 = vld [vmem:[#allocation7 + $0x1a8] sm:$0xff] }
 0x4d5   :  { %1636 = vmatpush.msrb.mxu0 %v1605_v47  ;;  %v1693_v47 = vld [vmem:[#allocation7 + $0x20] sm:$0xff] }
 0x4d6   :  { %1637 = vmatmul.f32.vlgmr.msrb.gmra.mxu0 %v4600_v36  ;;  %1716 = vmatpush.msrb.mxu3 %v1693_v47  ;;  %v2107_v47 = vld [vmem:[#allocation10 + $0xa8] sm:$0xff] }
 0x4d7   :  { %1816 = vmatpush.msra.mxu0 %v1815_v46  ;;  %v1800_v46 = vld [vmem:[#allocation7 + $0x180] sm:$0xff] }
 0x4d9   :  { %1817 = vmatpush.msra.mxu0 %v1814_v44 }
 0x4db   :  { %1818 = vmatpush.msra.mxu0 %v1813_v38 }
 0x4dd   :  { %1819 = vmatpush.msra.mxu0 %v1812_v17  ;;  %v1843_v17 = vld [vmem:[#allocation10 + $0x10] sm:$0xff] }
 0x4de   :  { %1640 = vmatmul.f32.gmra.mxu0 %v4605_v49 }
 0x4df   :  { %1820 = vmatpush.msra.mxu0 %v1811_v21  ;;  %v1841_v21 = vld [vmem:[#allocation10] sm:$0xff] }
 0x4e1   :  { %1821 = vmatpush.msra.mxu0 %v1810_v27 }
 0x4e3   :  { %1822 = vmatpush.msra.mxu0 %v1809_v29  ;;  %v1840_v29 = vld [vmem:[#allocation9] sm:$0xff] }
 0x4e5   :  { %1823 = vmatpush.msra.mxu0 %v1808_v34  ;;  %v1956_v34 = vld [vmem:[#allocation10 + $0x58] sm:$0xff] }
 0x4e7   :  { %1824 = vmatpush.msra.mxu0 %v1807_v31  ;;  %v1954_v31 = vld [vmem:[#allocation10 + $0x48] sm:$0xff] }
 0x4e9   :  { %1825 = vmatpush.msra.mxu0 %v1806_v8  ;;  %v2058_v8 = vld [vmem:[#allocation10 + $0x98] sm:$0xff] }
 0x4eb   :  { %1826 = vmatpush.msra.mxu0 %v1805_v15  ;;  %v2056_v15 = vld [vmem:[#allocation10 + $0x88] sm:$0xff] }
 0x50f   :  { %v1334_v48 = vpop.f32.mrf.mxu0 }
 0x510   :  { %v1337_v50 = vadd.f32 %v1334_v48, %v4627_v12  ;;  %v1738_v12 = vld [vmem:[#allocation7 + $0xe0] sm:$0xff] }
 0x511   :  { %v1730_v48 = vld [vmem:[#allocation7 + $0xa0] sm:$0xff] }
 0x517   :  { %v1400_v51 = vpop.f32.mrf.mxu0 }
 0x518   :  { %v1403_v37 = vadd.f32 %v1400_v51, %v1337_v50  ;;  %v1767_v50 = vld [vmem:[#allocation7 + $0x120] sm:$0xff] }
 0x519   :  { %v1804_v51 = vld [vmem:[#allocation7 + $0x1a0] sm:$0xff]  ;;  %1790 = vmatpush.msra.mxu2 %v1767_v50  ;;  %v2106_v50 = vld [vmem:[#allocation10 + $0xa0] sm:$0xff] }
 0x51a   :  { %1827 = vmatpush.msra.mxu0 %v1804_v51  ;;  %v2160_v51 = vld [vmem:[#allocation10 + $0xd8] sm:$0xff] }
 0x51f   :  { %v1466_v26 = vpop.f32.mrf.mxu0 }
 0x520   :  { %v1469_v52 = vadd.f32 %v1466_v26, %v1403_v37  ;;  %v1692_v37 = vld [vmem:[#allocation7 + $0x18] sm:$0xff] }
 0x521   :  { %v1729_v26 = vld [vmem:[#allocation7 + $0x98] sm:$0xff]  ;;  %1717 = vmatpush.msrb.mxu3 %v1692_v37  ;;  %v2211_v37 = vld [vmem:[#allocation10 + $0xf8] sm:$0xff] }
 0x52f   :  { %v1532_v53 = vpop.f32.mrf.mxu0 }
 0x530   :  { %v1535_v54 = vadd.f32 %v1532_v53, %v1469_v52  ;;  %v1766_v52 = vld [vmem:[#allocation7 + $0x118] sm:$0xff] }
 0x531   :  { %v1803_v53 = vld [vmem:[#allocation7 + $0x198] sm:$0xff]  ;;  %1791 = vmatpush.msra.mxu2 %v1766_v52 }
 0x532   :  { %1828 = vmatpush.msra.mxu0 %v1803_v53  ;;  %v2210_v52 = vld [vmem:[#allocation10 + $0xf0] sm:$0xff]  ;;  %v2158_v53 = vld [vmem:[#allocation10 + $0xc8] sm:$0xff] }
 0x537   :  { %v1598_v55 = vpop.f32.mrf.mxu0 }
 0x538   :  { %v1601_v56 = vadd.f32 %v1598_v55, %v1535_v54  ;;  %v1691_v54 = vld [vmem:[#allocation7 + $0x10] sm:$0xff] }
 0x539   :  { %v1728_v55 = vld [vmem:[#allocation7 + $0x90] sm:$0xff]  ;;  %1718 = vmatpush.msrb.mxu3 %v1691_v54 }
 0x53a   :  { %v2209_v54 = vld [vmem:[#allocation10 + $0xe8] sm:$0xff] }
 0x553   :  { %v1638_v57 = vpop.f32.mrf.mxu0 }
 0x55b   :  { %v1641_v58 = vpop.f32.mrf.mxu0 }
 0x55c   :  { %1661 = vmatpush.msra.mxu1 %v1641_v58  ;;  %v1690_v58 = vld [vmem:[#allocation7 + $0x8] sm:$0xff] }
 0x55d   :  { %1719 = vmatpush.msrb.mxu3 %v1690_v58  ;;  %v2261_v58 = vld [vmem:[#allocation10 + $0x110] sm:$0xff] }
 0x55e   :  { %1662 = vmatpush.msra.mxu1 %v1638_v57  ;;  %v1802_v57 = vld [vmem:[#allocation7 + $0x190] sm:$0xff] }
 0x55f   :  { %3873 = vmatmul.msk.f32.vlgmr.msra.gmra.mxu1 %vm1110_vm8, %v1603_v59  ;;  %v1727_v59 = vld [vmem:[#allocation7 + $0x88] sm:$0xff]  ;;  %1829 = vmatpush.msra.mxu0 %v1802_v57  ;;  %v2262_v57 = vld [vmem:[#allocation10 + $0x118] sm:$0xff] }
 0x560   :  { %1742 = vmatpush.msrb.mxu1 %v1741_v61  ;;  %v1726_v61 = vld [vmem:[#allocation7 + $0x80] sm:$0xff]  ;;  %1720 = vmatpush.msrb.mxu3 %v1689_v60  ;;  %v1896_v60 = vpop.permute.xlu0 %1895 }
 0x562   :  { %1743 = vmatpush.msrb.mxu1 %v1740_v42 }
 0x564   :  { %1744 = vmatpush.msrb.mxu1 %v1739_v62 }
 0x566   :  { %1745 = vmatpush.msrb.mxu1 %v1738_v12  ;;  %v1844_v12 = vld [vmem:[#allocation10 + $0x18] sm:$0xff] }
 0x567   :  { %1861 = vmatpush.msra.mxu3 %v1844_v12  ;;  %v2257_v12 = vld [vmem:[#allocation9 + $0x40] sm:$0xff] }
 0x568   :  { %1746 = vmatpush.msrb.mxu1 %v1737_v19  ;;  %v1842_v19 = vld [vmem:[#allocation10 + $0x8] sm:$0xff] }
 0x569   :  { %1862 = vmatpush.msra.mxu3 %v1843_v17 }
 0x56a   :  { %1747 = vmatpush.msrb.mxu1 %v1736_v23 }
 0x56b   :  { %1863 = vmatpush.msra.mxu3 %v1842_v19 }
 0x56c   :  { %1748 = vmatpush.msrb.mxu1 %v1735_v1 }
 0x56d   :  { %1864 = vmatpush.msra.mxu3 %v1841_v21 }
 0x56e   :  { %1749 = vmatpush.msrb.mxu1 %v1734_v7 }
 0x570   :  { %1750 = vmatpush.msrb.mxu1 %v1733_v30  ;;  %v1955_v30 = vld [vmem:[#allocation10 + $0x50] sm:$0xff] }
 0x572   :  { %1751 = vmatpush.msrb.mxu1 %v1732_v14  ;;  %v1953_v14 = vld [vmem:[#allocation10 + $0x40] sm:$0xff] }
 0x574   :  { %1752 = vmatpush.msrb.mxu1 %v1731_v10  ;;  %v2057_v10 = vld [vmem:[#allocation10 + $0x90] sm:$0xff] }
 0x576   :  { %1753 = vmatpush.msrb.mxu1 %v1730_v48  ;;  %v2055_v48 = vld [vmem:[#allocation10 + $0x80] sm:$0xff] }
 0x578   :  { %1754 = vmatpush.msrb.mxu1 %v1729_v26  ;;  %v2159_v26 = vld [vmem:[#allocation10 + $0xd0] sm:$0xff] }
 0x57a   :  { %1755 = vmatpush.msrb.mxu1 %v1728_v55  ;;  %v2157_v55 = vld [vmem:[#allocation10 + $0xc0] sm:$0xff] }
 0x57c   :  { %1756 = vmatpush.msrb.mxu1 %v1727_v59  ;;  %v2260_v59 = vld [vmem:[#allocation10 + $0x108] sm:$0xff] }
 0x57e   :  { %1757 = vmatpush.msrb.mxu1 %v1726_v61 }
 0x5dc   :  { %v1664_v36 = vpop.f32.mrf.mxu1 }
 0x5dd   :  { %v1667_v49 = vadd.f32 %v1664_v36, %v1601_v56  ;;  %v1765_v56 = vld [vmem:[#allocation7 + $0x110] sm:$0xff]  ;;  %v1764_v36 = vld [vmem:[#allocation7 + $0x108] sm:$0xff] }
 0x5de   :  { %1792 = vmatpush.msra.mxu2 %v1765_v56  ;;  %v2208_v56 = vld [vmem:[#allocation10 + $0xe0] sm:$0xff] }
 0x5df   :  { %1668 = vadd.xlane.f32.xlu1 %v1667_v49 }
 0x5e0   :  { %1793 = vmatpush.msra.mxu2 %v1764_v36  ;;  %v2259_v36 = vld [vmem:[#allocation10 + $0x100] sm:$0xff] }
 0x5e2   :  { %1794 = vmatpush.msra.mxu2 %v1763_v41 }
 0x5e4   :  { %1918 = vmatpush.msrb.mxu2 %v1905_v13 }
 0x5e6   :  { %1919 = vmatpush.msrb.mxu2 %v1904_v18 }
 0x5e8   :  { %1920 = vmatpush.msrb.mxu2 %v1903_v20 }
 0x5ea   :  { %1921 = vmatpush.msrb.mxu2 %v1902_v22 }
 0x652   :  { %v1669_v39 = vpop.xlane.xlu1 %1668 }
 0x653   :  { %v1670_v3 = vmul.f32 0.0078125, %v1669_v39 }
 0x655   :  { %v4638_v4 = vsub.f32 %v1667_v49, %v1670_v3  ;;  %v1801_v49 = vld [vmem:[#allocation7 + $0x188] sm:$0xff] }
 0x656   :  { %1830 = vmatpush.msra.mxu0 %v1801_v49 }
 0x657   :  { %v1672_v5 = vmul.f32 %v4638_v4, %v4638_v4 }
 0x658   :  { %1831 = vmatpush.msra.mxu0 %v1800_v46 }
 0x659   :  { %1673 = vadd.xlane.f32.xlu2 %v1672_v5 }
 0x6cc   :  { %v1674_v0 = vpop.xlane.xlu2 %1673 }
 0x6cd   :  { %v1675_v42 = vmul.f32 0.0078125, %v1674_v0  ;;  %v1951_v0 = vld [vmem:[#allocation9 + $0x10] sm:$0xff] }
 0x6cf   :  { %v1676_v43 = vadd.f32 1e-05, %v1675_v42 }
 0x6d1   :  { %3958 = vrsqrt.f32 %v1676_v43  ;;  %vm1683_vm10 = vweird.f32 %v1676_v43 }
 0x6d7   :  { %v3959_v44 = vpop.eup %3958 }
 0x6d8   :  { %v1678_v45 = vmul.f32 %v3959_v44, %v1676_v43  ;;  %vm1684_vm9 = vweird.f32 %v3959_v44  ;;  %v2002_v43 = vld [vmem:[#allocation9 + $0x18] sm:$0xff] }
 0x6d9   :  { %vm1685_vm11 = vmor %vm1683_vm10, %vm1684_vm9 }
 0x6da   :  { %v1679_v62 = vmul.f32 %v3959_v44, %v1678_v45  ;;  %v2053_v45 = vld [vmem:[#allocation9 + $0x20] sm:$0xff] }
 0x6dc   :  { %v1680_v63 = vmul.f32 0.5, %v1679_v62 }
 0x6de   :  { %v1681_v38 = vsub.f32 1.5, %v1680_v63  ;;  %v2104_v63 = vld [vmem:[#allocation9 + $0x28] sm:$0xff] }
 0x6e0   :  { %v1682_v39 = vmul.f32 %v3959_v44, %v1681_v38 }
 0x6e2   :  { %v1686_v3 = vsel %vm1685_vm11, %v3959_v44, %v1682_v39  ;;  %v2155_v39 = vld [vmem:[#allocation9 + $0x30] sm:$0xff] }
 0x6e3   :  { %v1687_v5 = vmul.f32 %v1686_v3, %v4638_v4 }
 0x6e5   :  { %v1688_v6 = vmax.f32 %v1687_v5, 0.0  ;;  %v2206_v5 = vld [vmem:[#allocation9 + $0x38] sm:$0xff] }
 0x6e7   :  { %1721 = vmatmul.f32.vlgmr.msrb.gmra.mxu3 %v1688_v6  ;;  %1758 = vmatmul.f32.vlgmr.msrb.gmra.mxu1 %v1688_v6 }
 0x6e8   :  { %1795 = vmatmul.f32.vlgmr.msra.gmra.mxu2 %v1688_v6  ;;  %1832 = vmatmul.f32.vlgmr.msra.gmra.mxu0 %v1688_v6 }
 0x764   :  { %v1759_v4 = vpop.f32.mrf.mxu1 }
 0x765   :  { %v1833_v24 = vpop.f32.mrf.mxu0 }
 0x76a   :  { %v1722_v23 = vpop.f32.mrf.mxu3 }
 0x76b   :  { %v1836_v27 = vmax.f32 %v1722_v23, %v1759_v4  ;;  %v1796_v28 = vpop.f32.mrf.mxu2 }
 0x76c   :  { %v1837_v1 = vmax.f32 %v1796_v28, %v1833_v24 }
 0x76e   :  { %v4643_v2 = vmax.f32 %v1836_v27, %v1837_v1 }
 0x770   :  { %3874 = vmatmul.msk.f32.vlgmr.msra.gmra.mxu3 %vm1845_vm12, %v4643_v2  ;;  %3876 = vmatmul.msk.f32.vlgmr.msrb.gmra.mxu2 %vm1845_vm12, %v4643_v2 }
 0x7f3   :  { %v1866_v7 = vpop.f32.mrf.mxu3  ;;  %v1923_v33 = vpop.f32.mrf.mxu2 }
 0x7f4   :  { %1888 = vmatpush.msra.mxu1 %v1866_v7  ;;  %1944 = vmatpush.msrb.mxu3 %v1923_v33 }
 0x7f5   :  { %3875 = vmatmul.msk.f32.vlgmr.msra.gmra.mxu1 %vm1869_vm13, %v1840_v29  ;;  %3877 = vmatmul.msk.f32.vlgmr.msrb.gmra.mxu3 %vm1869_vm13, %v1900_v32 }
 0x7f6   :  { %1969 = vmatpush.msrb.mxu1 %v1956_v34  ;;  %2020 = vmatpush.msra.mxu3 %v2007_v40 }
 0x7f8   :  { %1970 = vmatpush.msrb.mxu1 %v1955_v30  ;;  %2021 = vmatpush.msra.mxu3 %v2006_v11  ;;  %v2333_v11 = vld [vmem:[#allocation12 + $0x18] sm:$0xff] }
 0x7fa   :  { %1971 = vmatpush.msrb.mxu1 %v1954_v31  ;;  %2022 = vmatpush.msra.mxu3 %v2005_v35  ;;  %v2361_v31 = vld [vmem:[#allocation12 + $0x38] sm:$0xff] }
 0x7fb   :  { %v2386_v35 = vld [vmem:[#allocation12 + $0x58] sm:$0xff] }
 0x7fc   :  { %1972 = vmatpush.msrb.mxu1 %v1953_v14  ;;  %2023 = vmatpush.msra.mxu3 %v2004_v16  ;;  %v2411_v14 = vld [vmem:[#allocation12 + $0x78] sm:$0xff]  ;;  %v2332_v16 = vld [vmem:[#allocation12 + $0x10] sm:$0xff] }
 0x7fd   :  { %3878 = vmatmul.msk.f32.vlgmr.msrb.gmra.mxu1 %vm1845_vm12, %v4643_v2  ;;  %3880 = vmatmul.msk.f32.vlgmr.msra.gmra.mxu3 %vm1845_vm12, %v4643_v2 }
 0x7fe   :  { %2071 = vmatpush.msra.mxu1 %v2058_v8  ;;  %2122 = vmatpush.msrb.mxu3 %v2109_v9  ;;  %v2360_v8 = vld [vmem:[#allocation12 + $0x30] sm:$0xff] }
 0x7ff   :  { %v2385_v9 = vld [vmem:[#allocation12 + $0x50] sm:$0xff] }
 0x800   :  { %2072 = vmatpush.msra.mxu1 %v2057_v10  ;;  %2123 = vmatpush.msrb.mxu3 %v2108_v25  ;;  %v2410_v10 = vld [vmem:[#allocation12 + $0x70] sm:$0xff]  ;;  %v2331_v25 = vld [vmem:[#allocation12 + $0x8] sm:$0xff] }
 0x802   :  { %2073 = vmatpush.msra.mxu1 %v2056_v15  ;;  %2124 = vmatpush.msrb.mxu3 %v2107_v47  ;;  %v2359_v15 = vld [vmem:[#allocation12 + $0x28] sm:$0xff] }
 0x803   :  { %v2384_v47 = vld [vmem:[#allocation12 + $0x48] sm:$0xff] }
 0x804   :  { %2074 = vmatpush.msra.mxu1 %v2055_v48  ;;  %2125 = vmatpush.msrb.mxu3 %v2106_v50  ;;  %v2409_v48 = vld [vmem:[#allocation12 + $0x68] sm:$0xff]  ;;  %v2330_v50 = vld [vmem:[#allocation12] sm:$0xff] }
 0x805   :  { %3882 = vmatmul.msk.f32.vlgmr.msra.gmra.mxu1 %vm1845_vm12, %v4643_v2  ;;  %3884 = vmatmul.msk.f32.vlgmr.msrb.gmra.mxu3 %vm1845_vm12, %v4643_v2 }
 0x806   :  { %2173 = vmatpush.msrb.mxu1 %v2160_v51  ;;  %2224 = vmatpush.msra.mxu3 %v2211_v37  ;;  %v2358_v51 = vld [vmem:[#allocation12 + $0x20] sm:$0xff] }
 0x807   :  { %v2383_v37 = vld [vmem:[#allocation12 + $0x40] sm:$0xff] }
 0x808   :  { %2174 = vmatpush.msrb.mxu1 %v2159_v26  ;;  %2225 = vmatpush.msra.mxu3 %v2210_v52  ;;  %v2408_v26 = vld [vmem:[#allocation12 + $0x60] sm:$0xff] }
 0x80a   :  { %2175 = vmatpush.msrb.mxu1 %v2158_v53  ;;  %2226 = vmatpush.msra.mxu3 %v2209_v54 }
 0x80c   :  { %2176 = vmatpush.msrb.mxu1 %v2157_v55  ;;  %2227 = vmatpush.msra.mxu3 %v2208_v56 }
 0x80d   :  { %3886 = vmatmul.msk.f32.vlgmr.msrb.gmra.mxu1 %vm1845_vm12, %v4643_v2  ;;  %3888 = vmatmul.msk.f32.vlgmr.msra.gmra.mxu3 %vm1845_vm12, %v4643_v2 }
 0x80e   :  { %2275 = vmatpush.msra.mxu1 %v2262_v57  ;;  %2349 = vmatpush.msrb.mxu3 %v2333_v11 }
 0x810   :  { %2276 = vmatpush.msra.mxu1 %v2261_v58  ;;  %2350 = vmatpush.msrb.mxu3 %v2332_v16 }
 0x812   :  { %2277 = vmatpush.msra.mxu1 %v2260_v59  ;;  %2351 = vmatpush.msrb.mxu3 %v2331_v25 }
 0x814   :  { %2278 = vmatpush.msra.mxu1 %v2259_v36  ;;  %2352 = vmatpush.msrb.mxu3 %v2330_v50  ;;  %v2647_v50 = vld [vmem:[#allocation13 + $0x10] sm:$0xff] }
 0x815   :  { %3890 = vmatmul.msk.f32.vlgmr.msra.gmra.mxu1 %vm1845_vm12, %v4643_v2 }
 0x816   :  { %2399 = vmatpush.msrb.mxu1 %v2386_v35 }
 0x818   :  { %2400 = vmatpush.msrb.mxu1 %v2385_v9 }
 0x81a   :  { %2401 = vmatpush.msrb.mxu1 %v2384_v47  ;;  %v2597_v47 = vld [vmem:[#allocation13 + $0x8] sm:$0xff] }
 0x81c   :  { %2402 = vmatpush.msrb.mxu1 %v2383_v37 }
 0x872   :  { %v1890_v49 = vpop.f32.mrf.mxu1 }
 0x873   :  { %v1898_v61 = vadd.f32 %v1896_v60, %v1890_v49 }
 0x878   :  { %v1946_v41 = vpop.f32.mrf.mxu3 }
 0x879   :  { %v1949_v46 = vadd.f32 %v1946_v41, %v1898_v61 }
 0x87a   :  { %v1974_v42 = vpop.f32.mrf.mxu1 }
 0x87b   :  { %1995 = vmatpush.msra.mxu2 %v1974_v42 }
 0x87c   :  { %3879 = vmatmul.msk.f32.vlgmr.msra.gmra.mxu2 %vm1869_vm13, %v1951_v0 }
 0x880   :  { %v2025_v44 = vpop.f32.mrf.mxu3 }
 0x881   :  { %2046 = vmatpush.msrb.mxu0 %v2025_v44 }
 0x882   :  { %v2076_v62 = vpop.f32.mrf.mxu1  ;;  %3881 = vmatmul.msk.f32.vlgmr.msrb.gmra.mxu0 %vm1869_vm13, %v2002_v43 }
 0x883   :  { %2097 = vmatpush.msrb.mxu2 %v2076_v62  ;;  %v2435_v62 = vld [vmem:[%s4893_s12] sm:$0xff] }
 0x884   :  { %3883 = vmatmul.msk.f32.vlgmr.msrb.gmra.mxu2 %vm1869_vm13, %v2053_v45 }
 0x888   :  { %v2127_v38 = vpop.f32.mrf.mxu3 }
 0x889   :  { %2148 = vmatpush.msra.mxu0 %v2127_v38  ;;  %v3899_v38 = vld [vmem:[%s4893_s12 + $0x10] sm:$0xff] }
 0x88a   :  { %v2178_v3 = vpop.f32.mrf.mxu1  ;;  %3885 = vmatmul.msk.f32.vlgmr.msra.gmra.mxu0 %vm1869_vm13, %v2104_v63  ;;  %v3897_v63 = vld [vmem:[%s4893_s12 + $0x8] sm:$0xff] }
 0x88b   :  { %2199 = vmatpush.msra.mxu2 %v2178_v3  ;;  %v2440_v3 = vpop.permute.xlu0 %2439 }
 0x88c   :  { %3887 = vmatmul.msk.f32.vlgmr.msra.gmra.mxu2 %vm1869_vm13, %v2155_v39  ;;  %v3901_v39 = vld [vmem:[%s4893_s12 + $0x18] sm:$0xff] }
 0x890   :  { %v2229_v6 = vpop.f32.mrf.mxu3 }
 0x891   :  { %2250 = vmatpush.msrb.mxu0 %v2229_v6 }
 0x892   :  { %v2280_v13 = vpop.f32.mrf.mxu1  ;;  %3889 = vmatmul.msk.f32.vlgmr.msrb.gmra.mxu0 %vm1869_vm13, %v2206_v5 }
 0x893   :  { %2301 = vmatpush.msrb.mxu2 %v2280_v13  ;;  %2374 = vmatpush.msra.mxu0 %v2361_v31 }
 0x894   :  { %3891 = vmatmul.msk.f32.vlgmr.msrb.gmra.mxu2 %vm1869_vm13, %v2257_v12 }
 0x895   :  { %2424 = vmatpush.msra.mxu2 %v2411_v14  ;;  %2375 = vmatpush.msra.mxu0 %v2360_v8 }
 0x897   :  { %2425 = vmatpush.msra.mxu2 %v2410_v10  ;;  %2376 = vmatpush.msra.mxu0 %v2359_v15 }
 0x899   :  { %2426 = vmatpush.msra.mxu2 %v2409_v48  ;;  %2377 = vmatpush.msra.mxu0 %v2358_v51  ;;  %v2593_v48 = vld [vmem:[#allocation13] sm:$0xff]  ;;  %v2675_v51 = vld [vmem:[#allocation13 + $0x18] sm:$0xff] }
 0x89b   :  { %2427 = vmatpush.msra.mxu2 %v2408_v26 }
 0x8ff   :  { %v1997_v17 = vpop.f32.mrf.mxu2  ;;  %v2048_v18 = vpop.f32.mrf.mxu0 }
 0x900   :  { %v2000_v19 = vadd.f32 %v1997_v17, %v1949_v46 }
 0x902   :  { %v2051_v22 = vadd.f32 %v2048_v18, %v2000_v19 }
 0x907   :  { %v2099_v20 = vpop.f32.mrf.mxu2  ;;  %v2150_v21 = vpop.f32.mrf.mxu0 }
 0x908   :  { %v2102_v4 = vadd.f32 %v2099_v20, %v2051_v22 }
 0x90a   :  { %v2153_v24 = vadd.f32 %v2150_v21, %v2102_v4 }
 0x90f   :  { %v2201_v23 = vpop.f32.mrf.mxu2  ;;  %v2252_v28 = vpop.f32.mrf.mxu0 }
 0x910   :  { %v2204_v27 = vadd.f32 %v2201_v23, %v2153_v24 }
 0x912   :  { %v2255_v1 = vadd.f32 %v2252_v28, %v2204_v27 }
 0x917   :  { %v2303_v2 = vpop.f32.mrf.mxu2 }
 0x918   :  { %v2306_v29 = vadd.f32 %v2303_v2, %v2255_v1 }
 0x91a   :  { %v2307_v32 = vsel %vm1845_vm12, %v2306_v29, 0.0 }
 0x91b   :  { %2308 = vadd.xlane.f32.xlu1 %v2307_v32 }
 0x98e   :  { %v2309_v7 = vpop.xlane.xlu1 %2308 }
 0x98f   :  { %v2310_v33 = vmul.f32 0.03125, %v2309_v7 }
 0x991   :  { %v2311_v34 = vsub.f32 %v2306_v29, %v2310_v33 }
 0x993   :  { %v2312_v40 = vmul.f32 %v2311_v34, %v2311_v34 }
 0x995   :  { %v2313_v30 = vsel %vm1845_vm12, %v2312_v40, 0.0 }
 0x996   :  { %2314 = vadd.xlane.f32.xlu2 %v2313_v30 }
 0xa09   :  { %v2315_v52 = vpop.xlane.xlu2 %2314 }
 0xa0a   :  { %v2316_v53 = vmul.f32 0.03125, %v2315_v52 }
 0xa0c   :  { %v2317_v54 = vadd.f32 1e-05, %v2316_v53 }
 0xa0e   :  { %3960 = vrsqrt.f32 %v2317_v54  ;;  %vm2324_vm15 = vweird.f32 %v2317_v54 }
 0xa14   :  { %v3961_v55 = vpop.eup %3960 }
 0xa15   :  { %v2319_v56 = vmul.f32 %v3961_v55, %v2317_v54  ;;  %vm2325_vm14 = vweird.f32 %v3961_v55 }
 0xa16   :  { %vm2326_vm0 = vmor %vm2324_vm15, %vm2325_vm14 }
 0xa17   :  { %v2320_v57 = vmul.f32 %v3961_v55, %v2319_v56 }
 0xa19   :  { %v2321_v58 = vmul.f32 0.5, %v2320_v57 }
 0xa1b   :  { %v2322_v59 = vsub.f32 1.5, %v2321_v58 }
 0xa1d   :  { %v2323_v36 = vmul.f32 %v3961_v55, %v2322_v59 }
 0xa1f   :  { %v2327_v49 = vsel %vm2326_vm0, %v3961_v55, %v2323_v36 }
 0xa20   :  { %v2328_v60 = vmul.f32 %v2327_v49, %v2311_v34 }
 0xa22   :  { %v2329_v61 = vmax.f32 %v2328_v60, 0.0 }
 0xa24   :  { %3892 = vmatmul.msk.f32.vlgmr.msrb.gmra.mxu3 %vm1845_vm12, %v2329_v61  ;;  %3893 = vmatmul.msk.f32.vlgmr.msra.gmra.mxu0 %vm1845_vm12, %v2329_v61 }
 0xa25   :  { %3894 = vmatmul.msk.f32.vlgmr.msrb.gmra.mxu1 %vm1845_vm12, %v2329_v61  ;;  %3895 = vmatmul.msk.f32.vlgmr.msra.gmra.mxu2 %vm1845_vm12, %v2329_v61 }
 0xaa1   :  { %v2379_v41 = vpop.f32.mrf.mxu0 }
 0xaa2   :  { %v2404_v0 = vpop.f32.mrf.mxu1 }
 0xaa7   :  { %v2354_v46 = vpop.f32.mrf.mxu3 }
 0xaa8   :  { %v2432_v42 = vmax.f32 %v2354_v46, %v2379_v41  ;;  %v2429_v43 = vpop.f32.mrf.mxu2 }
 0xaa9   :  { %v2433_v44 = vmax.f32 %v2404_v0, %v2429_v43 }
 0xaab   :  { %v2434_v45 = vmax.f32 %v2432_v42, %v2433_v44 }
 0xaad   :  { %2460 = vmatpush.msra.mxu3 %v2434_v45  ;;  %2485 = vmatpush.msrb.mxu0 %v2434_v45 }
 0xaae   :  { %2510 = vmatpush.msra.mxu1 %v2434_v45  ;;  %2535 = vmatpush.msrb.mxu2 %v2434_v45 }
 0xaaf   :  { %3896 = vmatmul.msk.f32.vlgmr.msra.gmra.mxu3 %vm1869_vm13, %v2435_v62  ;;  %3898 = vmatmul.msk.f32.vlgmr.msrb.gmra.mxu0 %vm1869_vm13, %v3897_v63  ;;  %v2703_v63 = vld [vmem:[%s4897_s16 + $0x8] sm:$0xff] }
 0xab0   :  { %3900 = vmatmul.msk.f32.vlgmr.msra.gmra.mxu1 %vm1869_vm13, %v3899_v38  ;;  %3902 = vmatmul.msk.f32.vlgmr.msrb.gmra.mxu2 %vm1869_vm13, %v3901_v39  ;;  %v2702_v38 = vld [vmem:[%s4897_s16] sm:$0xff] }
 0xab1   :  { %2616 = vmatpush.msrb.mxu3 %v2597_v47  ;;  %2639 = vmatpush.msra.mxu0 %v2593_v48 }
 0xab2   :  { %2666 = vmatpush.msrb.mxu1 %v2647_v50  ;;  %2694 = vmatpush.msra.mxu2 %v2675_v51 }
 0xb2c   :  { %v2487_v5 = vpop.f32.mrf.mxu0 }
 0xb2d   :  { %v2488_v6 = vadd.f32 %v2487_v5, %v2440_v3  ;;  %v2512_v12 = vpop.f32.mrf.mxu1 }
 0xb2e   :  { %v2513_v13 = vadd.f32 %v2512_v12, %v2440_v3 }
 0xb2f   :  { %v2543_v17 = vsel %vm1869_vm13, %v2488_v6, 0.0 }
 0xb30   :  { %v2547_v18 = vsel %vm1869_vm13, %v2513_v13, 0.0  ;;  %2544 = vadd.xlane.f32.xlu2 %v2543_v17 }
 0xb31   :  { %2548 = vadd.xlane.f32.xlu0 %v2547_v18  ;;  %v2700_v18 = vld [vmem:[%s4896_s15] sm:$0xff] }
 0xb32   :  { %v2462_v19 = vpop.f32.mrf.mxu3 }
 0xb33   :  { %v2463_v20 = vadd.f32 %v2462_v19, %v2440_v3  ;;  %v2537_v22 = vpop.f32.mrf.mxu2  ;;  %v3909_v19 = vld [vmem:[%s4896_s15 + $0x10] sm:$0xff] }
 0xb34   :  { %v2538_v4 = vadd.f32 %v2537_v22, %v2440_v3  ;;  %v2701_v22 = vld [vmem:[%s4896_s15 + $0x8] sm:$0xff] }
 0xb35   :  { %v2540_v21 = vsel %vm1869_vm13, %v2463_v20, 0.0 }
 0xb36   :  { %2541 = vadd.xlane.f32.xlu1 %v2540_v21  ;;  %v2551_v23 = vsel %vm1869_vm13, %v2538_v4, 0.0  ;;  %v3917_v21 = vld [vmem:[%s4896_s15 + $0x30] sm:$0xff] }
 0xb3e   :  { %2552 = vadd.xlane.f32.xlu1 %v2551_v23  ;;  %v3918_v23 = vld [vmem:[%s4896_s15 + $0x38] sm:$0xff] }
 0xba3   :  { %v2545_v27 = vpop.xlane.xlu2 %2544 }
 0xba4   :  { %v2549_v1 = vpop.xlane.xlu0 %2548 }
 0xba9   :  { %v2542_v24 = vpop.xlane.xlu1 %2541 }
 0xbaa   :  { %v2546_v28 = vadd.f32 %v2545_v27, %v2542_v24  ;;  %v3914_v24 = vld [vmem:[%s4896_s15 + $0x28] sm:$0xff] }
 0xbac   :  { %v2550_v2 = vadd.f32 %v2549_v1, %v2546_v28 }
 0xbb1   :  { %v2553_v29 = vpop.xlane.xlu1 %2552 }
 0xbb2   :  { %v2554_v32 = vadd.f32 %v2553_v29, %v2550_v2 }
 0xbb4   :  { %v2555_v7 = vmul.f32 0.03125, %v2554_v32 }
 0xbb6   :  { %v2557_v33 = vsub.f32 %v2488_v6, %v2555_v7  ;;  %v2556_v34 = vsub.f32 %v2463_v20, %v2555_v7  ;;  %v2559_v35 = vsub.f32 %v2538_v4, %v2555_v7  ;;  %v2558_v14 = vsub.f32 %v2513_v13, %v2555_v7  ;;  %v3913_v20 = vld [vmem:[%s4896_s15 + $0x20] sm:$0xff]  ;;  %v3910_v4 = vld [vmem:[%s4896_s15 + $0x18] sm:$0xff] }
 0xbb8   :  { %v2564_v40 = vmul.f32 %v2557_v33, %v2557_v33  ;;  %v2560_v30 = vmul.f32 %v2556_v34, %v2556_v34  ;;  %v2574_v16 = vmul.f32 %v2559_v35, %v2559_v35  ;;  %v2569_v8 = vmul.f32 %v2558_v14, %v2558_v14 }
 0xbba   :  { %v2565_v11 = vsel %vm1869_vm13, %v2564_v40, 0.0  ;;  %v2561_v31 = vsel %vm1869_vm13, %v2560_v30, 0.0  ;;  %v2575_v9 = vsel %vm1869_vm13, %v2574_v16, 0.0  ;;  %v2570_v10 = vsel %vm1869_vm13, %v2569_v8, 0.0 }
 0xbbb   :  { %2566 = vadd.xlane.f32.xlu1 %v2565_v11  ;;  %2562 = vadd.xlane.f32.xlu2 %v2561_v31 }
 0xbc3   :  { %2576 = vadd.xlane.f32.xlu1 %v2575_v9  ;;  %2571 = vadd.xlane.f32.xlu2 %v2570_v10 }
 0xbdb   :  { %2706 = vperm.xlu2 %3952, %v2702_v38  }
 0xbdc   :  { %2711 = vperm.xlu1 %3953, %v2703_v63  }
 0xc2e   :  { %v2567_v25 = vpop.xlane.xlu1 %2566  ;;  %v2563_v15 = vpop.xlane.xlu2 %2562 }
 0xc2f   :  { %v2568_v37 = vadd.f32 %v2567_v25, %v2563_v15 }
 0xc36   :  { %v2572_v26 = vpop.xlane.xlu2 %2571  ;;  %v2577_v53 = vpop.xlane.xlu1 %2576 }
 0xc37   :  { %v2573_v52 = vadd.f32 %v2572_v26, %v2568_v37 }
 0xc39   :  { %v2578_v54 = vadd.f32 %v2577_v53, %v2573_v52 }
 0xc3b   :  { %v2579_v55 = vmul.f32 0.03125, %v2578_v54 }
 0xc3d   :  { %v2580_v56 = vadd.f32 1e-05, %v2579_v55 }
 0xc3e   :  { %v2707_v27 = vpop.permute.xlu2 %2706 }
 0xc3f   :  { %3962 = vrsqrt.f32 %v2580_v56  ;;  %vm2587_vm2 = vweird.f32 %v2580_v56 }
 0xc45   :  { %v3963_v57 = vpop.eup %3962 }
 0xc46   :  { %v2582_v58 = vmul.f32 %v3963_v57, %v2580_v56  ;;  %vm2588_vm1 = vweird.f32 %v3963_v57 }
 0xc47   :  { %vm2589_vm3 = vmor %vm2587_vm2, %vm2588_vm1 }
 0xc48   :  { %v2583_v59 = vmul.f32 %v3963_v57, %v2582_v58 }
 0xc4a   :  { %v2584_v36 = vmul.f32 0.5, %v2583_v59 }
 0xc4c   :  { %v2585_v49 = vsub.f32 1.5, %v2584_v36 }
 0xc4e   :  { %v2586_v60 = vmul.f32 %v3963_v57, %v2585_v49  ;;  %v2712_v31 = vpop.permute.xlu1 %2711 }
 0xc50   :  { %v2590_v61 = vsel %vm2589_vm3, %v3963_v57, %v2586_v60 }
 0xc51   :  { %v2591_v41 = vmul.f32 %v2590_v61, %v2556_v34  ;;  %v2594_v46 = vmul.f32 %v2590_v61, %v2557_v33  ;;  %v2644_v0 = vmul.f32 %v2590_v61, %v2558_v14  ;;  %v2672_v42 = vmul.f32 %v2590_v61, %v2559_v35 }
 0xc53   :  { %v2592_v43 = vmax.f32 %v2591_v41, 0.0  ;;  %v2595_v44 = vmax.f32 %v2594_v46, 0.0  ;;  %v2645_v45 = vmax.f32 %v2644_v0, 0.0  ;;  %v2673_v62 = vmax.f32 %v2672_v42, 0.0 }
 0xc55   :  { %3903 = vmatmul.msk.f32.vlgmr.msrb.gmra.mxu3 %vm1869_vm13, %v2595_v44  ;;  %3904 = vmatmul.msk.f32.vlgmr.msra.gmra.mxu0 %vm1869_vm13, %v2592_v43 }
 0xc56   :  { %3905 = vmatmul.msk.f32.vlgmr.msrb.gmra.mxu1 %vm1869_vm13, %v2645_v45  ;;  %3906 = vmatmul.msk.f32.vlgmr.msra.gmra.mxu2 %vm1869_vm13, %v2673_v62 }
 0xcd2   :  { %v2641_v39 = vpop.f32.mrf.mxu0 }
 0xcd3   :  { %v2668_v6 = vpop.f32.mrf.mxu1 }
 0xcd8   :  { %v2618_v3 = vpop.f32.mrf.mxu3 }
 0xcd9   :  { %v2642_v5 = vadd.f32 %v2641_v39, %v2618_v3  ;;  %v2696_v13 = vpop.f32.mrf.mxu2 }
 0xcdb   :  { %v2671_v12 = vadd.f32 %v2668_v6, %v2642_v5 }
 0xcdd   :  { %v2699_v17 = vadd.f32 %v2696_v13, %v2671_v12 }
 0xcdf   :  { %2735 = vmatpush.msra.mxu3 %v2699_v17  ;;  %2767 = vmatpush.msrb.mxu0 %v2699_v17 }
 0xce0   :  { %2799 = vmatpush.msra.mxu1 %v2699_v17  ;;  %2831 = vmatpush.msrb.mxu2 %v2699_v17 }
 0xce1   :  { %3907 = vmatmul.msk.f32.vlgmr.msra.gmra.mxu3 %vm1869_vm13, %v2700_v18  ;;  %3911 = vmatmul.msk.f32.vlgmr.msrb.gmra.mxu0 %vm1869_vm13, %v3909_v19 }
 0xce2   :  { %3915 = vmatmul.msk.f32.vlgmr.msra.gmra.mxu1 %vm1869_vm13, %v3913_v20  ;;  %3919 = vmatmul.msk.f32.vlgmr.msrb.gmra.mxu2 %vm1869_vm13, %v3917_v21 }
 0xce9   :  { %3908 = vmatmul.msk.f32.gmra.mxu3 %vm1869_vm13, %v2701_v22  ;;  %3912 = vmatmul.msk.f32.gmra.mxu0 %vm1869_vm13, %v3910_v4 }
 0xcea   :  { %3920 = vmatmul.msk.f32.gmra.mxu2 %vm1869_vm13, %v3918_v23  ;;  %3916 = vmatmul.msk.f32.gmra.mxu1 %vm1869_vm13, %v3914_v24 }
 0xd5e   :  { %v2769_v28 = vpop.f32.mrf.mxu0 }
 0xd5f   :  { %v2801_v1 = vpop.f32.mrf.mxu1  ;;  %v2770_v2 = vadd.f32 %v2769_v28, %v2707_v27 }
 0xd60   :  { %v2802_v29 = vadd.f32 %v2801_v1, %v2707_v27  ;;  %v3097_v1 = vld [vmem:[%s4900_s19] sm:$0xff] }
 0xd61   :  { %v2845_v32 = vsel %vm1845_vm12, %v2770_v2, 0.0 }
 0xd62   :  { %v2853_v7 = vsel %vm1845_vm12, %v2802_v29, 0.0  ;;  %2846 = vadd.xlane.f32.xlu0 %v2845_v32  ;;  %v3024_v32 = vld [vmem:[#allocation15 + $0x58] sm:$0xff] }
 0xd63   :  { %2854 = vadd.xlane.f32.xlu1 %v2853_v7  ;;  %3043 = vmatpush.msrb.mxu1 %v3024_v32 }
 0xd64   :  { %v2737_v33 = vpop.f32.mrf.mxu3 }
 0xd65   :  { %v2738_v34 = vadd.f32 %v2737_v33, %v2707_v27  ;;  %v2833_v40 = vpop.f32.mrf.mxu2  ;;  %v3064_v33 = vld [vmem:[#allocation15 + $0x78] sm:$0xff] }
 0xd66   :  { %v2834_v30 = vadd.f32 %v2833_v40, %v2707_v27  ;;  %v2772_v35 = vpop.f32.mrf.mxu0  ;;  %3083 = vmatpush.msra.mxu2 %v3064_v33  ;;  %v2947_v40 = vld [vmem:[#allocation15 + $0x10] sm:$0xff] }
 0xd67   :  { %v2839_v11 = vsel %vm1845_vm12, %v2738_v34, 0.0  ;;  %v2773_v16 = vadd.f32 %v2772_v35, %v2712_v31  ;;  %v2804_v50 = vpop.f32.mrf.mxu1  ;;  %v2955_v35 = vld [vmem:[#allocation15 + $0x28] sm:$0xff] }
 0xd68   :  { %2840 = vadd.xlane.f32.xlu2 %v2839_v11  ;;  %v2861_v14 = vsel %vm1845_vm12, %v2834_v30, 0.0  ;;  %v2805_v51 = vadd.f32 %v2804_v50, %v2712_v31  ;;  %v3063_v11 = vld [vmem:[#allocation15 + $0x70] sm:$0xff] }
 0xd69   :  { %v2848_v10 = vsel %vm1845_vm12, %v2773_v16, 0.0  ;;  %3084 = vmatpush.msra.mxu2 %v3063_v11 }
 0xd6a   :  { %2862 = vadd.xlane.f32.xlu0 %v2861_v14  ;;  %v2856_v37 = vsel %vm1845_vm12, %v2805_v51, 0.0  ;;  %v2946_v14 = vld [vmem:[#allocation15 + $0x8] sm:$0xff] }
 0xd6c   :  { %v2740_v15 = vpop.f32.mrf.mxu3 }
 0xd6d   :  { %v2836_v8 = vpop.f32.mrf.mxu2  ;;  %v2741_v47 = vadd.f32 %v2740_v15, %v2712_v31 }
 0xd6e   :  { %v2837_v9 = vadd.f32 %v2836_v8, %v2712_v31  ;;  %v3062_v8 = vld [vmem:[#allocation15 + $0x68] sm:$0xff] }
 0xd6f   :  { %v2842_v48 = vsel %vm1845_vm12, %v2741_v47, 0.0  ;;  %3085 = vmatpush.msra.mxu2 %v3062_v8 }
 0xd70   :  { %v2864_v25 = vsel %vm1845_vm12, %v2837_v9, 0.0 }
 0xd71   :  { %2865 = vadd.xlane.f32.xlu2 %v2864_v25  ;;  %v3021_v25 = vld [vmem:[#allocation15 + $0x40] sm:$0xff] }
 0xd72   :  { %2849 = vadd.xlane.f32.xlu0 %v2848_v10  ;;  %v2945_v10 = vld [vmem:[#allocation15] sm:$0xff] }
 0xd7a   :  { %2843 = vadd.xlane.f32.xlu0 %v2842_v48 }
 0xd82   :  { %2857 = vadd.xlane.f32.xlu0 %v2856_v37 }
 0xdd5   :  { %v2847_v26 = vpop.xlane.xlu0 %2846 }
 0xdd6   :  { %v2855_v54 = vpop.xlane.xlu1 %2854 }
 0xddb   :  { %v2841_v52 = vpop.xlane.xlu2 %2840 }
 0xddc   :  { %v2851_v53 = vadd.f32 %v2847_v26, %v2841_v52 }
 0xddd   :  { %v2863_v55 = vpop.xlane.xlu0 %2862 }
 0xdde   :  { %v2859_v56 = vadd.f32 %v2855_v54, %v2851_v53 }
 0xde0   :  { %v2867_v57 = vadd.f32 %v2863_v55, %v2859_v56 }
 0xde2   :  { %v2869_v58 = vmul.f32 0.0078125, %v2867_v57 }
 0xde4   :  { %v4752_v59 = vsub.f32 %v2834_v30, %v2869_v58  ;;  %v4754_v36 = vsub.f32 %v2770_v2, %v2869_v58  ;;  %v4756_v49 = vsub.f32 %v2738_v34, %v2869_v58  ;;  %v4767_v44 = vsub.f32 %v2802_v29, %v2869_v58  ;;  %v2866_v5 = vpop.xlane.xlu2 %2865  ;;  %v2957_v2 = vld [vmem:[#allocation15 + $0x38] sm:$0xff]  ;;  %v2956_v34 = vld [vmem:[#allocation15 + $0x30] sm:$0xff] }
 0xde5   :  { %v2850_v60 = vpop.xlane.xlu0 %2849  ;;  %v2948_v29 = vld [vmem:[#allocation15 + $0x18] sm:$0xff]  ;;  %2976 = vmatpush.msrb.mxu3 %v2957_v2  ;;  %v3023_v30 = vld [vmem:[#allocation15 + $0x50] sm:$0xff] }
 0xde6   :  { %v2907_v61 = vmul.f32 %v4752_v59, %v4752_v59  ;;  %v2887_v41 = vmul.f32 %v4754_v36, %v4754_v36  ;;  %v2879_v46 = vmul.f32 %v4756_v49, %v4756_v49  ;;  %v2897_v62 = vmul.f32 %v4767_v44, %v4767_v44  ;;  %3005 = vmatpush.msra.mxu0 %v2948_v29 }
 0xde7   :  { %2977 = vmatpush.msrb.mxu3 %v2956_v34  ;;  %3044 = vmatpush.msrb.mxu1 %v3023_v30 }
 0xde8   :  { %v2909_v0 = vsel %vm1845_vm12, %v2907_v61, 0.0  ;;  %v2889_v42 = vsel %vm1845_vm12, %v2887_v41, 0.0  ;;  %v2881_v43 = vsel %vm1845_vm12, %v2879_v46, 0.0  ;;  %v2899_v63 = vsel %vm1845_vm12, %v2897_v62, 0.0  ;;  %3006 = vmatpush.msra.mxu0 %v2947_v40 }
 0xde9   :  { %2910 = vadd.xlane.f32.xlu1 %v2909_v0  ;;  %2890 = vadd.xlane.f32.xlu2 %v2889_v42 }
 0xdea   :  { %2882 = vadd.xlane.f32.xlu0 %v2881_v43  ;;  %2978 = vmatpush.msrb.mxu3 %v2955_v35 }
 0xdeb   :  { %3007 = vmatpush.msra.mxu0 %v2946_v14 }
 0xded   :  { %v2844_v45 = vpop.xlane.xlu0 %2843  ;;  %3008 = vmatpush.msra.mxu0 %v2945_v10  ;;  %v3930_v10 = vld [vmem:[%s4899_s18 + $0x8] sm:$0xff] }
 0xdee   :  { %v2852_v38 = vadd.f32 %v2850_v60, %v2844_v45 }
 0xdf2   :  { %2900 = vadd.xlane.f32.xlu0 %v2899_v63 }
 0xdf5   :  { %v2858_v39 = vpop.xlane.xlu0 %2857 }
 0xdf6   :  { %v2860_v3 = vadd.f32 %v2858_v39, %v2852_v38 }
 0xdf8   :  { %v2868_v6 = vadd.f32 %v2866_v5, %v2860_v3 }
 0xdfa   :  { %v2870_v12 = vmul.f32 0.0078125, %v2868_v6 }
 0xdfc   :  { %v4772_v13 = vsub.f32 %v2805_v51, %v2870_v12  ;;  %v4774_v17 = vsub.f32 %v2773_v16, %v2870_v12  ;;  %v4776_v18 = vsub.f32 %v2741_v47, %v2870_v12  ;;  %v4787_v24 = vsub.f32 %v2837_v9, %v2870_v12  ;;  %v3022_v16 = vld [vmem:[#allocation15 + $0x48] sm:$0xff]  ;;  %v2954_v9 = vld [vmem:[#allocation15 + $0x20] sm:$0xff] }
 0xdfd   :  { %3045 = vmatpush.msrb.mxu1 %v3022_v16  ;;  %2979 = vmatpush.msrb.mxu3 %v2954_v9  ;;  %v3061_v47 = vld [vmem:[#allocation15 + $0x60] sm:$0xff]  ;;  %v3096_v9 = vld [vmem:[%s4899_s18] sm:$0xff] }
 0xdfe   :  { %v2898_v19 = vmul.f32 %v4772_v13, %v4772_v13  ;;  %v2888_v20 = vmul.f32 %v4774_v17, %v4774_v17  ;;  %v2880_v21 = vmul.f32 %v4776_v18, %v4776_v18  ;;  %v2908_v27 = vmul.f32 %v4787_v24, %v4787_v24  ;;  %3086 = vmatpush.msra.mxu2 %v3061_v47 }
 0xdff   :  { %3046 = vmatpush.msrb.mxu1 %v3021_v25  ;;  %v3932_v25 = vld [vmem:[%s4899_s18 + $0x10] sm:$0xff] }
 0xe00   :  { %v2902_v22 = vsel %vm1845_vm12, %v2898_v19, 0.0  ;;  %v2892_v4 = vsel %vm1845_vm12, %v2888_v20, 0.0  ;;  %v2884_v23 = vsel %vm1845_vm12, %v2880_v21, 0.0  ;;  %v2912_v28 = vsel %vm1845_vm12, %v2908_v27, 0.0 }
 0xe01   :  { %2903 = vadd.xlane.f32.xlu1 %v2902_v22  ;;  %2893 = vadd.xlane.f32.xlu0 %v2892_v4 }
 0xe02   :  { %2885 = vadd.xlane.f32.xlu2 %v2884_v23 }
 0xe0a   :  { %2913 = vadd.xlane.f32.xlu2 %v2912_v28 }
 0xe15   :  { %3100 = vperm.xlu0 %3951, %v3097_v1  }
 0xe5c   :  { %v2891_v31 = vpop.xlane.xlu2 %2890  ;;  %v2911_v51 = vpop.xlane.xlu1 %2910 }
 0xe5d   :  { %v2883_v7 = vpop.xlane.xlu0 %2882 }
 0xe5e   :  { %v2895_v15 = vadd.f32 %v2891_v31, %v2883_v7 }
 0xe65   :  { %v2901_v48 = vpop.xlane.xlu0 %2900 }
 0xe66   :  { %v2905_v50 = vadd.f32 %v2901_v48, %v2895_v15  ;;  %v3934_v15 = vld [vmem:[%s4899_s18 + $0x18] sm:$0xff] }
 0xe68   :  { %v2915_v37 = vadd.f32 %v2911_v51, %v2905_v50 }
 0xe6a   :  { %v2917_v26 = vmul.f32 0.0078125, %v2915_v37 }
 0xe6c   :  { %v2919_v52 = vadd.f32 1e-05, %v2917_v26 }
 0xe6e   :  { %3964 = vrsqrt.f32 %v2919_v52  ;;  %vm2927_vm5 = vweird.f32 %v2919_v52 }
 0xe74   :  { %v3965_v53 = vpop.eup %3964  ;;  %v2894_v55 = vpop.xlane.xlu0 %2893 }
 0xe75   :  { %v2922_v54 = vmul.f32 %v3965_v53, %v2919_v52  ;;  %v2886_v56 = vpop.xlane.xlu2 %2885  ;;  %vm2928_vm4 = vweird.f32 %v3965_v53  ;;  %v2904_v41 = vpop.xlane.xlu1 %2903 }
 0xe76   :  { %v2896_v58 = vadd.f32 %v2894_v55, %v2886_v56  ;;  %vm2929_vm6 = vmor %vm2927_vm5, %vm2928_vm4  ;;  %v3373_v55 = vld [vmem:[#allocation16 + $0x3e0] sm:$0xff]  ;;  %v3374_v56 = vld [vmem:[#allocation16 + $0x3e8] sm:$0xff] }
 0xe77   :  { %v2923_v57 = vmul.f32 %v3965_v53, %v2922_v54 }
 0xe78   :  { %v2906_v46 = vadd.f32 %v2904_v41, %v2896_v58  ;;  %v3376_v58 = vld [vmem:[#allocation16 + $0x3f8] sm:$0xff]  ;;  %v3371_v41 = vld [vmem:[#allocation16 + $0x3d0] sm:$0xff] }
 0xe79   :  { %v2924_v60 = vmul.f32 0.5, %v2923_v57  ;;  %v3375_v57 = vld [vmem:[#allocation16 + $0x3f0] sm:$0xff] }
 0xe7b   :  { %v2925_v61 = vsub.f32 1.5, %v2924_v60  ;;  %v3369_v60 = vld [vmem:[#allocation16 + $0x3c0] sm:$0xff] }
 0xe7d   :  { %v2926_v0 = vmul.f32 %v3965_v53, %v2925_v61  ;;  %v2914_v42 = vpop.xlane.xlu2 %2913  ;;  %v3370_v61 = vld [vmem:[#allocation16 + $0x3c8] sm:$0xff] }
 0xe7e   :  { %v2916_v43 = vadd.f32 %v2914_v42, %v2906_v46  ;;  %v3372_v46 = vld [vmem:[#allocation16 + $0x3d8] sm:$0xff]  ;;  %v3366_v42 = vld [vmem:[#allocation16 + $0x3a8] sm:$0xff] }
 0xe7f   :  { %v2930_v45 = vsel %vm2929_vm6, %v3965_v53, %v2926_v0  ;;  %v3365_v0 = vld [vmem:[#allocation16 + $0x3a0] sm:$0xff] }
 0xe80   :  { %v2941_v62 = vmul.f32 %v2930_v45, %v4756_v49  ;;  %v2949_v63 = vmul.f32 %v2930_v45, %v4754_v36  ;;  %v3016_v38 = vmul.f32 %v2930_v45, %v4767_v44  ;;  %v3056_v39 = vmul.f32 %v2930_v45, %v4752_v59  ;;  %v3368_v45 = vld [vmem:[#allocation16 + $0x3b8] sm:$0xff] }
 0xe81   :  { %v2918_v3 = vmul.f32 0.0078125, %v2916_v43  ;;  %v3367_v43 = vld [vmem:[#allocation16 + $0x3b0] sm:$0xff] }
 0xe82   :  { %v2943_v5 = vmax.f32 %v2941_v62, 0.0  ;;  %v2951_v6 = vmax.f32 %v2949_v63, 0.0  ;;  %v3018_v12 = vmax.f32 %v3016_v38, 0.0  ;;  %v3058_v19 = vmax.f32 %v3056_v39, 0.0  ;;  %v3361_v38 = vld [vmem:[#allocation16 + $0x380] sm:$0xff]  ;;  %v3362_v39 = vld [vmem:[#allocation16 + $0x388] sm:$0xff] }
 0xe83   :  { %v2920_v20 = vadd.f32 1e-05, %v2918_v3  ;;  %v3363_v3 = vld [vmem:[#allocation16 + $0x390] sm:$0xff] }
 0xe84   :  { %3921 = vmatmul.msk.f32.vlgmr.msrb.gmra.mxu3 %vm1845_vm12, %v2951_v6  ;;  %3923 = vmatmul.msk.f32.vlgmr.msra.gmra.mxu0 %vm1845_vm12, %v2943_v5  ;;  %v3364_v5 = vld [vmem:[#allocation16 + $0x398] sm:$0xff]  ;;  %v3357_v6 = vld [vmem:[#allocation16 + $0x360] sm:$0xff] }
 0xe85   :  { %3966 = vrsqrt.f32 %v2920_v20  ;;  %3925 = vmatmul.msk.f32.vlgmr.msrb.gmra.mxu1 %vm1845_vm12, %v3018_v12  ;;  %3927 = vmatmul.msk.f32.vlgmr.msra.gmra.mxu2 %vm1845_vm12, %v3058_v19  ;;  %vm2937_vm9 = vweird.f32 %v2920_v20  ;;  %v3358_v12 = vld [vmem:[#allocation16 + $0x368] sm:$0xff]  ;;  %v3359_v19 = vld [vmem:[#allocation16 + $0x370] sm:$0xff] }
 0xe87   :  { %v3101_v47 = vpop.permute.xlu0 %3100 }
 0xe8b   :  { %v3967_v36 = vpop.eup %3966 }
 0xe8c   :  { %v2932_v49 = vmul.f32 %v3967_v36, %v2920_v20  ;;  %vm2938_vm7 = vweird.f32 %v3967_v36  ;;  %v3360_v20 = vld [vmem:[#allocation16 + $0x378] sm:$0xff] }
 0xe8d   :  { %vm2939_vm10 = vmor %vm2937_vm9, %vm2938_vm7 }
 0xe8e   :  { %v2933_v44 = vmul.f32 %v3967_v36, %v2932_v49  ;;  %v3354_v49 = vld [vmem:[#allocation16 + $0x348] sm:$0xff] }
 0xe90   :  { %v2934_v21 = vmul.f32 0.5, %v2933_v44  ;;  %v3355_v44 = vld [vmem:[#allocation16 + $0x350] sm:$0xff] }
 0xe92   :  { %v2935_v59 = vsub.f32 1.5, %v2934_v21  ;;  %v3356_v21 = vld [vmem:[#allocation16 + $0x358] sm:$0xff] }
 0xe94   :  { %v2936_v22 = vmul.f32 %v3967_v36, %v2935_v59  ;;  %v3349_v59 = vld [vmem:[#allocation16 + $0x320] sm:$0xff] }
 0xe96   :  { %v2940_v4 = vsel %vm2939_vm10, %v3967_v36, %v2936_v22  ;;  %v3353_v36 = vld [vmem:[#allocation16 + $0x340] sm:$0xff]  ;;  %v3350_v22 = vld [vmem:[#allocation16 + $0x328] sm:$0xff] }
 0xe97   :  { %v2950_v23 = vmul.f32 %v2940_v4, %v4774_v17  ;;  %v2942_v27 = vmul.f32 %v2940_v4, %v4776_v18  ;;  %v3017_v28 = vmul.f32 %v2940_v4, %v4772_v13  ;;  %v3057_v1 = vmul.f32 %v2940_v4, %v4787_v24 }
 0xe99   :  { %v2952_v2 = vmax.f32 %v2950_v23, 0.0  ;;  %v2944_v29 = vmax.f32 %v2942_v27, 0.0  ;;  %v3019_v32 = vmax.f32 %v3017_v28, 0.0  ;;  %v3059_v7 = vmax.f32 %v3057_v1, 0.0  ;;  %v3351_v23 = vld [vmem:[#allocation16 + $0x330] sm:$0xff]  ;;  %v3352_v27 = vld [vmem:[#allocation16 + $0x338] sm:$0xff] }
 0xe9a   :  { %v3345_v1 = vld [vmem:[#allocation16 + $0x300] sm:$0xff] }
 0xe9b   :  { %3922 = vmatmul.msk.f32.gmra.mxu3 %vm1845_vm12, %v2952_v2  ;;  %3924 = vmatmul.msk.f32.gmra.mxu0 %vm1845_vm12, %v2944_v29  ;;  %v3346_v2 = vld [vmem:[#allocation16 + $0x308] sm:$0xff] }
 0xe9c   :  { %3926 = vmatmul.msk.f32.gmra.mxu1 %vm1845_vm12, %v3019_v32  ;;  %3928 = vmatmul.msk.f32.gmra.mxu2 %vm1845_vm12, %v3059_v7  ;;  %v3347_v32 = vld [vmem:[#allocation16 + $0x310] sm:$0xff]  ;;  %v3348_v7 = vld [vmem:[#allocation16 + $0x318] sm:$0xff] }
 0xf01   :  { %v3010_v33 = vpop.f32.mrf.mxu0 }
 0xf02   :  { %v3048_v34 = vpop.f32.mrf.mxu1 }
 0xf07   :  { %v2981_v17 = vpop.f32.mrf.mxu3 }
 0xf08   :  { %v3088_v18 = vpop.f32.mrf.mxu2  ;;  %v3011_v40 = vadd.f32 %v3010_v33, %v2981_v17  ;;  %v3341_v17 = vld [vmem:[#allocation16 + $0x2e0] sm:$0xff] }
 0xf0a   :  { %v3054_v31 = vadd.f32 %v3048_v34, %v3011_v40  ;;  %v3342_v34 = vld [vmem:[#allocation16 + $0x2e8] sm:$0xff]  ;;  %v3343_v40 = vld [vmem:[#allocation16 + $0x2f0] sm:$0xff] }
 0xf0c   :  { %v3094_v8 = vadd.f32 %v3088_v18, %v3054_v31  ;;  %v3339_v31 = vld [vmem:[#allocation16 + $0x2d0] sm:$0xff] }
 0xf18   :  { %v3013_v13 = vpop.f32.mrf.mxu0 }
 0xf19   :  { %v3051_v11 = vpop.f32.mrf.mxu1 }
 0xf1e   :  { %v2984_v30 = vpop.f32.mrf.mxu3 }
 0xf1f   :  { %v3014_v24 = vadd.f32 %v3013_v13, %v2984_v30  ;;  %v3091_v14 = vpop.f32.mrf.mxu2  ;;  %v3344_v13 = vld [vmem:[#allocation16 + $0x2f8] sm:$0xff]  ;;  %v3337_v30 = vld [vmem:[#allocation16 + $0x2c0] sm:$0xff] }
 0xf21   :  { %v3055_v35 = vadd.f32 %v3051_v11, %v3014_v24  ;;  %v3338_v11 = vld [vmem:[#allocation16 + $0x2c8] sm:$0xff] }
 0xf23   :  { %v3095_v16 = vadd.f32 %v3091_v14, %v3055_v35  ;;  %v3340_v35 = vld [vmem:[#allocation16 + $0x2d8] sm:$0xff] }
 0xf25   :  { %3120 = vmatpush.msra.mxu3 %v3095_v16  ;;  %3145 = vmatpush.msrb.mxu0 %v3095_v16 }
 0xf26   :  { %3170 = vmatpush.msra.mxu1 %v3095_v16  ;;  %3195 = vmatpush.msrb.mxu2 %v3095_v16 }
 0xf27   :  { %3121 = vmatpush.msra.mxu3 %v3094_v8  ;;  %3146 = vmatpush.msrb.mxu0 %v3094_v8 }
 0xf28   :  { %3171 = vmatpush.msra.mxu1 %v3094_v8  ;;  %3196 = vmatpush.msrb.mxu2 %v3094_v8 }
 0xf29   :  { %3929 = vmatmul.msk.f32.vlgmr.msra.gmra.mxu3 %vm1110_vm8, %v3096_v9  ;;  %3931 = vmatmul.msk.f32.vlgmr.msrb.gmra.mxu0 %vm1110_vm8, %v3930_v10  ;;  %v3333_v9 = vld [vmem:[#allocation16 + $0x2a0] sm:$0xff]  ;;  %v3334_v10 = vld [vmem:[#allocation16 + $0x2a8] sm:$0xff] }
 0xf2a   :  { %3933 = vmatmul.msk.f32.vlgmr.msra.gmra.mxu1 %vm1110_vm8, %v3932_v25  ;;  %3935 = vmatmul.msk.f32.vlgmr.msrb.gmra.mxu2 %vm1110_vm8, %v3934_v15 }
 0xf2b   :  { %3377 = vmatpush.msrb.mxu3 %v3373_v55  ;;  %3397 = vmatpush.msra.mxu0 %v3374_v56  ;;  %v3326_v55 = vld [vmem:[#allocation16 + $0x268] sm:$0xff]  ;;  %v3327_v56 = vld [vmem:[#allocation16 + $0x270] sm:$0xff] }
 0xf2c   :  { %3417 = vmatpush.msrb.mxu1 %v3375_v57  ;;  %3437 = vmatpush.msra.mxu2 %v3376_v58  ;;  %v3328_v58 = vld [vmem:[#allocation16 + $0x278] sm:$0xff] }
 0xf2d   :  { %3378 = vmatpush.msrb.mxu3 %v3369_v60  ;;  %3398 = vmatpush.msra.mxu0 %v3370_v61  ;;  %v3321_v61 = vld [vmem:[#allocation16 + $0x240] sm:$0xff] }
 0xf2e   :  { %3418 = vmatpush.msrb.mxu1 %v3371_v41  ;;  %3438 = vmatpush.msra.mxu2 %v3372_v46  ;;  %v3322_v41 = vld [vmem:[#allocation16 + $0x248] sm:$0xff]  ;;  %v3323_v46 = vld [vmem:[#allocation16 + $0x250] sm:$0xff] }
 0xf2f   :  { %3379 = vmatpush.msrb.mxu3 %v3365_v0  ;;  %3399 = vmatpush.msra.mxu0 %v3366_v42  ;;  %v3324_v0 = vld [vmem:[#allocation16 + $0x258] sm:$0xff]  ;;  %v3318_v42 = vld [vmem:[#allocation16 + $0x228] sm:$0xff] }
 0xf30   :  { %3419 = vmatpush.msrb.mxu1 %v3367_v43  ;;  %3439 = vmatpush.msra.mxu2 %v3368_v45  ;;  %v3319_v43 = vld [vmem:[#allocation16 + $0x230] sm:$0xff]  ;;  %v3320_v45 = vld [vmem:[#allocation16 + $0x238] sm:$0xff] }
 0xf31   :  { %3380 = vmatpush.msrb.mxu3 %v3361_v38  ;;  %3400 = vmatpush.msra.mxu0 %v3362_v39  ;;  %v3315_v38 = vld [vmem:[#allocation16 + $0x210] sm:$0xff]  ;;  %v3316_v39 = vld [vmem:[#allocation16 + $0x218] sm:$0xff] }
 0xf32   :  { %3420 = vmatpush.msrb.mxu1 %v3363_v3  ;;  %3440 = vmatpush.msra.mxu2 %v3364_v5  ;;  %v3306_v3 = vld [vmem:[#allocation16 + $0x1e0] sm:$0xff]  ;;  %v3307_v5 = vld [vmem:[#allocation16 + $0x1e8] sm:$0xff] }
 0xf33   :  { %3381 = vmatpush.msrb.mxu3 %v3357_v6  ;;  %3401 = vmatpush.msra.mxu0 %v3358_v12  ;;  %v3308_v6 = vld [vmem:[#allocation16 + $0x1f0] sm:$0xff]  ;;  %v3309_v12 = vld [vmem:[#allocation16 + $0x1f8] sm:$0xff] }
 0xf34   :  { %3421 = vmatpush.msrb.mxu1 %v3359_v19  ;;  %3441 = vmatpush.msra.mxu2 %v3360_v20  ;;  %v3302_v19 = vld [vmem:[#allocation16 + $0x1c0] sm:$0xff]  ;;  %v3303_v20 = vld [vmem:[#allocation16 + $0x1c8] sm:$0xff] }
 0xf35   :  { %3382 = vmatpush.msrb.mxu3 %v3353_v36  ;;  %3402 = vmatpush.msra.mxu0 %v3354_v49  ;;  %v3304_v36 = vld [vmem:[#allocation16 + $0x1d0] sm:$0xff]  ;;  %v3305_v49 = vld [vmem:[#allocation16 + $0x1d8] sm:$0xff] }
 0xf36   :  { %3422 = vmatpush.msrb.mxu1 %v3355_v44  ;;  %3442 = vmatpush.msra.mxu2 %v3356_v21  ;;  %v3298_v44 = vld [vmem:[#allocation16 + $0x1a0] sm:$0xff]  ;;  %v3299_v21 = vld [vmem:[#allocation16 + $0x1a8] sm:$0xff] }
 0xf37   :  { %3383 = vmatpush.msrb.mxu3 %v3349_v59  ;;  %3403 = vmatpush.msra.mxu0 %v3350_v22  ;;  %v3300_v59 = vld [vmem:[#allocation16 + $0x1b0] sm:$0xff]  ;;  %v3301_v22 = vld [vmem:[#allocation16 + $0x1b8] sm:$0xff] }
 0xf38   :  { %3423 = vmatpush.msrb.mxu1 %v3351_v23  ;;  %3443 = vmatpush.msra.mxu2 %v3352_v27  ;;  %v3295_v23 = vld [vmem:[#allocation16 + $0x188] sm:$0xff]  ;;  %v3296_v27 = vld [vmem:[#allocation16 + $0x190] sm:$0xff] }
 0xf39   :  { %3384 = vmatpush.msrb.mxu3 %v3345_v1  ;;  %3404 = vmatpush.msra.mxu0 %v3346_v2  ;;  %v3290_v1 = vld [vmem:[#allocation16 + $0x160] sm:$0xff]  ;;  %v3291_v2 = vld [vmem:[#allocation16 + $0x168] sm:$0xff] }
 0xf3a   :  { %3424 = vmatpush.msrb.mxu1 %v3347_v32  ;;  %3444 = vmatpush.msra.mxu2 %v3348_v7  ;;  %v3293_v32 = vld [vmem:[#allocation16 + $0x178] sm:$0xff]  ;;  %v3286_v7 = vld [vmem:[#allocation16 + $0x140] sm:$0xff] }
 0xf3b   :  { %3385 = vmatpush.msrb.mxu3 %v3341_v17  ;;  %3405 = vmatpush.msra.mxu0 %v3342_v34  ;;  %v3288_v17 = vld [vmem:[#allocation16 + $0x150] sm:$0xff]  ;;  %v3289_v34 = vld [vmem:[#allocation16 + $0x158] sm:$0xff] }
 0xf3c   :  { %3425 = vmatpush.msrb.mxu1 %v3343_v40  ;;  %3445 = vmatpush.msra.mxu2 %v3344_v13  ;;  %v3283_v40 = vld [vmem:[#allocation16 + $0x128] sm:$0xff]  ;;  %v3284_v13 = vld [vmem:[#allocation16 + $0x130] sm:$0xff] }
 0xf3d   :  { %3386 = vmatpush.msrb.mxu3 %v3337_v30  ;;  %3406 = vmatpush.msra.mxu0 %v3338_v11  ;;  %v3285_v30 = vld [vmem:[#allocation16 + $0x138] sm:$0xff]  ;;  %v3279_v11 = vld [vmem:[#allocation16 + $0x108] sm:$0xff] }
 0xf3e   :  { %3426 = vmatpush.msrb.mxu1 %v3339_v31  ;;  %3446 = vmatpush.msra.mxu2 %v3340_v35  ;;  %v3280_v31 = vld [vmem:[#allocation16 + $0x110] sm:$0xff]  ;;  %v3281_v35 = vld [vmem:[#allocation16 + $0x118] sm:$0xff] }
 0xf3f   :  { %3387 = vmatpush.msrb.mxu3 %v3333_v9  ;;  %3407 = vmatpush.msra.mxu0 %v3334_v10  ;;  %v3274_v9 = vld [vmem:[#allocation16 + $0xe0] sm:$0xff]  ;;  %v3275_v10 = vld [vmem:[#allocation16 + $0xe8] sm:$0xff] }
 0xfa6   :  { %v3148_v48 = vpop.f32.mrf.mxu0 }
 0xfa7   :  { %v4827_v50 = vadd.f32 %v3148_v48, %v3101_v47  ;;  %v3173_v53 = vpop.f32.mrf.mxu1  ;;  %v3335_v48 = vld [vmem:[#allocation16 + $0x2b0] sm:$0xff] }
 0xfa8   :  { %v4836_v54 = vadd.f32 %v3173_v53, %v3101_v47  ;;  %3427 = vmatpush.msrb.mxu1 %v3335_v48  ;;  %v3332_v53 = vld [vmem:[#allocation16 + $0x298] sm:$0xff]  ;;  %v3271_v48 = vld [vmem:[#allocation16 + $0xc8] sm:$0xff] }
 0xfa9   :  { %3203 = vadd.xlane.f32.xlu2 %v4827_v50 }
 0xfac   :  { %v3123_v51 = vpop.f32.mrf.mxu3 }
 0xfad   :  { %v4830_v37 = vadd.f32 %v3123_v51, %v3101_v47  ;;  %v3198_v26 = vpop.f32.mrf.mxu2  ;;  %v3329_v51 = vld [vmem:[#allocation16 + $0x280] sm:$0xff] }
 0xfae   :  { %v4832_v52 = vadd.f32 %v3198_v26, %v3101_v47  ;;  %v3331_v26 = vld [vmem:[#allocation16 + $0x290] sm:$0xff]  ;;  %3388 = vmatpush.msrb.mxu3 %v3329_v51  ;;  %v3273_v51 = vld [vmem:[#allocation16 + $0xd8] sm:$0xff] }
 0xfaf   :  { %3201 = vadd.xlane.f32.xlu1 %v4830_v37  ;;  %3428 = vmatpush.msrb.mxu1 %v3331_v26  ;;  %v3267_v26 = vld [vmem:[#allocation16 + $0xa8] sm:$0xff] }
 0xfb1   :  { %3209 = vadd.xlane.f32.xlu2 %v4832_v52  ;;  %3429 = vmatpush.msrb.mxu1 %v3327_v56  ;;  %v3263_v56 = vld [vmem:[#allocation16 + $0x88] sm:$0xff] }
 0xfb3   :  { %3430 = vmatpush.msrb.mxu1 %v3323_v46  ;;  %v3260_v46 = vld [vmem:[#allocation16 + $0x70] sm:$0xff] }
 0xfb5   :  { %3431 = vmatpush.msrb.mxu1 %v3319_v43  ;;  %v3256_v43 = vld [vmem:[#allocation16 + $0x50] sm:$0xff] }
 0xfb7   :  { %3206 = vadd.xlane.f32.xlu1 %v4836_v54  ;;  %3432 = vmatpush.msrb.mxu1 %v3315_v38  ;;  %v3250_v38 = vld [vmem:[#allocation16 + $0x20] sm:$0xff] }
 0xfb9   :  { %3497 = vmatpush.msra.mxu1 %v3308_v6  ;;  %v3246_v6 = vld [vmem:[#allocation16] sm:$0xff] }
 0xfbb   :  { %3498 = vmatpush.msra.mxu1 %v3304_v36  ;;  %v3249_v36 = vld [vmem:[#allocation16 + $0x18] sm:$0xff] }
 0xfbd   :  { %3499 = vmatpush.msra.mxu1 %v3300_v59 }
 0xfbf   :  { %3500 = vmatpush.msra.mxu1 %v3296_v27 }
0x101c   :  { %v3204_v62 = vpop.xlane.xlu2 %3203 }
0x1022   :  { %v3202_v63 = vpop.xlane.xlu1 %3201 }
0x1023   :  { %v3205_v4 = vadd.f32 %v3204_v62, %v3202_v63  ;;  %v3313_v62 = vld [vmem:[#allocation16 + $0x200] sm:$0xff]  ;;  %v3314_v63 = vld [vmem:[#allocation16 + $0x208] sm:$0xff] }
0x1024   :  { %v3210_v33 = vpop.xlane.xlu2 %3209 }
0x102a   :  { %v3207_v28 = vpop.xlane.xlu1 %3206 }
0x102b   :  { %v3208_v29 = vadd.f32 %v3207_v28, %v3205_v4  ;;  %v3294_v4 = vld [vmem:[#allocation16 + $0x180] sm:$0xff]  ;;  %v3297_v28 = vld [vmem:[#allocation16 + $0x198] sm:$0xff] }
0x102d   :  { %v3211_v18 = vadd.f32 %v3210_v33, %v3208_v29  ;;  %v3292_v29 = vld [vmem:[#allocation16 + $0x170] sm:$0xff]  ;;  %v3287_v33 = vld [vmem:[#allocation16 + $0x148] sm:$0xff] }
0x102e   :  { %3501 = vmatpush.msra.mxu1 %v3292_v29 }
0x102f   :  { %v3212_v24 = vmul.f32 0.001953125, %v3211_v18  ;;  %v3282_v18 = vld [vmem:[#allocation16 + $0x120] sm:$0xff] }
0x1030   :  { %3502 = vmatpush.msra.mxu1 %v3288_v17  ;;  %v3600_v17 = vld [vmem:[#allocation16 + $0x5e0] sm:$0xff] }
0x1031   :  { %v4840_v14 = vsub.f32 %v4836_v54, %v3212_v24  ;;  %v4843_v16 = vsub.f32 %v4827_v50, %v3212_v24  ;;  %v4846_v8 = vsub.f32 %v4830_v37, %v3212_v24  ;;  %v3336_v50 = vld [vmem:[#allocation16 + $0x2b8] sm:$0xff]  ;;  %v3330_v37 = vld [vmem:[#allocation16 + $0x288] sm:$0xff]  ;;  %v3325_v54 = vld [vmem:[#allocation16 + $0x260] sm:$0xff]  ;;  %v4855_v57 = vsub.f32 %v4832_v52, %v3212_v24 }
0x1032   :  { %3447 = vmatpush.msra.mxu2 %v3336_v50  ;;  %3408 = vmatpush.msra.mxu0 %v3330_v37  ;;  %v3317_v52 = vld [vmem:[#allocation16 + $0x220] sm:$0xff]  ;;  %v3272_v50 = vld [vmem:[#allocation16 + $0xd0] sm:$0xff] }
0x1033   :  { %v3224_v25 = vmul.f32 %v4840_v14, %v4840_v14  ;;  %v3220_v15 = vmul.f32 %v4843_v16, %v4843_v16  ;;  %v3217_v47 = vmul.f32 %v4846_v8, %v4846_v8  ;;  %3389 = vmatpush.msrb.mxu3 %v3325_v54  ;;  %v3228_v60 = vmul.f32 %v4855_v57, %v4855_v57  ;;  %v3278_v24 = vld [vmem:[#allocation16 + $0x100] sm:$0xff]  ;;  %v3269_v54 = vld [vmem:[#allocation16 + $0xb8] sm:$0xff] }
0x1034   :  { %3448 = vmatpush.msra.mxu2 %v3332_v53  ;;  %3409 = vmatpush.msra.mxu0 %v3326_v55  ;;  %v3266_v37 = vld [vmem:[#allocation16 + $0xa0] sm:$0xff]  ;;  %v3268_v53 = vld [vmem:[#allocation16 + $0xb0] sm:$0xff] }
0x1035   :  { %3225 = vadd.xlane.f32.xlu2 %v3224_v25  ;;  %3221 = vadd.xlane.f32.xlu0 %v3220_v15  ;;  %v3276_v25 = vld [vmem:[#allocation16 + $0xf0] sm:$0xff]  ;;  %v3277_v15 = vld [vmem:[#allocation16 + $0xf8] sm:$0xff]  ;;  %v3262_v55 = vld [vmem:[#allocation16 + $0x80] sm:$0xff] }
0x1036   :  { %3218 = vadd.xlane.f32.xlu1 %v3217_v47  ;;  %3449 = vmatpush.msra.mxu2 %v3328_v58  ;;  %v3270_v47 = vld [vmem:[#allocation16 + $0xc0] sm:$0xff]  ;;  %v3264_v58 = vld [vmem:[#allocation16 + $0x90] sm:$0xff] }
0x1037   :  { %3390 = vmatpush.msrb.mxu3 %v3321_v61  ;;  %3410 = vmatpush.msra.mxu0 %v3322_v41  ;;  %v3258_v61 = vld [vmem:[#allocation16 + $0x60] sm:$0xff]  ;;  %v3259_v41 = vld [vmem:[#allocation16 + $0x68] sm:$0xff] }
0x1038   :  { %3450 = vmatpush.msra.mxu2 %v3324_v0  ;;  %3503 = vmatpush.msra.mxu1 %v3284_v13  ;;  %v3261_v0 = vld [vmem:[#allocation16 + $0x78] sm:$0xff]  ;;  %v3596_v13 = vld [vmem:[#allocation16 + $0x5c0] sm:$0xff] }
0x1039   :  { %3391 = vmatpush.msrb.mxu3 %v3317_v52  ;;  %3411 = vmatpush.msra.mxu0 %v3318_v42  ;;  %v3254_v52 = vld [vmem:[#allocation16 + $0x40] sm:$0xff]  ;;  %v3255_v42 = vld [vmem:[#allocation16 + $0x48] sm:$0xff] }
0x103a   :  { %3451 = vmatpush.msra.mxu2 %v3320_v45  ;;  %3504 = vmatpush.msra.mxu1 %v3280_v31  ;;  %v3592_v31 = vld [vmem:[#allocation16 + $0x5a0] sm:$0xff] }
0x103b   :  { %3392 = vmatpush.msrb.mxu3 %v3313_v62  ;;  %3412 = vmatpush.msra.mxu0 %v3314_v63  ;;  %v3257_v63 = vld [vmem:[#allocation16 + $0x58] sm:$0xff] }
0x103c   :  { %3452 = vmatpush.msra.mxu2 %v3316_v39  ;;  %3505 = vmatpush.msra.mxu1 %v3276_v25  ;;  %v3251_v39 = vld [vmem:[#allocation16 + $0x28] sm:$0xff]  ;;  %v3588_v25 = vld [vmem:[#allocation16 + $0x580] sm:$0xff] }
0x103d   :  { %3457 = vmatpush.msra.mxu3 %v3306_v3  ;;  %3477 = vmatpush.msrb.mxu0 %v3307_v5  ;;  %v3252_v3 = vld [vmem:[#allocation16 + $0x30] sm:$0xff]  ;;  %v3253_v5 = vld [vmem:[#allocation16 + $0x38] sm:$0xff] }
0x103e   :  { %3229 = vadd.xlane.f32.xlu1 %v3228_v60  ;;  %3517 = vmatpush.msrb.mxu2 %v3309_v12  ;;  %v3265_v60 = vld [vmem:[#allocation16 + $0x98] sm:$0xff]  ;;  %v3247_v12 = vld [vmem:[#allocation16 + $0x8] sm:$0xff] }
0x103f   :  { %3458 = vmatpush.msra.mxu3 %v3302_v19  ;;  %3478 = vmatpush.msrb.mxu0 %v3303_v20  ;;  %v3248_v20 = vld [vmem:[#allocation16 + $0x10] sm:$0xff] }
0x1040   :  { %3518 = vmatpush.msrb.mxu2 %v3305_v49  ;;  %3506 = vmatpush.msra.mxu1 %v3272_v50 }
0x1041   :  { %3459 = vmatpush.msra.mxu3 %v3298_v44  ;;  %3479 = vmatpush.msrb.mxu0 %v3299_v21 }
0x1042   :  { %3519 = vmatpush.msrb.mxu2 %v3301_v22  ;;  %3507 = vmatpush.msra.mxu1 %v3268_v53  ;;  %v3580_v53 = vld [vmem:[#allocation16 + $0x540] sm:$0xff] }
0x1043   :  { %3460 = vmatpush.msra.mxu3 %v3294_v4  ;;  %3480 = vmatpush.msrb.mxu0 %v3295_v23 }
0x1044   :  { %3520 = vmatpush.msrb.mxu2 %v3297_v28  ;;  %3508 = vmatpush.msra.mxu1 %v3264_v58  ;;  %v3576_v58 = vld [vmem:[#allocation16 + $0x520] sm:$0xff] }
0x1045   :  { %3461 = vmatpush.msra.mxu3 %v3290_v1  ;;  %3481 = vmatpush.msrb.mxu0 %v3291_v2 }
0x1046   :  { %3521 = vmatpush.msrb.mxu2 %v3293_v32  ;;  %3509 = vmatpush.msra.mxu1 %v3260_v46  ;;  %v3572_v46 = vld [vmem:[#allocation16 + $0x500] sm:$0xff] }
0x1047   :  { %3462 = vmatpush.msra.mxu3 %v3286_v7  ;;  %3482 = vmatpush.msrb.mxu0 %v3287_v33 }
0x1048   :  { %3522 = vmatpush.msrb.mxu2 %v3289_v34  ;;  %3510 = vmatpush.msra.mxu1 %v3256_v43  ;;  %v3601_v34 = vld [vmem:[#allocation16 + $0x5e8] sm:$0xff]  ;;  %v3568_v43 = vld [vmem:[#allocation16 + $0x4e0] sm:$0xff] }
0x1049   :  { %3463 = vmatpush.msra.mxu3 %v3282_v18  ;;  %3483 = vmatpush.msrb.mxu0 %v3283_v40  ;;  %v3602_v18 = vld [vmem:[#allocation16 + $0x5f0] sm:$0xff]  ;;  %v3603_v40 = vld [vmem:[#allocation16 + $0x5f8] sm:$0xff] }
0x104a   :  { %3523 = vmatpush.msrb.mxu2 %v3285_v30  ;;  %3511 = vmatpush.msra.mxu1 %v3252_v3  ;;  %v3597_v30 = vld [vmem:[#allocation16 + $0x5c8] sm:$0xff]  ;;  %v3566_v3 = vld [vmem:[#allocation16 + $0x4d0] sm:$0xff] }
0x104b   :  { %3464 = vmatpush.msra.mxu3 %v3278_v24  ;;  %3484 = vmatpush.msrb.mxu0 %v3279_v11  ;;  %v3598_v24 = vld [vmem:[#allocation16 + $0x5d0] sm:$0xff]  ;;  %v3599_v11 = vld [vmem:[#allocation16 + $0x5d8] sm:$0xff] }
0x104c   :  { %3524 = vmatpush.msrb.mxu2 %v3281_v35  ;;  %3512 = vmatpush.msra.mxu1 %v3248_v20  ;;  %v3593_v35 = vld [vmem:[#allocation16 + $0x5a8] sm:$0xff]  ;;  %v3563_v20 = vld [vmem:[#allocation16 + $0x4b8] sm:$0xff] }
0x104d   :  { %3465 = vmatpush.msra.mxu3 %v3274_v9  ;;  %3485 = vmatpush.msrb.mxu0 %v3275_v10  ;;  %v3595_v9 = vld [vmem:[#allocation16 + $0x5b8] sm:$0xff] }
0x104e   :  { %3525 = vmatpush.msrb.mxu2 %v3277_v15  ;;  %v3589_v15 = vld [vmem:[#allocation16 + $0x588] sm:$0xff] }
0x104f   :  { %3466 = vmatpush.msra.mxu3 %v3270_v47  ;;  %3486 = vmatpush.msrb.mxu0 %v3271_v48  ;;  %v3590_v47 = vld [vmem:[#allocation16 + $0x590] sm:$0xff]  ;;  %v3591_v48 = vld [vmem:[#allocation16 + $0x598] sm:$0xff] }
0x1050   :  { %3526 = vmatpush.msrb.mxu2 %v3273_v51  ;;  %v3584_v51 = vld [vmem:[#allocation16 + $0x560] sm:$0xff] }
0x1051   :  { %3467 = vmatpush.msra.mxu3 %v3266_v37  ;;  %3487 = vmatpush.msrb.mxu0 %v3267_v26  ;;  %v3585_v37 = vld [vmem:[#allocation16 + $0x568] sm:$0xff]  ;;  %v3587_v26 = vld [vmem:[#allocation16 + $0x578] sm:$0xff] }
0x1052   :  { %3527 = vmatpush.msrb.mxu2 %v3269_v54  ;;  %v3581_v54 = vld [vmem:[#allocation16 + $0x548] sm:$0xff] }
0x1053   :  { %3468 = vmatpush.msra.mxu3 %v3262_v55  ;;  %3488 = vmatpush.msrb.mxu0 %v3263_v56  ;;  %v3582_v55 = vld [vmem:[#allocation16 + $0x550] sm:$0xff]  ;;  %v3583_v56 = vld [vmem:[#allocation16 + $0x558] sm:$0xff] }
0x1054   :  { %3528 = vmatpush.msrb.mxu2 %v3265_v60  ;;  %v3577_v60 = vld [vmem:[#allocation16 + $0x528] sm:$0xff] }
0x1055   :  { %3469 = vmatpush.msra.mxu3 %v3258_v61  ;;  %3489 = vmatpush.msrb.mxu0 %v3259_v41  ;;  %v3578_v61 = vld [vmem:[#allocation16 + $0x530] sm:$0xff]  ;;  %v3579_v41 = vld [vmem:[#allocation16 + $0x538] sm:$0xff] }
0x1056   :  { %3529 = vmatpush.msrb.mxu2 %v3261_v0  ;;  %v3573_v0 = vld [vmem:[#allocation16 + $0x508] sm:$0xff] }
0x1057   :  { %3470 = vmatpush.msra.mxu3 %v3254_v52  ;;  %3490 = vmatpush.msrb.mxu0 %v3255_v42  ;;  %v3574_v52 = vld [vmem:[#allocation16 + $0x510] sm:$0xff]  ;;  %v3575_v42 = vld [vmem:[#allocation16 + $0x518] sm:$0xff] }
0x1058   :  { %3530 = vmatpush.msrb.mxu2 %v3257_v63  ;;  %v3571_v63 = vld [vmem:[#allocation16 + $0x4f8] sm:$0xff] }
0x1059   :  { %3471 = vmatpush.msra.mxu3 %v3250_v38  ;;  %3491 = vmatpush.msrb.mxu0 %v3251_v39  ;;  %v3564_v38 = vld [vmem:[#allocation16 + $0x4c0] sm:$0xff]  ;;  %v3565_v39 = vld [vmem:[#allocation16 + $0x4c8] sm:$0xff] }
0x105a   :  { %3531 = vmatpush.msrb.mxu2 %v3253_v5  ;;  %v3567_v5 = vld [vmem:[#allocation16 + $0x4d8] sm:$0xff] }
0x105b   :  { %3472 = vmatpush.msra.mxu3 %v3246_v6  ;;  %3492 = vmatpush.msrb.mxu0 %v3247_v12  ;;  %v3560_v6 = vld [vmem:[#allocation16 + $0x4a0] sm:$0xff]  ;;  %v3561_v12 = vld [vmem:[#allocation16 + $0x4a8] sm:$0xff] }
0x105c   :  { %3532 = vmatpush.msrb.mxu2 %v3249_v36  ;;  %v3556_v36 = vld [vmem:[#allocation16 + $0x480] sm:$0xff] }
0x10a8   :  { %v3222_v45 = vpop.xlane.xlu0 %3221  ;;  %v3226_v49 = vpop.xlane.xlu2 %3225 }
0x10a9   :  { %v3219_v62 = vpop.xlane.xlu1 %3218 }
0x10aa   :  { %v3223_v19 = vadd.f32 %v3222_v45, %v3219_v62  ;;  %v3569_v45 = vld [vmem:[#allocation16 + $0x4e8] sm:$0xff]  ;;  %v3570_v62 = vld [vmem:[#allocation16 + $0x4f0] sm:$0xff] }
0x10ac   :  { %v3227_v44 = vadd.f32 %v3226_v49, %v3223_v19  ;;  %v3562_v19 = vld [vmem:[#allocation16 + $0x4b0] sm:$0xff]  ;;  %v3557_v49 = vld [vmem:[#allocation16 + $0x488] sm:$0xff] }
0x10b1   :  { %v3230_v21 = vpop.xlane.xlu1 %3229 }
0x10b2   :  { %v3231_v59 = vadd.f32 %v3230_v21, %v3227_v44  ;;  %v3558_v44 = vld [vmem:[#allocation16 + $0x490] sm:$0xff]  ;;  %v3559_v21 = vld [vmem:[#allocation16 + $0x498] sm:$0xff] }
0x10b4   :  { %v3232_v22 = vmul.f32 0.001953125, %v3231_v59  ;;  %v3552_v59 = vld [vmem:[#allocation16 + $0x460] sm:$0xff] }
0x10b6   :  { %v3233_v4 = vadd.f32 1e-05, %v3232_v22  ;;  %v3553_v22 = vld [vmem:[#allocation16 + $0x468] sm:$0xff] }
0x10b8   :  { %3968 = vrsqrt.f32 %v3233_v4  ;;  %vm3240_vm11 = vweird.f32 %v3233_v4 }
0x10be   :  { %v3969_v23 = vpop.eup %3968 }
0x10bf   :  { %v3235_v27 = vmul.f32 %v3969_v23, %v3233_v4  ;;  %vm3241_vm8 = vweird.f32 %v3969_v23  ;;  %v3554_v4 = vld [vmem:[#allocation16 + $0x470] sm:$0xff] }
0x10c0   :  { %vm3242_vm12 = vmor %vm3240_vm11, %vm3241_vm8 }
0x10c1   :  { %v3236_v28 = vmul.f32 %v3969_v23, %v3235_v27  ;;  %v3548_v27 = vld [vmem:[#allocation16 + $0x440] sm:$0xff] }
0x10c3   :  { %v3237_v1 = vmul.f32 0.5, %v3236_v28  ;;  %v3549_v28 = vld [vmem:[#allocation16 + $0x448] sm:$0xff] }
0x10c5   :  { %v3238_v2 = vsub.f32 1.5, %v3237_v1  ;;  %v3550_v1 = vld [vmem:[#allocation16 + $0x450] sm:$0xff] }
0x10c7   :  { %v3239_v29 = vmul.f32 %v3969_v23, %v3238_v2  ;;  %v3551_v2 = vld [vmem:[#allocation16 + $0x458] sm:$0xff] }
0x10c9   :  { %v4859_v32 = vsel %vm3242_vm12, %v3969_v23, %v3239_v29  ;;  %v3555_v23 = vld [vmem:[#allocation16 + $0x478] sm:$0xff]  ;;  %v3544_v29 = vld [vmem:[#allocation16 + $0x420] sm:$0xff] }
0x10ca   :  { %v3310_v7 = vmul.f32 %v4859_v32, %v4843_v16  ;;  %v3594_v16 = vld [vmem:[#allocation16 + $0x5b0] sm:$0xff]  ;;  %v3244_v10 = vmul.f32 %v4859_v32, %v4846_v8 }
0x10cb   :  { %v3586_v8 = vld [vmem:[#allocation16 + $0x570] sm:$0xff] }
0x10cc   :  { %v3311_v33 = vmax.f32 %v3310_v7, 0.0  ;;  %v3245_v50 = vmax.f32 %v3244_v10, 0.0  ;;  %v3545_v7 = vld [vmem:[#allocation16 + $0x428] sm:$0xff]  ;;  %v3749_v10 = vld [vmem:[#allocation16 + $0x7d0] sm:$0xff] }
0x10ce   :  { %3393 = vmatmul.f32.vlgmr.msrb.gmra.mxu3 %v3311_v33  ;;  %3413 = vmatmul.f32.vlgmr.msra.gmra.mxu0 %v3311_v33 }
0x10cf   :  { %3433 = vmatmul.f32.vlgmr.msrb.gmra.mxu1 %v3311_v33  ;;  %3453 = vmatmul.f32.vlgmr.msra.gmra.mxu2 %v3311_v33  ;;  %v3546_v33 = vld [vmem:[#allocation16 + $0x430] sm:$0xff] }
0x10d0   :  { %3604 = vmatpush.msrb.mxu3 %v3600_v17  ;;  %3624 = vmatpush.msra.mxu0 %v3601_v34  ;;  %v3547_v17 = vld [vmem:[#allocation16 + $0x438] sm:$0xff]  ;;  %v3537_v34 = vmul.f32 %v4859_v32, %v4840_v14  ;;  %v3753_v14 = vld [vmem:[#allocation16 + $0x7f0] sm:$0xff] }
0x10d1   :  { %3644 = vmatpush.msrb.mxu1 %v3602_v18  ;;  %3664 = vmatpush.msra.mxu2 %v3603_v40  ;;  %v3540_v18 = vld [vmem:[#allocation16 + $0x400] sm:$0xff]  ;;  %v3541_v40 = vld [vmem:[#allocation16 + $0x408] sm:$0xff] }
0x10d2   :  { %3605 = vmatpush.msrb.mxu3 %v3596_v13  ;;  %3625 = vmatpush.msra.mxu0 %v3597_v30  ;;  %v3542_v13 = vld [vmem:[#allocation16 + $0x410] sm:$0xff]  ;;  %v3543_v30 = vld [vmem:[#allocation16 + $0x418] sm:$0xff] }
0x10d3   :  { %3645 = vmatpush.msrb.mxu1 %v3598_v24  ;;  %3665 = vmatpush.msra.mxu2 %v3599_v11  ;;  %v3538_v24 = vmax.f32 %v3537_v34, 0.0  ;;  %v3751_v11 = vld [vmem:[#allocation16 + $0x7e0] sm:$0xff] }
0x10d4   :  { %3606 = vmatpush.msrb.mxu3 %v3592_v31  ;;  %3626 = vmatpush.msra.mxu0 %v3593_v35  ;;  %v3752_v31 = vld [vmem:[#allocation16 + $0x7e8] sm:$0xff]  ;;  %v3754_v35 = vld [vmem:[#allocation16 + $0x7f8] sm:$0xff]  ;;  %v3695_v34 = vld [vmem:[#allocation16 + $0x620] sm:$0xff] }
0x10d5   :  { %3646 = vmatpush.msrb.mxu1 %v3594_v16  ;;  %3666 = vmatpush.msra.mxu2 %v3595_v9  ;;  %v3747_v16 = vld [vmem:[#allocation16 + $0x7c0] sm:$0xff]  ;;  %v3748_v9 = vld [vmem:[#allocation16 + $0x7c8] sm:$0xff] }
0x10d6   :  { %3607 = vmatpush.msrb.mxu3 %v3588_v25  ;;  %3627 = vmatpush.msra.mxu0 %v3589_v15  ;;  %v3750_v25 = vld [vmem:[#allocation16 + $0x7d8] sm:$0xff]  ;;  %v3743_v15 = vld [vmem:[#allocation16 + $0x7a0] sm:$0xff] }
0x10d7   :  { %3647 = vmatpush.msrb.mxu1 %v3590_v47  ;;  %3667 = vmatpush.msra.mxu2 %v3591_v48  ;;  %v3744_v47 = vld [vmem:[#allocation16 + $0x7a8] sm:$0xff]  ;;  %v3745_v48 = vld [vmem:[#allocation16 + $0x7b0] sm:$0xff] }
0x10d8   :  { %3473 = vmatmul.f32.vlgmr.msra.gmra.mxu3 %v3245_v50  ;;  %3493 = vmatmul.f32.vlgmr.msrb.gmra.mxu0 %v3245_v50 }
0x10d9   :  { %3513 = vmatmul.f32.vlgmr.msra.gmra.mxu1 %v3245_v50  ;;  %3533 = vmatmul.f32.vlgmr.msrb.gmra.mxu2 %v3245_v50  ;;  %v3746_v50 = vld [vmem:[#allocation16 + $0x7b8] sm:$0xff] }
0x10da   :  { %3608 = vmatpush.msrb.mxu3 %v3584_v51  ;;  %3628 = vmatpush.msra.mxu0 %v3585_v37  ;;  %v3739_v51 = vld [vmem:[#allocation16 + $0x780] sm:$0xff]  ;;  %v3740_v37 = vld [vmem:[#allocation16 + $0x788] sm:$0xff] }
0x10db   :  { %3648 = vmatpush.msrb.mxu1 %v3586_v8  ;;  %3668 = vmatpush.msra.mxu2 %v3587_v26  ;;  %v3741_v8 = vld [vmem:[#allocation16 + $0x790] sm:$0xff]  ;;  %v3742_v26 = vld [vmem:[#allocation16 + $0x798] sm:$0xff] }
0x10dc   :  { %3609 = vmatpush.msrb.mxu3 %v3580_v53  ;;  %3629 = vmatpush.msra.mxu0 %v3581_v54  ;;  %v3735_v53 = vld [vmem:[#allocation16 + $0x760] sm:$0xff]  ;;  %v3736_v54 = vld [vmem:[#allocation16 + $0x768] sm:$0xff] }
0x10dd   :  { %3649 = vmatpush.msrb.mxu1 %v3582_v55  ;;  %3669 = vmatpush.msra.mxu2 %v3583_v56  ;;  %v3737_v55 = vld [vmem:[#allocation16 + $0x770] sm:$0xff]  ;;  %v3738_v56 = vld [vmem:[#allocation16 + $0x778] sm:$0xff] }
0x10de   :  { %3610 = vmatpush.msrb.mxu3 %v3576_v58  ;;  %3630 = vmatpush.msra.mxu0 %v3577_v60  ;;  %v3731_v58 = vld [vmem:[#allocation16 + $0x740] sm:$0xff]  ;;  %v3732_v60 = vld [vmem:[#allocation16 + $0x748] sm:$0xff] }
0x10df   :  { %3650 = vmatpush.msrb.mxu1 %v3578_v61  ;;  %3670 = vmatpush.msra.mxu2 %v3579_v41  ;;  %v3733_v61 = vld [vmem:[#allocation16 + $0x750] sm:$0xff]  ;;  %v3734_v41 = vld [vmem:[#allocation16 + $0x758] sm:$0xff] }
0x10e0   :  { %3611 = vmatpush.msrb.mxu3 %v3572_v46  ;;  %3631 = vmatpush.msra.mxu0 %v3573_v0  ;;  %v3727_v46 = vld [vmem:[#allocation16 + $0x720] sm:$0xff]  ;;  %v3728_v0 = vld [vmem:[#allocation16 + $0x728] sm:$0xff] }
0x10e1   :  { %3651 = vmatpush.msrb.mxu1 %v3574_v52  ;;  %3671 = vmatpush.msra.mxu2 %v3575_v42  ;;  %v3729_v52 = vld [vmem:[#allocation16 + $0x730] sm:$0xff]  ;;  %v3730_v42 = vld [vmem:[#allocation16 + $0x738] sm:$0xff] }
0x10e2   :  { %3612 = vmatpush.msrb.mxu3 %v3568_v43  ;;  %3632 = vmatpush.msra.mxu0 %v3569_v45  ;;  %v3723_v43 = vld [vmem:[#allocation16 + $0x700] sm:$0xff]  ;;  %v3724_v45 = vld [vmem:[#allocation16 + $0x708] sm:$0xff] }
0x10e3   :  { %3652 = vmatpush.msrb.mxu1 %v3570_v62  ;;  %3672 = vmatpush.msra.mxu2 %v3571_v63  ;;  %v3725_v62 = vld [vmem:[#allocation16 + $0x710] sm:$0xff]  ;;  %v3726_v63 = vld [vmem:[#allocation16 + $0x718] sm:$0xff] }
0x10e4   :  { %3613 = vmatpush.msrb.mxu3 %v3564_v38  ;;  %3633 = vmatpush.msra.mxu0 %v3565_v39  ;;  %v3719_v38 = vld [vmem:[#allocation16 + $0x6e0] sm:$0xff]  ;;  %v3720_v39 = vld [vmem:[#allocation16 + $0x6e8] sm:$0xff] }
0x10e5   :  { %3653 = vmatpush.msrb.mxu1 %v3566_v3  ;;  %3673 = vmatpush.msra.mxu2 %v3567_v5  ;;  %v3721_v3 = vld [vmem:[#allocation16 + $0x6f0] sm:$0xff]  ;;  %v3722_v5 = vld [vmem:[#allocation16 + $0x6f8] sm:$0xff] }
0x10e6   :  { %3614 = vmatpush.msrb.mxu3 %v3560_v6  ;;  %3634 = vmatpush.msra.mxu0 %v3561_v12  ;;  %v3715_v6 = vld [vmem:[#allocation16 + $0x6c0] sm:$0xff]  ;;  %v3716_v12 = vld [vmem:[#allocation16 + $0x6c8] sm:$0xff] }
0x10e7   :  { %3654 = vmatpush.msrb.mxu1 %v3562_v19  ;;  %3674 = vmatpush.msra.mxu2 %v3563_v20  ;;  %v3717_v19 = vld [vmem:[#allocation16 + $0x6d0] sm:$0xff]  ;;  %v3718_v20 = vld [vmem:[#allocation16 + $0x6d8] sm:$0xff] }
0x10e8   :  { %3615 = vmatpush.msrb.mxu3 %v3556_v36  ;;  %3635 = vmatpush.msra.mxu0 %v3557_v49  ;;  %v3711_v36 = vld [vmem:[#allocation16 + $0x6a0] sm:$0xff]  ;;  %v3712_v49 = vld [vmem:[#allocation16 + $0x6a8] sm:$0xff] }
0x10e9   :  { %3655 = vmatpush.msrb.mxu1 %v3558_v44  ;;  %3675 = vmatpush.msra.mxu2 %v3559_v21  ;;  %v3713_v44 = vld [vmem:[#allocation16 + $0x6b0] sm:$0xff]  ;;  %v3714_v21 = vld [vmem:[#allocation16 + $0x6b8] sm:$0xff] }
0x10ea   :  { %3616 = vmatpush.msrb.mxu3 %v3552_v59  ;;  %3636 = vmatpush.msra.mxu0 %v3553_v22  ;;  %v3707_v59 = vld [vmem:[#allocation16 + $0x680] sm:$0xff]  ;;  %v3708_v22 = vld [vmem:[#allocation16 + $0x688] sm:$0xff] }
0x10eb   :  { %3656 = vmatpush.msrb.mxu1 %v3554_v4  ;;  %3676 = vmatpush.msra.mxu2 %v3555_v23  ;;  %v3709_v4 = vld [vmem:[#allocation16 + $0x690] sm:$0xff]  ;;  %v3710_v23 = vld [vmem:[#allocation16 + $0x698] sm:$0xff] }
0x10ec   :  { %3617 = vmatpush.msrb.mxu3 %v3548_v27  ;;  %3637 = vmatpush.msra.mxu0 %v3549_v28  ;;  %v3703_v27 = vld [vmem:[#allocation16 + $0x660] sm:$0xff]  ;;  %v3704_v28 = vld [vmem:[#allocation16 + $0x668] sm:$0xff] }
0x10ed   :  { %3657 = vmatpush.msrb.mxu1 %v3550_v1  ;;  %3677 = vmatpush.msra.mxu2 %v3551_v2  ;;  %v3705_v1 = vld [vmem:[#allocation16 + $0x670] sm:$0xff]  ;;  %v3706_v2 = vld [vmem:[#allocation16 + $0x678] sm:$0xff] }
0x10ee   :  { %3618 = vmatpush.msrb.mxu3 %v3544_v29  ;;  %3638 = vmatpush.msra.mxu0 %v3545_v7  ;;  %v3699_v29 = vld [vmem:[#allocation16 + $0x640] sm:$0xff]  ;;  %v3700_v7 = vld [vmem:[#allocation16 + $0x648] sm:$0xff] }
0x10ef   :  { %3658 = vmatpush.msrb.mxu1 %v3546_v33  ;;  %3678 = vmatpush.msra.mxu2 %v3547_v17  ;;  %v3701_v33 = vld [vmem:[#allocation16 + $0x650] sm:$0xff]  ;;  %v3702_v17 = vld [vmem:[#allocation16 + $0x658] sm:$0xff] }
0x10f0   :  { %3619 = vmatpush.msrb.mxu3 %v3540_v18  ;;  %3639 = vmatpush.msra.mxu0 %v3541_v40  ;;  %v3696_v18 = vld [vmem:[#allocation16 + $0x628] sm:$0xff]  ;;  %v3697_v40 = vld [vmem:[#allocation16 + $0x630] sm:$0xff] }
0x10f1   :  { %3659 = vmatpush.msrb.mxu1 %v3542_v13  ;;  %3679 = vmatpush.msra.mxu2 %v3543_v30  ;;  %v3698_v13 = vld [vmem:[#allocation16 + $0x638] sm:$0xff]  ;;  %v3688_v30 = vmul.f32 %v4859_v32, %v4855_v57 }
0x10f2   :  { %3620 = vmatmul.f32.vlgmr.msrb.gmra.mxu3 %v3538_v24  ;;  %3640 = vmatmul.f32.vlgmr.msra.gmra.mxu0 %v3538_v24 }
0x10f3   :  { %3660 = vmatmul.f32.vlgmr.msrb.gmra.mxu1 %v3538_v24  ;;  %3680 = vmatmul.f32.vlgmr.msra.gmra.mxu2 %v3538_v24  ;;  %v3691_v24 = vld [vmem:[#allocation16 + $0x600] sm:$0xff] }
0x10f4   :  { %3755 = vmatpush.msra.mxu3 %v3751_v11  ;;  %3775 = vmatpush.msrb.mxu0 %v3752_v31  ;;  %v3692_v11 = vld [vmem:[#allocation16 + $0x608] sm:$0xff]  ;;  %v3693_v31 = vld [vmem:[#allocation16 + $0x610] sm:$0xff] }
0x10f5   :  { %3795 = vmatpush.msra.mxu1 %v3753_v14  ;;  %3815 = vmatpush.msrb.mxu2 %v3754_v35  ;;  %v3694_v14 = vld [vmem:[#allocation16 + $0x618] sm:$0xff]  ;;  %v3689_v35 = vmax.f32 %v3688_v30, 0.0 }
0x10f6   :  { %3756 = vmatpush.msra.mxu3 %v3747_v16  ;;  %3776 = vmatpush.msrb.mxu0 %v3748_v9 }
0x10f7   :  { %3796 = vmatpush.msra.mxu1 %v3749_v10  ;;  %3816 = vmatpush.msrb.mxu2 %v3750_v25 }
0x10f8   :  { %3757 = vmatpush.msra.mxu3 %v3743_v15  ;;  %3777 = vmatpush.msrb.mxu0 %v3744_v47 }
0x10f9   :  { %3797 = vmatpush.msra.mxu1 %v3745_v48  ;;  %3817 = vmatpush.msrb.mxu2 %v3746_v50 }
0x10fa   :  { %3758 = vmatpush.msra.mxu3 %v3739_v51  ;;  %3778 = vmatpush.msrb.mxu0 %v3740_v37 }
0x10fb   :  { %3798 = vmatpush.msra.mxu1 %v3741_v8  ;;  %3818 = vmatpush.msrb.mxu2 %v3742_v26 }
0x10fc   :  { %3759 = vmatpush.msra.mxu3 %v3735_v53  ;;  %3779 = vmatpush.msrb.mxu0 %v3736_v54 }
0x10fd   :  { %3799 = vmatpush.msra.mxu1 %v3737_v55  ;;  %3819 = vmatpush.msrb.mxu2 %v3738_v56 }
0x10fe   :  { %3760 = vmatpush.msra.mxu3 %v3731_v58  ;;  %3780 = vmatpush.msrb.mxu0 %v3732_v60 }
0x10ff   :  { %3800 = vmatpush.msra.mxu1 %v3733_v61  ;;  %3820 = vmatpush.msrb.mxu2 %v3734_v41 }
0x1100   :  { %3761 = vmatpush.msra.mxu3 %v3727_v46  ;;  %3781 = vmatpush.msrb.mxu0 %v3728_v0 }
0x1101   :  { %3801 = vmatpush.msra.mxu1 %v3729_v52  ;;  %3821 = vmatpush.msrb.mxu2 %v3730_v42 }
0x1102   :  { %3762 = vmatpush.msra.mxu3 %v3723_v43  ;;  %3782 = vmatpush.msrb.mxu0 %v3724_v45 }
0x1103   :  { %3802 = vmatpush.msra.mxu1 %v3725_v62  ;;  %3822 = vmatpush.msrb.mxu2 %v3726_v63 }
0x1104   :  { %3763 = vmatpush.msra.mxu3 %v3719_v38  ;;  %3783 = vmatpush.msrb.mxu0 %v3720_v39 }
0x1105   :  { %3803 = vmatpush.msra.mxu1 %v3721_v3  ;;  %3823 = vmatpush.msrb.mxu2 %v3722_v5 }
0x1106   :  { %3764 = vmatpush.msra.mxu3 %v3715_v6  ;;  %3784 = vmatpush.msrb.mxu0 %v3716_v12 }
0x1107   :  { %3804 = vmatpush.msra.mxu1 %v3717_v19  ;;  %3824 = vmatpush.msrb.mxu2 %v3718_v20 }
0x1108   :  { %3765 = vmatpush.msra.mxu3 %v3711_v36  ;;  %3785 = vmatpush.msrb.mxu0 %v3712_v49 }
0x1109   :  { %3805 = vmatpush.msra.mxu1 %v3713_v44  ;;  %3825 = vmatpush.msrb.mxu2 %v3714_v21 }
0x110a   :  { %3766 = vmatpush.msra.mxu3 %v3707_v59  ;;  %3786 = vmatpush.msrb.mxu0 %v3708_v22 }
0x110b   :  { %3806 = vmatpush.msra.mxu1 %v3709_v4  ;;  %3826 = vmatpush.msrb.mxu2 %v3710_v23 }
0x110c   :  { %3767 = vmatpush.msra.mxu3 %v3703_v27  ;;  %3787 = vmatpush.msrb.mxu0 %v3704_v28 }
0x110d   :  { %3807 = vmatpush.msra.mxu1 %v3705_v1  ;;  %3827 = vmatpush.msrb.mxu2 %v3706_v2 }
0x110e   :  { %3768 = vmatpush.msra.mxu3 %v3699_v29  ;;  %3788 = vmatpush.msrb.mxu0 %v3700_v7 }
0x110f   :  { %3808 = vmatpush.msra.mxu1 %v3701_v33  ;;  %3828 = vmatpush.msrb.mxu2 %v3702_v17 }
0x1110   :  { %3769 = vmatpush.msra.mxu3 %v3695_v34  ;;  %3789 = vmatpush.msrb.mxu0 %v3696_v18 }
0x1111   :  { %3809 = vmatpush.msra.mxu1 %v3697_v40  ;;  %3829 = vmatpush.msrb.mxu2 %v3698_v13 }
0x1112   :  { %3770 = vmatpush.msra.mxu3 %v3691_v24  ;;  %3790 = vmatpush.msrb.mxu0 %v3692_v11 }
0x1113   :  { %3810 = vmatpush.msra.mxu1 %v3693_v31  ;;  %3830 = vmatpush.msrb.mxu2 %v3694_v14 }
0x1114   :  { %3771 = vmatmul.f32.vlgmr.msra.gmra.mxu3 %v3689_v35  ;;  %3791 = vmatmul.f32.vlgmr.msrb.gmra.mxu0 %v3689_v35 }
0x1115   :  { %3811 = vmatmul.f32.vlgmr.msra.gmra.mxu1 %v3689_v35  ;;  %3831 = vmatmul.f32.vlgmr.msrb.gmra.mxu2 %v3689_v35 }
0x114b   :  { %v3414_v57 = vpop.f32.mrf.mxu0 }
0x114c   :  { %v3434_v32 = vpop.f32.mrf.mxu1 }
0x1151   :  { %v3394_v16 = vpop.f32.mrf.mxu3 }
0x1152   :  { %v3454_v9 = vpop.f32.mrf.mxu2 }
0x1155   :  { %v3494_v10 = vpop.f32.mrf.mxu0 }
0x1156   :  { %v3514_v25 = vpop.f32.mrf.mxu1  ;;  %v3495_v51 = vadd.f32 %v3494_v10, %v3414_v57 }
0x1157   :  { %v3515_v37 = vadd.f32 %v3514_v25, %v3434_v32 }
0x115b   :  { %v3474_v15 = vpop.f32.mrf.mxu3 }
0x115c   :  { %v3534_v47 = vpop.f32.mrf.mxu2  ;;  %v3475_v61 = vadd.f32 %v3474_v15, %v3394_v16 }
0x115d   :  { %v3535_v41 = vadd.f32 %v3534_v47, %v3454_v9 }
0x116f   :  { %v3641_v48 = vpop.f32.mrf.mxu0 }
0x1170   :  { %v3661_v50 = vpop.f32.mrf.mxu1  ;;  %v3685_v26 = vadd.f32 %v3641_v48, %v3495_v51 }
0x1171   :  { %v3686_v54 = vadd.f32 %v3661_v50, %v3515_v37 }
0x1175   :  { %v3621_v8 = vpop.f32.mrf.mxu3 }
0x1176   :  { %v3681_v53 = vpop.f32.mrf.mxu2  ;;  %v3684_v46 = vadd.f32 %v3621_v8, %v3475_v61 }
0x1177   :  { %v3687_v0 = vadd.f32 %v3681_v53, %v3535_v41 }
0x1191   :  { %v3792_v55 = vpop.f32.mrf.mxu0 }
0x1192   :  { %v3836_v56 = vadd.f32 %v3792_v55, %v3685_v26  ;;  %v3812_v58 = vpop.f32.mrf.mxu1 }
0x1193   :  { %v3837_v60 = vadd.f32 %v3812_v58, %v3686_v54 }
0x1194   :  { %3840 = vst [vmem:[%s4902_s21 + $0x8] sm:$0xff] %v3836_v56 }
0x1195   :  { %3841 = vst [vmem:[%s4902_s21 + $0x10] sm:$0xff] %v3837_v60 }
0x1197   :  { %v3772_v52 = vpop.f32.mrf.mxu3 }
0x1198   :  { %v3835_v42 = vadd.f32 %v3772_v52, %v3684_v46  ;;  %v3832_v43 = vpop.f32.mrf.mxu2 }
0x1199   :  { %v3838_v45 = vadd.f32 %v3832_v43, %v3687_v0 }
0x119a   :  { %3839 = vst [vmem:[%s4902_s21] sm:$0xff] %v3835_v42 }
0x119b   :  { %3842 = vst [vmem:[%s4902_s21 + $0x18] sm:$0xff] %v3838_v45 }
0x119c   :  { %3847 = vsyncpa [#allocation3], 1 }
0x119d   :  { %3848 = vsyncpa [#allocation5], 1 }
0x119e   :  { %3849 = vsyncpa [#allocation8], 1 }
0x119f   :  { %3850 = vsyncpa [#allocation11], 1 }
0x11a0   :  { %3851 = vsyncpa [#allocation14], 1 }
0x11a1   :  { %3852 = vsyncpa [#allocation17], 1 }

</bundles_post_ra>
